<compile_context>
chip_gen: v7x
topology: tpu7x:2x2x1
jax: 0.10.0
libtpu: 0.0.40
codegen_flags: <defaults>
</compile_context>

<pallas_src>
import functools

import jax
import jax.numpy as jnp
from jax.experimental import pallas as pl
from jax.experimental.pallas import tpu as pltpu


# ------------------------------ Pallas kernel -------------------------------


def _chief_kernel(nvalid_ref,                     # SMEM (1,) int32 (scalar prefetch)
                  x_ref,                          # [TN, Cin]  f32 (streamed)
                  w1_ref, b1_ref,                 # [Cin, L] bf16, [1, L] f32
                  wa_ref, ba_ref,                 # [L, D]  bf16, [1, D] f32
                  wb_ref, bb_ref,                 # [L, D]  bf16, [1, D] f32
                  wc_ref, bc_ref,                 # [1, D] f32,   [1, 1] f32
                  o_ref,                          # [1, L] f32 output
                  m_sc, l_sc, acc_sc,             # VMEM (1,1), (1,1), (1,L) f32
                  *, pool_on_mxu):
    i = pl.program_id(0)
    tile = x_ref.shape[0]

    @pl.when(i == 0)
    def _():
        m_sc[...] = jnp.full_like(m_sc, -jnp.inf)
        l_sc[...] = jnp.zeros_like(l_sc)
        acc_sc[...] = jnp.zeros_like(acc_sc)

    # fc: Linear(in_dim -> L) + ReLU.  (Dropout(0.25) is identity in eval mode.)
    # x streams from HBM in its native f32 and is cast to bf16 here (no host-side
    # pad/cast pre-pass); bf16 operands on the MXU, f32 accumulation.
    xb = x_ref[...].astype(jnp.bfloat16)
    h = jnp.dot(xb, w1_ref[...],
                preferred_element_type=jnp.float32) + b1_ref[...]
    h = jnp.maximum(h, 0.0)                                        # [TN, L] f32

    # Mask the ragged last tile: zero padded rows of h itself (not only their
    # scores) so garbage rows can never reach the pooling reduction as 0 * NaN.
    tok = i * tile + jax.lax.broadcasted_iota(jnp.int32, (tile, 1), 0)
    valid = tok < nvalid_ref[0]                                    # [TN, 1] bool
    h = jnp.where(valid, h, 0.0)

    # Attn_Net_Gated: a = tanh(h Wa + ba), g = sigmoid(h Wb + bb)
    hb = h.astype(jnp.bfloat16)
    a = jnp.tanh(jnp.dot(hb, wa_ref[...],
                         preferred_element_type=jnp.float32) + ba_ref[...])
    g = jax.nn.sigmoid(jnp.dot(hb, wb_ref[...],
                               preferred_element_type=jnp.float32) + bb_ref[...])

    # attention_c: per-token score s = (a*g) @ Wc + bc  (VPU multiply + lane
    # reduce; bc shifts all scores equally — kept for fidelity).
    s = jnp.sum(a * g * wc_ref[...], axis=-1, keepdims=True) + bc_ref[0, 0]
    s = jnp.where(valid, s, -jnp.inf)                              # [TN, 1]

    # Online (flash-style) softmax-weighted pooling over the token grid axis.
    m_prev = m_sc[...]                                             # [1, 1]
    m_new = jnp.maximum(m_prev, jnp.max(s))
    alpha = jnp.exp(m_prev - m_new)
    p = jnp.exp(s - m_new)                                         # [TN, 1] f32
    l_sc[...] = alpha * l_sc[...] + jnp.sum(p)

    if pool_on_mxu:
        # v6e/v7x: contract the token axis on the MXU (p^T @ h), freeing the
        # VALU broadcast-multiply + cross-sublane reduce.
        pool = jax.lax.dot_general(
            p.astype(jnp.bfloat16), hb,
            dimension_numbers=(((0,), (0,)), ((), ())),
            preferred_element_type=jnp.float32)                    # [1, L]
    else:
        # v5e: MXU is the binding unit; keep the reduce on the VPU as free filler.
        pool = jnp.sum(p * h, axis=0, keepdims=True)               # [1, L]

    acc_sc[...] = alpha * acc_sc[...] + pool
    m_sc[...] = m_new

    @pl.when(i == pl.num_programs(0) - 1)
    def _():
        o_ref[...] = (acc_sc[...] / l_sc[...]).astype(o_ref.dtype)


# ------------------------------ JAX wrapper ----------------------------------


def chief_wsi_feature(params, features, *, token_tile=512, pool_on_mxu=True):
    """z = CHIEF(features, anatomic)['WSI_feature'].  features: [N, in_dim] f32 -> [1, L].

    `pool_on_mxu=True` is the right choice on v6e/v7x; pass False on v5e.
    `token_tile`: sweep 512-1024 on real shapes (keep it a multiple of 256).
    """
    n, cin = features.shape
    if n < 1:
        raise ValueError("CHIEF requires at least one patch feature (N >= 1).")
    l_dim = params["w1"].shape[1]
    d_dim = params["wa"].shape[1]

    grid = pl.cdiv(n, token_tile)             # ragged last tile masked in-kernel
    nvalid = jnp.array([n], dtype=jnp.int32)

    const = lambda i, nv: (0, 0)              # resident (never-changing) blocks

    kernel = functools.partial(_chief_kernel, pool_on_mxu=pool_on_mxu)

    return pl.pallas_call(
        kernel,
        out_shape=jax.ShapeDtypeStruct((1, l_dim), jnp.float32),
        grid_spec=pltpu.PrefetchScalarGridSpec(
            num_scalar_prefetch=1,
            grid=(grid,),
            in_specs=[
                pl.BlockSpec((token_tile, cin), lambda i, nv: (i, 0)),  # x (pipelined, f32)
                pl.BlockSpec((cin, l_dim), const),                      # W1
                pl.BlockSpec((1, l_dim), const),                        # b1
                pl.BlockSpec((l_dim, d_dim), const),                    # Wa
                pl.BlockSpec((1, d_dim), const),                        # ba
                pl.BlockSpec((l_dim, d_dim), const),                    # Wb
                pl.BlockSpec((1, d_dim), const),                        # bb
                pl.BlockSpec((1, d_dim), const),                        # Wc (as row)
                pl.BlockSpec((1, 1), const),                            # bc
            ],
            out_specs=pl.BlockSpec((1, l_dim), const),
            scratch_shapes=[
                pltpu.VMEM((1, 1), jnp.float32),       # running max
                pltpu.VMEM((1, 1), jnp.float32),       # running softmax denominator
                pltpu.VMEM((1, l_dim), jnp.float32),   # running weighted sum of h
            ],
        ),
        compiler_params=pltpu.CompilerParams(
            dimension_semantics=("arbitrary",),        # online softmax carries state
            vmem_limit_bytes=48 * 1024 * 1024,         # < v7x 64 MiB physical, ample headroom
        ),
    )(nvalid, features,
      params["w1"], params["b1"], params["wa"], params["ba"],
      params["wb"], params["bb"], params["wc"], params["bc"])


def chief_wsi_feature_ref(params, features):
    """Pure-JAX reference with the same bf16-MXU / f32-elementwise precision path."""
    x = features.astype(jnp.bfloat16)
    h = jnp.maximum(
        jnp.dot(x, params["w1"], preferred_element_type=jnp.float32) + params["b1"], 0.0)
    hb = h.astype(jnp.bfloat16)
    a = jnp.tanh(
        jnp.dot(hb, params["wa"], preferred_element_type=jnp.float32) + params["ba"])
    g = jax.nn.sigmoid(
        jnp.dot(hb, params["wb"], preferred_element_type=jnp.float32) + params["bb"])
    s = jnp.sum(a * g * params["wc"], axis=-1) + params["bc"][0, 0]   # [N]
    att = jax.nn.softmax(s)                                            # [N]
    return att[None, :] @ h                                            # [1, L]


def chief_wsi_feature_ref_f32(params, features):
    """Full-f32 reference (closest to the PyTorch CHIEF forward)."""
    hp = jax.lax.Precision.HIGHEST
    x = features.astype(jnp.float32)
    h = jnp.maximum(
        jnp.dot(x, params["w1"].astype(jnp.float32), precision=hp) + params["b1"], 0.0)
    a = jnp.tanh(jnp.dot(h, params["wa"].astype(jnp.float32), precision=hp) + params["ba"])
    g = jax.nn.sigmoid(jnp.dot(h, params["wb"].astype(jnp.float32), precision=hp) + params["bb"])
    s = jnp.sum(a * g * params["wc"], axis=-1) + params["bc"][0, 0]
    att = jax.nn.softmax(s)
    return att[None, :] @ h


# ------------------------------ parameters -----------------------------------


def init_chief_params(key, in_dim, hidden_dim, attn_dim):
    ks = jax.random.split(key, 8)

    def w(k, shape, scale):
        return scale * jax.random.normal(k, shape, dtype=jnp.float32)

    return {
        # attention_net[0..2]: Linear(in_dim -> hidden_dim) + ReLU (+ Dropout)
        "w1": w(ks[0], (in_dim, hidden_dim), 0.05).astype(jnp.bfloat16),
        "b1": w(ks[1], (1, hidden_dim), 0.01),
        # Attn_Net_Gated.attention_a: Linear(hidden -> attn) + Tanh
        "wa": w(ks[2], (hidden_dim, attn_dim), 0.05).astype(jnp.bfloat16),
        "ba": w(ks[3], (1, attn_dim), 0.01),
        # Attn_Net_Gated.attention_b: Linear(hidden -> attn) + Sigmoid
        "wb": w(ks[4], (hidden_dim, attn_dim), 0.05).astype(jnp.bfloat16),
        "bb": w(ks[5], (1, attn_dim), 0.01),
        # Attn_Net_Gated.attention_c: Linear(attn -> 1), stored as a row [1, attn]
        "wc": w(ks[6], (1, attn_dim), 0.5),
        "bc": w(ks[7], (1, 1), 0.1),
    }


# --------------------------------- main ---------------------------------------

if __name__ == "__main__":
    # Scaled-down CHIEF "small" config (real: in_dim=768, hidden=512, attn=256).
    N_TILES = 1000      # patch tiles per slide; deliberately not a tile multiple
    IN_DIM = 256        # tile-embedding dim (stands in for 768)
    HIDDEN = 256        # attention_net hidden dim (stands in for 512)
    ATTN = 128          # gated-attention dim (stands in for 256)
    TOKEN_TILE = 512    # sweep 512-1024 on real shapes

    key = jax.random.PRNGKey(0)
    k_feat, k_par = jax.random.split(key)

    # trident passes batch['features'] of shape [1, N, in_dim] and squeezes dim 0.
    features = jax.random.normal(k_feat, (1, N_TILES, IN_DIM), dtype=jnp.float32)
    params = init_chief_params(k_par, IN_DIM, HIDDEN, ATTN)

    x = features[0]                                   # .squeeze(0), stays f32
    z = chief_wsi_feature(params, x, token_tile=TOKEN_TILE, pool_on_mxu=True)
    z = jax.block_until_ready(z)

    assert z.shape == (1, HIDDEN), z.shape
    assert bool(jnp.all(jnp.isfinite(z)))

    # Same-precision (bf16-MXU) reference: tight tolerance.
    z_ref = chief_wsi_feature_ref(params, x)
    err = float(jnp.max(jnp.abs(z - z_ref)))
    assert err < 5e-2, f"max abs err vs same-precision reference = {err}"

    # Full-f32 reference (PyTorch-like path): loose tolerance for bf16 MXU casts.
    z_f32 = chief_wsi_feature_ref_f32(params, x)
    err32 = float(jnp.max(jnp.abs(z - z_f32)))
    assert err32 < 1e-1, f"max abs err vs f32 reference = {err32}"

    print("KERNEL_OK")
</pallas_src>

<mosaic_0001>
module attributes {stable_mosaic.version = 11 : i64} {
  func.func @_chief_kernel(%arg0: i32, %arg1: memref<1xi32, #tpu.memory_space<smem>>, %arg2: memref<512x256xf32, #tpu.memory_space<vmem>>, %arg3: memref<256x256xbf16, #tpu.memory_space<vmem>>, %arg4: memref<1x256xf32, #tpu.memory_space<vmem>>, %arg5: memref<256x128xbf16, #tpu.memory_space<vmem>>, %arg6: memref<1x128xf32, #tpu.memory_space<vmem>>, %arg7: memref<256x128xbf16, #tpu.memory_space<vmem>>, %arg8: memref<1x128xf32, #tpu.memory_space<vmem>>, %arg9: memref<1x128xf32, #tpu.memory_space<vmem>>, %arg10: memref<1x1xf32, #tpu.memory_space<vmem>>, %arg11: memref<1x256xf32, #tpu.memory_space<vmem>>, %arg12: memref<1x1xf32, #tpu.memory_space<vmem>>, %arg13: memref<1x1xf32, #tpu.memory_space<vmem>>, %arg14: memref<1x256xf32, #tpu.memory_space<vmem>>) attributes {dimension_semantics = [#tpu.dimension_semantics<arbitrary>], iteration_bounds = array<i64: 2>, scalar_prefetch = 1 : i64, scratch_operands = 3 : i64, tpu.core_type = #tpu.core_type<tc>, window_params = [{transform_indices = @transform_0, window_bounds = array<i64: 512, 256>}, {pipeline_mode = #tpu.pipeline_mode<synchronous>, transform_indices = @transform_1, window_bounds = array<i64: 256, 256>}, {pipeline_mode = #tpu.pipeline_mode<synchronous>, transform_indices = @transform_2, window_bounds = array<i64: 1, 256>}, {pipeline_mode = #tpu.pipeline_mode<synchronous>, transform_indices = @transform_3, window_bounds = array<i64: 256, 128>}, {pipeline_mode = #tpu.pipeline_mode<synchronous>, transform_indices = @transform_4, window_bounds = array<i64: 1, 128>}, {pipeline_mode = #tpu.pipeline_mode<synchronous>, transform_indices = @transform_5, window_bounds = array<i64: 256, 128>}, {pipeline_mode = #tpu.pipeline_mode<synchronous>, transform_indices = @transform_6, window_bounds = array<i64: 1, 128>}, {pipeline_mode = #tpu.pipeline_mode<synchronous>, transform_indices = @transform_7, window_bounds = array<i64: 1, 128>}, {pipeline_mode = #tpu.pipeline_mode<synchronous>, transform_indices = @transform_8, window_bounds = array<i64: 1, 1>}, {pipeline_mode = #tpu.pipeline_mode<synchronous>, transform_indices = @transform_9, window_bounds = array<i64: 1, 256>}]} {
    %c0_i32 = arith.constant 0 : i32
    %0 = arith.cmpi eq, %arg0, %c0_i32 : i32
    %1 = arith.extui %0 : i1 to i32
    %c0_i32_0 = arith.constant 0 : i32
    %2 = arith.cmpi ne, %1, %c0_i32_0 : i32
    scf.if %2 {
      %cst_42 = arith.constant 0xFF800000 : f32
      %84 = vector.broadcast %cst_42 : f32 to vector<1x1xf32>
      %c0_43 = arith.constant 0 : index
      %c0_44 = arith.constant 0 : index
      %85 = vector.load %arg12[%c0_43, %c0_44] : memref<1x1xf32, #tpu.memory_space<vmem>>, vector<1x1xf32>
      tpu.vector_store %arg12[%c0_43, %c0_44], %84 {strides = array<i32>} : memref<1x1xf32, #tpu.memory_space<vmem>>, vector<1x1xf32>,
      %cst_45 = arith.constant 0.000000e+00 : f32
      %86 = vector.broadcast %cst_45 : f32 to vector<1x1xf32>
      %c0_46 = arith.constant 0 : index
      %c0_47 = arith.constant 0 : index
      %87 = vector.load %arg13[%c0_46, %c0_47] : memref<1x1xf32, #tpu.memory_space<vmem>>, vector<1x1xf32>
      tpu.vector_store %arg13[%c0_46, %c0_47], %86 {strides = array<i32>} : memref<1x1xf32, #tpu.memory_space<vmem>>, vector<1x1xf32>,
      %cst_48 = arith.constant 0.000000e+00 : f32
      %88 = vector.broadcast %cst_48 : f32 to vector<1x256xf32>
      %c0_49 = arith.constant 0 : index
      %c0_50 = arith.constant 0 : index
      %89 = vector.load %arg14[%c0_49, %c0_50] : memref<1x256xf32, #tpu.memory_space<vmem>>, vector<1x256xf32>
      tpu.vector_store %arg14[%c0_49, %c0_50], %88 {strides = array<i32>} : memref<1x256xf32, #tpu.memory_space<vmem>>, vector<1x256xf32>,
    } else {
    }
    %c0 = arith.constant 0 : index
    %c0_1 = arith.constant 0 : index
    %3 = vector.load %arg2[%c0, %c0_1] : memref<512x256xf32, #tpu.memory_space<vmem>>, vector<512x256xf32>
    %4 = arith.truncf %3 : vector<512x256xf32> to vector<512x256xbf16>
    %c0_2 = arith.constant 0 : index
    %c0_3 = arith.constant 0 : index
    %5 = vector.load %arg3[%c0_2, %c0_3] : memref<256x256xbf16, #tpu.memory_space<vmem>>, vector<256x256xbf16>
    %cst = arith.constant dense<0.000000e+00> : vector<512x256xf32>
    %6 = tpu.matmul %4, %5, %cst {dimension_numbers = #tpu.dot_dimension_numbers<[1], [0], [0], [1], [0, 0, 1, 1], [], []>} : vector<512x256xbf16>, vector<256x256xbf16>, vector<512x256xf32> -> vector<512x256xf32>
    %c0_4 = arith.constant 0 : index
    %c0_5 = arith.constant 0 : index
    %7 = vector.load %arg4[%c0_4, %c0_5] : memref<1x256xf32, #tpu.memory_space<vmem>>, vector<1x256xf32>
    %8 = vector.broadcast %7 : vector<1x256xf32> to vector<512x256xf32>
    %9 = arith.addf %6, %8 : vector<512x256xf32>
    %cst_6 = arith.constant 0.000000e+00 : f32
    %10 = vector.broadcast %cst_6 : f32 to vector<512x256xf32>
    %11 = arith.maximumf %9, %10 : vector<512x256xf32>
    %c512_i32 = arith.constant 512 : i32
    %12 = arith.muli %arg0, %c512_i32 : i32
    %13 = tpu.iota {dimensions = array<i32: 0>} : vector<512x1xi32>
    %14 = vector.broadcast %12 : i32 to vector<512x1xi32>
    %15 = arith.addi %14, %13 : vector<512x1xi32>
    %c0_7 = arith.constant 0 : index
    %16 = memref.load %arg1[%c0_7] : memref<1xi32, #tpu.memory_space<smem>>
    %17 = vector.broadcast %16 : i32 to vector<512x1xi32>
    %18 = arith.cmpi slt, %15, %17 : vector<512x1xi32>
    %cst_8 = arith.constant 0.000000e+00 : f32
    %19 = vector.shape_cast %18 : vector<512x1xi1> to vector<512x1xi1>
    %20 = vector.broadcast %19 : vector<512x1xi1> to vector<512x256xi1>
    %21 = vector.broadcast %cst_8 : f32 to vector<512x256xf32>
    %22 = arith.select %20, %11, %21 : vector<512x256xi1>, vector<512x256xf32>
    %23 = arith.truncf %22 : vector<512x256xf32> to vector<512x256xbf16>
    %c0_9 = arith.constant 0 : index
    %c0_10 = arith.constant 0 : index
    %24 = vector.load %arg5[%c0_9, %c0_10] : memref<256x128xbf16, #tpu.memory_space<vmem>>, vector<256x128xbf16>
    %cst_11 = arith.constant dense<0.000000e+00> : vector<512x128xf32>
    %25 = tpu.matmul %23, %24, %cst_11 {dimension_numbers = #tpu.dot_dimension_numbers<[1], [0], [0], [1], [0, 0, 1, 1], [], []>} : vector<512x256xbf16>, vector<256x128xbf16>, vector<512x128xf32> -> vector<512x128xf32>
    %c0_12 = arith.constant 0 : index
    %c0_13 = arith.constant 0 : index
    %26 = vector.load %arg6[%c0_12, %c0_13] : memref<1x128xf32, #tpu.memory_space<vmem>>, vector<1x128xf32>
    %27 = vector.broadcast %26 : vector<1x128xf32> to vector<512x128xf32>
    %28 = arith.addf %25, %27 : vector<512x128xf32>
    %29 = math.tanh %28 : vector<512x128xf32>
    %c0_14 = arith.constant 0 : index
    %c0_15 = arith.constant 0 : index
    %30 = vector.load %arg7[%c0_14, %c0_15] : memref<256x128xbf16, #tpu.memory_space<vmem>>, vector<256x128xbf16>
    %cst_16 = arith.constant dense<0.000000e+00> : vector<512x128xf32>
    %31 = tpu.matmul %23, %30, %cst_16 {dimension_numbers = #tpu.dot_dimension_numbers<[1], [0], [0], [1], [0, 0, 1, 1], [], []>} : vector<512x256xbf16>, vector<256x128xbf16>, vector<512x128xf32> -> vector<512x128xf32>
    %c0_17 = arith.constant 0 : index
    %c0_18 = arith.constant 0 : index
    %32 = vector.load %arg8[%c0_17, %c0_18] : memref<1x128xf32, #tpu.memory_space<vmem>>, vector<1x128xf32>
    %33 = vector.broadcast %32 : vector<1x128xf32> to vector<512x128xf32>
    %34 = arith.addf %31, %33 : vector<512x128xf32>
    %35 = arith.negf %34 : vector<512x128xf32>
    %36 = math.exp %35 : vector<512x128xf32>
    %cst_19 = arith.constant 1.000000e+00 : f32
    %37 = vector.broadcast %cst_19 : f32 to vector<512x128xf32>
    %38 = arith.addf %37, %36 : vector<512x128xf32>
    %39 = arith.divf %37, %38 : vector<512x128xf32>
    %40 = arith.mulf %29, %39 : vector<512x128xf32>
    %c0_20 = arith.constant 0 : index
    %c0_21 = arith.constant 0 : index
    %41 = vector.load %arg9[%c0_20, %c0_21] : memref<1x128xf32, #tpu.memory_space<vmem>>, vector<1x128xf32>
    %42 = vector.broadcast %41 : vector<1x128xf32> to vector<512x128xf32>
    %43 = arith.mulf %40, %42 : vector<512x128xf32>
    %cst_22 = arith.constant dense<0.000000e+00> : vector<512xf32>
    %44 = vector.multi_reduction <add>, %43, %cst_22 [1] : vector<512x128xf32> to vector<512xf32>
    %45 = vector.shape_cast %44 : vector<512xf32> to vector<512x1xf32>
    %c0_23 = arith.constant 0 : index
    %c0_24 = arith.constant 0 : index
    %46 = vector.load %arg10[%c0_23, %c0_24] : memref<1x1xf32, #tpu.memory_space<vmem>>, vector<1x1xf32>
    %47 = vector.extract %46[0, 0] : f32 from vector<1x1xf32>
    %48 = vector.broadcast %47 : f32 to vector<512x1xf32>
    %49 = arith.addf %45, %48 : vector<512x1xf32>
    %cst_25 = arith.constant 0xFF800000 : f32
    %50 = vector.broadcast %cst_25 : f32 to vector<512x1xf32>
    %51 = arith.select %18, %49, %50 : vector<512x1xi1>, vector<512x1xf32>
    %c0_26 = arith.constant 0 : index
    %c0_27 = arith.constant 0 : index
    %52 = vector.load %arg12[%c0_26, %c0_27] : memref<1x1xf32, #tpu.memory_space<vmem>>, vector<1x1xf32>
    %53 = vector.shape_cast %51 : vector<512x1xf32> to vector<1x512x1xf32>
    %cst_28 = arith.constant dense<0xFF800000> : vector<1xf32>
    %54 = vector.multi_reduction <maximumf>, %53, %cst_28 [1, 2] : vector<1x512x1xf32> to vector<1xf32>
    %55 = vector.shape_cast %54 : vector<1xf32> to vector<1x1x1xf32>
    %56 = vector.extract %55[0, 0, 0] : f32 from vector<1x1x1xf32>
    %57 = vector.broadcast %56 : f32 to vector<1x1xf32>
    %58 = arith.maximumf %52, %57 : vector<1x1xf32>
    %59 = arith.subf %52, %58 : vector<1x1xf32>
    %60 = math.exp %59 : vector<1x1xf32>
    %61 = vector.broadcast %58 : vector<1x1xf32> to vector<512x1xf32>
    %62 = arith.subf %51, %61 : vector<512x1xf32>
    %63 = math.exp %62 : vector<512x1xf32>
    %c0_29 = arith.constant 0 : index
    %c0_30 = arith.constant 0 : index
    %64 = vector.load %arg13[%c0_29, %c0_30] : memref<1x1xf32, #tpu.memory_space<vmem>>, vector<1x1xf32>
    %65 = arith.mulf %60, %64 : vector<1x1xf32>
    %66 = vector.shape_cast %63 : vector<512x1xf32> to vector<1x512x1xf32>
    %cst_31 = arith.constant dense<0.000000e+00> : vector<1xf32>
    %67 = vector.multi_reduction <add>, %66, %cst_31 [1, 2] : vector<1x512x1xf32> to vector<1xf32>
    %68 = vector.shape_cast %67 : vector<1xf32> to vector<1x1x1xf32>
    %69 = vector.extract %68[0, 0, 0] : f32 from vector<1x1x1xf32>
    %70 = vector.broadcast %69 : f32 to vector<1x1xf32>
    %71 = arith.addf %65, %70 : vector<1x1xf32>
    %c0_32 = arith.constant 0 : index
    %c0_33 = arith.constant 0 : index
    %72 = vector.load %arg13[%c0_32, %c0_33] : memref<1x1xf32, #tpu.memory_space<vmem>>, vector<1x1xf32>
    tpu.vector_store %arg13[%c0_32, %c0_33], %71 {strides = array<i32>} : memref<1x1xf32, #tpu.memory_space<vmem>>, vector<1x1xf32>,
    %73 = arith.truncf %63 : vector<512x1xf32> to vector<512x1xbf16>
    %cst_34 = arith.constant dense<0.000000e+00> : vector<1x256xf32>
    %74 = tpu.matmul %73, %23, %cst_34 {dimension_numbers = #tpu.dot_dimension_numbers<[0], [0], [1], [1], [0, 1, 1, 1], [], []>} : vector<512x1xbf16>, vector<512x256xbf16>, vector<1x256xf32> -> vector<1x256xf32>
    %c0_35 = arith.constant 0 : index
    %c0_36 = arith.constant 0 : index
    %75 = vector.load %arg14[%c0_35, %c0_36] : memref<1x256xf32, #tpu.memory_space<vmem>>, vector<1x256xf32>
    %76 = vector.broadcast %60 : vector<1x1xf32> to vector<1x256xf32>
    %77 = arith.mulf %76, %75 : vector<1x256xf32>
    %78 = arith.addf %77, %74 : vector<1x256xf32>
    %c0_37 = arith.constant 0 : index
    %c0_38 = arith.constant 0 : index
    %79 = vector.load %arg14[%c0_37, %c0_38] : memref<1x256xf32, #tpu.memory_space<vmem>>, vector<1x256xf32>
    tpu.vector_store %arg14[%c0_37, %c0_38], %78 {strides = array<i32>} : memref<1x256xf32, #tpu.memory_space<vmem>>, vector<1x256xf32>,
    %c0_39 = arith.constant 0 : index
    %c0_40 = arith.constant 0 : index
    %80 = vector.load %arg12[%c0_39, %c0_40] : memref<1x1xf32, #tpu.memory_space<vmem>>, vector<1x1xf32>
    tpu.vector_store %arg12[%c0_39, %c0_40], %58 {strides = array<i32>} : memref<1x1xf32, #tpu.memory_space<vmem>>, vector<1x1xf32>,
    %c1_i32 = arith.constant 1 : i32
    %81 = arith.cmpi eq, %arg0, %c1_i32 : i32
    %82 = arith.extui %81 : i1 to i32
    %c0_i32_41 = arith.constant 0 : i32
    %83 = arith.cmpi ne, %82, %c0_i32_41 : i32
    scf.if %83 {
      %c0_42 = arith.constant 0 : index
      %c0_43 = arith.constant 0 : index
      %84 = vector.load %arg14[%c0_42, %c0_43] : memref<1x256xf32, #tpu.memory_space<vmem>>, vector<1x256xf32>
      %c0_44 = arith.constant 0 : index
      %c0_45 = arith.constant 0 : index
      %85 = vector.load %arg13[%c0_44, %c0_45] : memref<1x1xf32, #tpu.memory_space<vmem>>, vector<1x1xf32>
      %86 = vector.broadcast %85 : vector<1x1xf32> to vector<1x256xf32>
      %87 = arith.divf %84, %86 : vector<1x256xf32>
      %c0_46 = arith.constant 0 : index
      %c0_47 = arith.constant 0 : index
      %88 = vector.load %arg11[%c0_46, %c0_47] : memref<1x256xf32, #tpu.memory_space<vmem>>, vector<1x256xf32>
      tpu.vector_store %arg11[%c0_46, %c0_47], %87 {strides = array<i32>} : memref<1x256xf32, #tpu.memory_space<vmem>>, vector<1x256xf32>,
    } else {
    }
    return
  }
  func.func @transform_0(%arg0: i32, %arg1: memref<1xi32, #tpu.memory_space<smem>>) -> (i32, i32) {
    %c0_i32 = arith.constant 0 : i32
    %c0_i32_0 = arith.constant 0 : i32
    return %arg0, %c0_i32 : i32, i32
  }
  func.func @transform_1(%arg0: i32, %arg1: memref<1xi32, #tpu.memory_space<smem>>) -> (i32, i32) {
    %c0_i32 = arith.constant 0 : i32
    %c0_i32_0 = arith.constant 0 : i32
    %c0_i32_1 = arith.constant 0 : i32
    return %c0_i32, %c0_i32_0 : i32, i32
  }
  func.func @transform_2(%arg0: i32, %arg1: memref<1xi32, #tpu.memory_space<smem>>) -> (i32, i32) {
    %c0_i32 = arith.constant 0 : i32
    %c0_i32_0 = arith.constant 0 : i32
    %c0_i32_1 = arith.constant 0 : i32
    return %c0_i32, %c0_i32_0 : i32, i32
  }
  func.func @transform_3(%arg0: i32, %arg1: memref<1xi32, #tpu.memory_space<smem>>) -> (i32, i32) {
    %c0_i32 = arith.constant 0 : i32
    %c0_i32_0 = arith.constant 0 : i32
    %c0_i32_1 = arith.constant 0 : i32
    return %c0_i32, %c0_i32_0 : i32, i32
  }
  func.func @transform_4(%arg0: i32, %arg1: memref<1xi32, #tpu.memory_space<smem>>) -> (i32, i32) {
    %c0_i32 = arith.constant 0 : i32
    %c0_i32_0 = arith.constant 0 : i32
    %c0_i32_1 = arith.constant 0 : i32
    return %c0_i32, %c0_i32_0 : i32, i32
  }
  func.func @transform_5(%arg0: i32, %arg1: memref<1xi32, #tpu.memory_space<smem>>) -> (i32, i32) {
    %c0_i32 = arith.constant 0 : i32
    %c0_i32_0 = arith.constant 0 : i32
    %c0_i32_1 = arith.constant 0 : i32
    return %c0_i32, %c0_i32_0 : i32, i32
  }
  func.func @transform_6(%arg0: i32, %arg1: memref<1xi32, #tpu.memory_space<smem>>) -> (i32, i32) {
    %c0_i32 = arith.constant 0 : i32
    %c0_i32_0 = arith.constant 0 : i32
    %c0_i32_1 = arith.constant 0 : i32
    return %c0_i32, %c0_i32_0 : i32, i32
  }
  func.func @transform_7(%arg0: i32, %arg1: memref<1xi32, #tpu.memory_space<smem>>) -> (i32, i32) {
    %c0_i32 = arith.constant 0 : i32
    %c0_i32_0 = arith.constant 0 : i32
    %c0_i32_1 = arith.constant 0 : i32
    return %c0_i32, %c0_i32_0 : i32, i32
  }
  func.func @transform_8(%arg0: i32, %arg1: memref<1xi32, #tpu.memory_space<smem>>) -> (i32, i32) {
    %c0_i32 = arith.constant 0 : i32
    %c0_i32_0 = arith.constant 0 : i32
    %c0_i32_1 = arith.constant 0 : i32
    return %c0_i32, %c0_i32_0 : i32, i32
  }
  func.func @transform_9(%arg0: i32, %arg1: memref<1xi32, #tpu.memory_space<smem>>) -> (i32, i32) {
    %c0_i32 = arith.constant 0 : i32
    %c0_i32_0 = arith.constant 0 : i32
    %c0_i32_1 = arith.constant 0 : i32
    return %c0_i32, %c0_i32_0 : i32, i32
  }
}

</mosaic_0001>

<bundles_post_ra>
// kernel: tpu_custom_call.1
= control target key start
LH: loop header
LB: loop body
LE: loop exit
PB: predicated region body
PF: predicated region fallthrough
CT: control target
= control target key end

     0   :  { %s9013_s0 = inlined_call_operand.<no memory space> [shape: s32[1], index: 0, kind: input, shape index: {}]   ;;  %s9014_s1 = inlined_call_operand.hbm [shape: f32[1000,256], index: 1, kind: input, shape index: {}]   ;;  %s9015_s2 = inlined_call_operand.hbm [shape: bf16[256,256], index: 2, kind: input, shape index: {}]   ;;  %s9016_s3 = inlined_call_operand.vmem [shape: f32[1,256], index: 3, kind: input, shape index: {}]   ;;  %s9017_s4 = inlined_call_operand.hbm [shape: bf16[256,128], index: 4, kind: input, shape index: {}]   ;;  %s9018_s5 = inlined_call_operand.vmem [shape: f32[1,128], index: 5, kind: input, shape index: {}]   ;;  %s9019_s6 = inlined_call_operand.hbm [shape: bf16[256,128], index: 6, kind: input, shape index: {}]   ;;  %s9020_s7 = inlined_call_operand.vmem [shape: f32[1,128], index: 7, kind: input, shape index: {}]   ;;  %s9021_s8 = inlined_call_operand.vmem [shape: f32[1,128], index: 8, kind: input, shape index: {}]   ;;  %s9022_s9 = inlined_call_operand.<no memory space> [shape: f32[1,1], index: 9, kind: input, shape index: {}]   ;;  %s9023_s10 = inlined_call_operand.hbm [shape: f32[1,256], index: 10, kind: output, shape index: {}]  }
   0x1   :  { %9230 = sst [smem:[#allocation106_spill]] %s9015_s2  ;;  %v16_v0 = vstv %s9022_s9 }
   0x2   :  { %15 = sst [smem:[#allocation6]] %s9013_s0  ;;  %17 = vst [vmem:[#allocation7] sm:$0x1] %v16_v0 }
   0x3   :  { %18 = vsyncpa [#allocation9], 0 }
   0x4   :  { %20 = vsyncpa [#allocation9 + $0x1], 0 }
   0x5   :  { %21 = vsyncpa [#allocation12], 0 }
   0x6   :  { %22 = vsyncpa [#allocation15], 0 }
   0x7   :  { %23 = vsyncpa [#allocation10], 0  ;;  %s5962_s17 = smov 0   ;;  %s5964_s18 = smov 0  }
   0x8   :  { %s5966_s19 = smov 0   ;;  %s5968_s20 = smov 0  }
   0x9 LB: > { %s5981_s0 = sadd.s32 4294967295, %s5883_s20   ;;  %s5984_s9 = sadd.s32 1, %s5883_s20   ;;  %s5883_s20 = sphi %s5968_s20, %s9596_s20   ;;  %s5879_s19 = sphi %s5966_s19, %s9600_s19   ;;  %s5875_s18 = sphi %s5964_s18, %s9599_s18   ;;  %s5871_s17 = sphi %s5962_s17, %s9598_s17  }
   0xa   : > { %9231 = sst [smem:[#allocation21_spill]] %s5984_s9  ;;  %s33_s21 = ssub.s32 %s5883_s20, %s5984_s9 }
   0xb   : > { %s36_s22 = sadd.s32 1, %s5879_s19  ;;  %p34_p0 = scmp.eq.s32.totalorder %s33_s21, 0 }
   0xc   : > { %p43_p1 = scmp.ne.s32.totalorder %s5879_s19, %s5875_s18  ;;  %p44_p2 = scmp.eq.s32.totalorder %s5883_s20, 0 }
   0xd   : > { %p49_p3 = scmp.ne.s32.totalorder %s5875_s18, %s5871_s17  ;;  %p9024_p5 = scmp.eq.s32.totalorder %s5981_s0, 0 }
   0xe   : > { %s5994_s23 = scalar_select %p34_p0, %s5879_s19, %s36_s22  }
   0xf   : > { %p5996_p4 = por %p44_p2, %p43_p1  ;;  %p4234_p6 = scmp.ge.s32.totalorder %s5883_s20, 1 }
  0x10   : > { %9232 = sst [smem:[#allocation22_spill]] %s5994_s23  ;;  %p249_p7 = scmp.lt.s32.totalorder %s5883_s20, 3 }
  0x11   : > { %s9233_s24 = scalar_select %p5996_p4, 1, 0 }
  0x12   : > { %p6005_p8 = por %p9024_p5, %p49_p3  ;;  %p6010_p10 = pnand %p4234_p6, %p249_p7 }
  0x13   : > { %s5885_s27 = smov [#allocation11]   ;;  %s5886_s30 = smov [#allocation13]  }
  0x14   : > { %s9234_s25 = scalar_select %p6005_p8, 1, 0 }
  0x15   : > { %s9235_s26 = scalar_select %p6010_p10, 1, 0 }
  0x16   : > { %s261_s28 = sshll.u32 %s5885_s27, 4  ;;  %p5029_p11 = pneg %p6010_p10  ;;  %s262_s28 = int_to_ptr.vmem [resolvable:$true] %s261_s28 }
  0x17   : > { %s277_s11 = sshll.u32 %s5886_s30, 4  ;;  %s9237_s2 = sld [smem:[#allocation106_spill]]  ;;  %s6022_s11 = int_to_ptr.vmem [resolvable:$true] %s277_s11 }
  0x18   : > { %p6018_p12 = pnand %p5029_p11, %p9024_p5 }
  0x1a   : > { %p6032_p0 = pneg %p6018_p12 }
  0x1d   : > { %s5699_s14 = scalar_lea.hbm %s9237_s2, 4096 }
  0x1e   : > { %p5700_p13 = scmp.ne.s32.totalorder %s9237_s2, %s5699_s14  ;;  %p5706_p3 = scmp.lt.u32.totalorder %s5699_s14, %s9237_s2 }
  0x20   : > { %p5702_p1 = pnand %p6032_p0, %p5700_p13 }
  0x22   : > { %p5703_p2 = pneg %p5702_p1 }
  0x24   : > { %p5708_p6 = pnand %p5706_p3, %p5703_p2 }
  0x26   : > { %5711 = shalt.err (!%p5708_p6)
}
  0x27   : > { %s5712_s27 = scalar_lea.vmem %s262_s28, 4096  ;;  %p5720_p5 = scmp.lt.s32.totalorder %s262_s28, %s262_s28 }
  0x28   : > { %p5713_p7 = scmp.ne.s32.totalorder %s262_s28, %s5712_s27  ;;  %p5721_p8 = scmp.lt.s32.totalorder %s5712_s27, %s5712_s27 }
  0x2a   : > { %p5715_p11 = pnand %p5713_p7, %p6032_p0  ;;  %p5722_p10 = por %p5721_p8, %p5720_p5 }
  0x2c   : > { %p5716_p9 = pneg %p5715_p11 }
  0x2e   : > { %p5723_p4 = pnand %p5722_p10, %p5716_p9 }
  0x30   : > { %5726 = shalt.err (!%p5723_p4)
}
  0x31   : > { %s5887_s30 = smov 128   ;;  %s5888_s12 = smov 8  }
  0x32   : > { %5032 = dma.hbm_to_vmem [thread:$0]  (!%p6018_p12), %s9237_s2, 4096, %s262_s28, [#allocation12], %s5887_s30, %s5887_s30, %s5888_s12  }
  0x33   : > { %s5727_s21 = scalar_lea.hbm %s9017_s4, 2048 }
  0x34   : > { %p5728_p13 = scmp.ne.s32.totalorder %s9017_s4, %s5727_s21  ;;  %p5734_p8 = scmp.lt.u32.totalorder %s5727_s21, %s9017_s4 }
  0x36   : > { %p5730_p5 = pnand %p5728_p13, %p6032_p0 }
  0x38   : > { %p5731_p4 = pneg %p5730_p5 }
  0x3a   : > { %p5736_p9 = pnand %p5734_p8, %p5731_p4 }
  0x3c   : > { %5739 = shalt.err (!%p5736_p9)
}
  0x3d   : > { %s5740_s28 = scalar_lea.vmem %s6022_s11, 2048  ;;  %p5748_p3 = scmp.lt.s32.totalorder %s6022_s11, %s6022_s11 }
  0x3e   : > { %p5741_p10 = scmp.ne.s32.totalorder %s6022_s11, %s5740_s28  ;;  %p5749_p6 = scmp.lt.s32.totalorder %s5740_s28, %s5740_s28 }
  0x40   : > { %p5743_p1 = pnand %p5741_p10, %p6032_p0  ;;  %p5750_p7 = por %p5749_p6, %p5748_p3 }
  0x42   : > { %p5744_p2 = pneg %p5743_p1 }
  0x44   : > { %p5751_p11 = pnand %p5750_p7, %p5744_p2 }
  0x46   : > { %5754 = shalt.err (!%p5751_p11)
}
  0x47   : > { %s5889_s23 = smov 64   ;;  %s5890_s9 = smov 4  }
  0x48   : > { %5035 = dma.hbm_to_vmem [thread:$0]  (!%p6018_p12), %s9017_s4, 2048, %s6022_s11, [#allocation12], %s5889_s23, %s5889_s23, %s5890_s9  }
  0x49   : > { %s5891_s13 = smov [#allocation14]   ;;  %s5755_s21 = scalar_lea.hbm %s9019_s6, 2048 }
  0x4a   : > { %s293_s14 = sshll.u32 %s5891_s13, 4  ;;  %p5756_p13 = scmp.ne.s32.totalorder %s9019_s6, %s5755_s21  ;;  %s294_s14 = int_to_ptr.vmem [resolvable:$true] %s293_s14 }
  0x4b   : > { %p5762_p8 = scmp.lt.u32.totalorder %s5755_s21, %s9019_s6 }
  0x4c   : > { %p5758_p5 = pnand %p5756_p13, %p6032_p0 }
  0x4e   : > { %p5759_p4 = pneg %p5758_p5 }
  0x50   : > { %p5764_p9 = pnand %p5762_p8, %p5759_p4 }
  0x52   : > { %5767 = shalt.err (!%p5764_p9)
}
  0x53   : > { %s5768_s11 = scalar_lea.vmem %s294_s14, 2048  ;;  %p5776_p3 = scmp.lt.s32.totalorder %s294_s14, %s294_s14 }
  0x54   : > { %p5769_p10 = scmp.ne.s32.totalorder %s294_s14, %s5768_s11  ;;  %p5777_p6 = scmp.lt.s32.totalorder %s5768_s11, %s5768_s11 }
  0x56   : > { %p5771_p1 = pnand %p5769_p10, %p6032_p0  ;;  %p5778_p7 = por %p5777_p6, %p5776_p3 }
  0x58   : > { %p5772_p2 = pneg %p5771_p1 }
  0x5a   : > { %p5779_p11 = pnand %p5778_p7, %p5772_p2 }
  0x5c   : > { %5782 = shalt.err (!%p5779_p11)
}
  0x5d   : > { %5038 = dma.hbm_to_vmem [thread:$0]  (!%p6018_p12), %s9019_s6, 2048, %s294_s14, [#allocation15], %s5889_s23, %s5889_s23, %s5890_s9  }
  0x5e   : > { %p4238_p13 = scmp.ge.s32.totalorder %s5883_s20, 2 }
  0x5f   : > { %p9239_p5 = scmp.ne.s32.totalorder (!%p4238_p13), %s9233_s24, 0 }
  0x60   : > { %312 = sbr.rel (%p4238_p13) target bundleno = 138 (0x8a), region = 48 }
  0x67   : > { %315 = sbr.rel (!%p9239_p5) target bundleno = 138 (0x8a), region = 52  ;;  %s316_s2 = sand.u32 (%p9239_p5), 1, %s5879_s19  }
  0x68   : > { %s4240_s17 = sshll.u32 (%p9239_p5), %s5883_s20, 6  ;;  %s4239_s13 = sshll.u32 (%p9239_p5), %s316_s2, 10 }
  0x69   : > { %s322_s15 = ssub.s32 (%p9239_p5), 125, %s4240_s17  ;;  %s6097_s21 = scalar_lea.sflag (%p9239_p5), [#allocation9], %s316_s2 }
  0x6a   : > { %p323_p0 = scmp.lt.s32.totalorder (%p9239_p5), %s322_s15, 64  ;;  %s320_s23 = scalar_lea.vmem (%p9239_p5), [#allocation8], %s4239_s13 }
  0x6e   : > { %s9602_s15 = smov (!%p323_p0, %s322_s15), 64 }
  0x6f   : > { %s6094_s16 = sshll.u32 %s9602_s15, 8 }
  0x70   : > { %s328_s29 = ssub.s32 16384, %s6094_s16 }
  0x71   : > { %329 = vsyncadd %s6097_s21, %s328_s29  ;;  %p4243_p12 = scmp.ne.s32.totalorder %s6094_s16, 0  ;;  %s4969_s24 = sshll.u32 %s5883_s20, 14 }
  0x72   : > { %s6105_s22 = scalar_lea.hbm %s9014_s1, %s4969_s24  ;;  %s335_s27 = sshll.u32 %s320_s23, 4  ;;  %s6107_s27 = int_to_ptr.vmem [resolvable:$true] %s335_s27 }
  0x73   : > { %s5783_s28 = scalar_lea.hbm %s6105_s22, %s6094_s16  ;;  %s5787_s20 = scalar_lea.hbm %s9014_s1, 32000 }
  0x74   : > { %p5784_p4 = scmp.ne.s32.totalorder %s6105_s22, %s5783_s28  ;;  %p5788_p10 = scmp.lt.u32.totalorder %s6105_s22, %s9014_s1 }
  0x75   : > { %p5789_p1 = scmp.lt.u32.totalorder %s5787_s20, %s5783_s28  ;;  %p5791_p3 = scmp.lt.u32.totalorder %s5783_s28, %s6105_s22 }
  0x76   : > { %p5785_p8 = pnand %p5784_p4, %p4243_p12 }
  0x77   : > { %p5790_p2 = por %p5789_p1, %p5788_p10 }
  0x78   : > { %p5786_p9 = pneg %p5785_p8 }
  0x79   : > { %p5792_p6 = por %p5791_p3, %p5790_p2 }
  0x7b   : > { %p5793_p7 = pnand %p5792_p6, %p5786_p9 }
  0x7d   : > { %5796 = shalt.err (!%p5793_p7)
}
  0x7e   : > { %s5797_s17 = scalar_lea.vmem %s6107_s27, %s6094_s16  ;;  %s5892_s13 = smov [#allocation8]  }
  0x7f   : > { %p5798_p11 = scmp.ne.s32.totalorder %s6107_s27, %s5797_s17  ;;  %s5801_s15 = sshll.u32 %s5892_s13, 4  ;;  %s5802_s15 = int_to_ptr.vmem [resolvable:$false] %s5801_s15 }
  0x80   : > { %s5803_s29 = scalar_lea.vmem %s5802_s15, 32768  ;;  %p5804_p0 = scmp.lt.s32.totalorder %s6107_s27, %s5802_s15 }
  0x81   : > { %p5799_p13 = pnand %p5798_p11, %p4243_p12  ;;  %p5805_p4 = scmp.lt.s32.totalorder %s5803_s29, %s5797_s17 }
  0x83   : > { %p5800_p5 = pneg %p5799_p13  ;;  %p5806_p8 = por %p5805_p4, %p5804_p0 }
  0x85   : > { %p5807_p10 = pnand %p5806_p8, %p5800_p5 }
  0x87   : > { %5810 = shalt.err (!%p5807_p10)
}
  0x88   : > { %s5893_s23 = smov 256   ;;  %s5894_s24 = smov 16  }
  0x89   : > { %341 = dma.hbm_to_vmem [thread:$0]  (%p4243_p12), %s6105_s22, %s6094_s16, %s6107_s27, %s6097_s21, %s5893_s23, %s5893_s23, %s5894_s24  }
  0x8a PF: > { %p9240_p9 = scmp.ne.s32.totalorder %s9235_s26, 0 }
  0x8c   : > { %347 = sbr.rel (%p9240_p9) target bundleno = 1699 (0x6a3), region = 56 }
  0x93   : > { %s349_s9 = sand.u32 1, %s5875_s18   ;;  %p9241_p1 = scmp.ne.s32.totalorder %s9234_s25, 0 }
  0x94   : > { %s4249_s14 = sshll.u32 %s349_s9, 10  ;;  %s350_s28 = scalar_lea.sflag [#allocation9], %s349_s9 }
  0x95   : > { %s6137_s11 = scalar_lea.vmem [#allocation8], %s4249_s14 }
  0x96   : > { %5854 = dma.done.wait (%p9241_p1), %s350_s28, 16384  }
  0x97   : > { %5856 = vsyncadd (%p9241_p1), %s350_s28, 4294950912  ;;  %p9242_p2 = scmp.eq.s32.totalorder %s5981_s0, 0 }
  0x99   : > { %5858 = dma.done.wait (%p9242_p2), [#allocation12], 6144   ;;  %p9243_p12 = pmov %p9242_p2 }
  0x9a   : > { %p9244_p3 = pmov %p9242_p2 }
  0x9b   : > { %5860 = vsyncadd (%p9243_p12), [#allocation12], 4294961152 }
  0x9c   : > { %5862 = dma.done.wait (%p9244_p3), [#allocation15], 2048   ;;  %p9245_p6 = pmov %p9242_p2 }
  0x9d   : > { %p9246_p7 = scmp.ne.s32.totalorder %s5981_s0, 0 }
  0x9e   : > { %5864 = vsyncadd (%p9245_p6), [#allocation15], 4294965248  ;;  %vm406_vm0 = vcmask (!%p9246_p7), 0   ;;  %v409_v1 = vlaneseq (!%p9246_p7)  ;;  %v5895_v2 = vmov (!%p9246_p7), -inf   ;;  %v5896_v3 = vmov (!%p9246_p7), 0.0  }
  0x9f   : > { %405 = sbr.rel (%p9246_p7) target bundleno = 166 (0xa6), region = 76  ;;  %407 = vst.msk [vmem:[#allocation2] sm:$0x1] (!%p9246_p7), %vm406_vm0, %v5895_v2  ;;  %408 = vst.msk [vmem:[#allocation3] sm:$0x1] (!%p9246_p7), %vm406_vm0, %v5896_v3 }
  0xa0   : > { %vm411_vm1 = vcmp.lt.s32.totalorder (!%p9246_p7), %v409_v1, 256 }
  0xa1   : > { %413 = vst.msk [vmem:[#allocation4] sm:$0x3] (!%p9246_p7), %vm411_vm1, %v5896_v3 }
  0xa6 PF: > { %v5096_v4 = vld [vmem:[#allocation11 + $0x4] ss:$8 sps:$4 sm:$0xff]   ;;  %v5098_v5 = vld [vmem:[#allocation11] ss:$8 sps:$4 sm:$0xff]   ;;  %v5099_v6 = vld [vmem:[#allocation11 + $0x14] ss:$8 sps:$4 sm:$0xff]  }
  0xa7   : > { %810 = vmatprep.subr.bf16.mxu0 %v5096_v4  ;;  %4970 = vmatprep.subr.bf16.mxu1 %v5096_v4  ;;  %v5101_v7 = vld [vmem:[#allocation11 + $0x10] ss:$8 sps:$4 sm:$0xff]   ;;  %v5102_v8 = vld [vmem:[#allocation11 + $0x24] ss:$8 sps:$4 sm:$0xff]   ;;  %v5104_v9 = vld [vmem:[#allocation11 + $0x20] ss:$8 sps:$4 sm:$0xff]  }
  0xa8   : > { %811 = vmatpush1.bf16.msra.mxu0 %v5098_v5  ;;  %4986 = vmatpush1.bf16.msra.mxu1 %v5098_v5  ;;  %v5105_v10 = vld [vmem:[#allocation11 + $0x34] ss:$8 sps:$4 sm:$0xff]   ;;  %v5107_v11 = vld [vmem:[#allocation11 + $0x30] ss:$8 sps:$4 sm:$0xff]   ;;  %v5108_v12 = vld [vmem:[#allocation11 + $0x44] ss:$8 sps:$4 sm:$0xff]  }
  0xa9   : > { %812 = vmatprep.subr.bf16.mxu0 %v5099_v6  ;;  %4971 = vmatprep.subr.bf16.mxu1 %v5099_v6  ;;  %v5110_v13 = vld [vmem:[#allocation11 + $0x40] ss:$8 sps:$4 sm:$0xff]   ;;  %v5111_v14 = vld [vmem:[#allocation11 + $0x54] ss:$8 sps:$4 sm:$0xff]   ;;  %v5113_v15 = vld [vmem:[#allocation11 + $0x50] ss:$8 sps:$4 sm:$0xff]  }
  0xaa   : > { %v5114_v16 = vld [vmem:[#allocation11 + $0x64] ss:$8 sps:$4 sm:$0xff]   ;;  %v417_v18 = vld [vmem:[%s6137_s11 + $0x18] sm:$0xff]  ;;  %v5116_v20 = vld [vmem:[#allocation11 + $0x60] ss:$8 sps:$4 sm:$0xff]   ;;  %v9035_v46 = vmov 0  }
  0xab   : > { %v415_v17 = vld [vmem:[%s6137_s11 + $0x8] sm:$0xff]  ;;  %v5117_v21 = vld [vmem:[#allocation11 + $0x74] ss:$8 sps:$4 sm:$0xff]   ;;  %v5119_v22 = vld [vmem:[#allocation11 + $0x70] ss:$8 sps:$4 sm:$0xff]   ;;  %s1422_s25 = sld [smem:[#allocation6]] }
  0xac   : > { %813 = vmatpush1.bf16.msra.mxu0 %v5101_v7  ;;  %4987 = vmatpush1.bf16.msra.mxu1 %v5101_v7  ;;  %v543_v19 = vpack.c.bf16 %v417_v18, %v415_v17  ;;  %v5120_v23 = vld [vmem:[#allocation11 + $0x84] ss:$8 sps:$4 sm:$0xff]   ;;  %v5122_v24 = vld [vmem:[#allocation11 + $0x80] ss:$8 sps:$4 sm:$0xff]   ;;  %v5123_v25 = vld [vmem:[#allocation11 + $0x94] ss:$8 sps:$4 sm:$0xff]  }
  0xad   : > { %814 = vmatprep.subr.bf16.mxu0 %v5102_v8  ;;  %4972 = vmatprep.subr.bf16.mxu1 %v5102_v8  ;;  %v5125_v26 = vld [vmem:[#allocation11 + $0x90] ss:$8 sps:$4 sm:$0xff]   ;;  %v5126_v27 = vld [vmem:[#allocation11 + $0xa4] ss:$8 sps:$4 sm:$0xff]   ;;  %v5128_v28 = vld [vmem:[#allocation11 + $0xa0] ss:$8 sps:$4 sm:$0xff]  }
  0xae   : > { %842 = vmatprep.mubr.bf16.mxu0 %v543_v19  ;;  %v5129_v29 = vld [vmem:[#allocation11 + $0xb4] ss:$8 sps:$4 sm:$0xff]   ;;  %v5131_v30 = vld [vmem:[#allocation11 + $0xb0] ss:$8 sps:$4 sm:$0xff]   ;;  %v5132_v31 = vld [vmem:[#allocation11 + $0xc4] ss:$8 sps:$4 sm:$0xff]  }
  0xaf   : > { %v5134_v32 = vld [vmem:[#allocation11 + $0xc0] ss:$8 sps:$4 sm:$0xff]   ;;  %v5135_v33 = vld [vmem:[#allocation11 + $0xd4] ss:$8 sps:$4 sm:$0xff]   ;;  %v5137_v34 = vld [vmem:[#allocation11 + $0xd0] ss:$8 sps:$4 sm:$0xff]  }
  0xb0   : > { %815 = vmatpush1.bf16.msra.mxu0 %v5104_v9  ;;  %4988 = vmatpush1.bf16.msra.mxu1 %v5104_v9  ;;  %v5138_v35 = vld [vmem:[#allocation11 + $0xe4] ss:$8 sps:$4 sm:$0xff]   ;;  %v5140_v36 = vld [vmem:[#allocation11 + $0xe0] ss:$8 sps:$4 sm:$0xff]   ;;  %v5141_v37 = vld [vmem:[#allocation11 + $0xf4] ss:$8 sps:$4 sm:$0xff]  }
  0xb1   : > { %816 = vmatprep.subr.bf16.mxu0 %v5105_v10  ;;  %4973 = vmatprep.subr.bf16.mxu1 %v5105_v10  ;;  %v5143_v38 = vld [vmem:[#allocation11 + $0xf0] ss:$8 sps:$4 sm:$0xff]   ;;  %v414_v39 = vld [vmem:[%s6137_s11] sm:$0xff]  ;;  %v419_v41 = vld [vmem:[%s6137_s11 + $0x28] sm:$0xff]  ;;  %s4286_s21 = sshll.u32 %s5981_s0, 9  ;;  %p4962_p11 = scmp.ne.s32.totalorder %s5981_s0, 1 }
  0xb2   : > { %v416_v40 = vld [vmem:[%s6137_s11 + $0x10] sm:$0xff]  ;;  %v421_v42 = vld [vmem:[%s6137_s11 + $0x38] sm:$0xff]  ;;  %v5144_v43 = vld [vmem:[#allocation14] sm:$0xff]  }
  0xb3   : > { %v542_v44 = vpack.c.bf16 %v416_v40, %v414_v39  ;;  %v545_v45 = vpack.c.bf16 %v421_v42, %v419_v41  ;;  %v418_v47 = vld [vmem:[%s6137_s11 + $0x20] sm:$0xff]  ;;  %v420_v48 = vld [vmem:[%s6137_s11 + $0x30] sm:$0xff]  ;;  %v499_v49 = vld [vmem:[%s6137_s11 + $0x2a8] sm:$0xff] }
  0xb4   : > { %817 = vmatpush1.bf16.msra.mxu0 %v5107_v11  ;;  %4989 = vmatpush1.bf16.msra.mxu1 %v5107_v11  ;;  %v501_v50 = vld [vmem:[%s6137_s11 + $0x2b8] sm:$0xff]  ;;  %v5145_v51 = vld [vmem:[#allocation14 + $0x8] sm:$0xff]   ;;  %v498_v53 = vld [vmem:[%s6137_s11 + $0x2a0] sm:$0xff]  ;;  %v544_v58 = vpack.c.bf16 %v420_v48, %v418_v47 }
  0xb5   : > { %818 = vmatprep.subr.bf16.mxu0 %v5108_v12  ;;  %4974 = vmatprep.subr.bf16.mxu1 %v5108_v12  ;;  %v585_v52 = vpack.c.bf16 %v501_v50, %v499_v49  ;;  %v500_v54 = vld [vmem:[%s6137_s11 + $0x2b0] sm:$0xff]  ;;  %v423_v55 = vld [vmem:[%s6137_s11 + $0x48] sm:$0xff]  ;;  %v425_v56 = vld [vmem:[%s6137_s11 + $0x58] sm:$0xff] }
  0xb6   : > { %v584_v57 = vpack.c.bf16 %v500_v54, %v498_v53  ;;  %v547_v59 = vpack.c.bf16 %v425_v56, %v423_v55  ;;  %v5146_v60 = vld [vmem:[#allocation14 + $0x10] sm:$0xff]   ;;  %v422_v61 = vld [vmem:[%s6137_s11 + $0x40] sm:$0xff]  ;;  %v503_v63 = vld [vmem:[%s6137_s11 + $0x2c8] sm:$0xff] }
  0xb7   : > { %1052 = vmatprep.mubr.bf16.mxu1 %v585_v52  ;;  %v424_v62 = vld [vmem:[%s6137_s11 + $0x50] sm:$0xff]  ;;  %v505_v0 = vld [vmem:[%s6137_s11 + $0x2d8] sm:$0xff]  ;;  %v502_v3 = vld [vmem:[%s6137_s11 + $0x2c0] sm:$0xff] }
  0xb8   : > { %819 = vmatpush1.bf16.msra.mxu0 %v5110_v13  ;;  %4990 = vmatpush1.bf16.msra.mxu1 %v5110_v13  ;;  %v5147_v1 = vld [vmem:[#allocation14 + $0x18] sm:$0xff]   ;;  %v587_v2 = vpack.c.bf16 %v505_v0, %v503_v63  ;;  %v504_v4 = vld [vmem:[%s6137_s11 + $0x2d0] sm:$0xff]  ;;  %v427_v5 = vld [vmem:[%s6137_s11 + $0x68] sm:$0xff]  ;;  %v546_v8 = vpack.c.bf16 %v424_v62, %v422_v61 }
  0xb9   : > { %820 = vmatprep.subr.bf16.mxu0 %v5111_v14  ;;  %4975 = vmatprep.subr.bf16.mxu1 %v5111_v14  ;;  %v429_v6 = vld [vmem:[%s6137_s11 + $0x78] sm:$0xff]  ;;  %v586_v7 = vpack.c.bf16 %v504_v4, %v502_v3  ;;  %v5148_v10 = vld [vmem:[#allocation14 + $0x20] sm:$0xff]   ;;  %v428_v12 = vld [vmem:[%s6137_s11 + $0x70] sm:$0xff] }
  0xba   : > { %v549_v9 = vpack.c.bf16 %v429_v6, %v427_v5  ;;  %v426_v11 = vld [vmem:[%s6137_s11 + $0x60] sm:$0xff]  ;;  %v507_v13 = vld [vmem:[%s6137_s11 + $0x2e8] sm:$0xff]  ;;  %v509_v14 = vld [vmem:[%s6137_s11 + $0x2f8] sm:$0xff] }
  0xbb   : > { %v589_v17 = vpack.c.bf16 %v509_v14, %v507_v13  ;;  %v506_v18 = vld [vmem:[%s6137_s11 + $0x2e0] sm:$0xff]  ;;  %v508_v19 = vld [vmem:[%s6137_s11 + $0x2f0] sm:$0xff]  ;;  %v517_v47 = vld [vmem:[%s6137_s11 + $0x338] sm:$0xff] }
  0xbc   : > { %821 = vmatpush1.bf16.msra.mxu0 %v5113_v15  ;;  %4991 = vmatpush1.bf16.msra.mxu1 %v5113_v15  ;;  %v5153_v15 = vld [vmem:[#allocation13] sm:$0xff]   ;;  %v436_v42 = vld [vmem:[%s6137_s11 + $0xb0] sm:$0xff]  ;;  %v5154_v48 = vld [vmem:[#allocation14 + $0x48] sm:$0xff]  }
  0xbd   : > { %822 = vmatprep.subr.bf16.mxu0 %v5114_v16  ;;  %4976 = vmatprep.subr.bf16.mxu1 %v5114_v16  ;;  %v5149_v16 = vld [vmem:[#allocation14 + $0x28] sm:$0xff]   ;;  %v5152_v40 = vld [vmem:[#allocation14 + $0x40] sm:$0xff]   ;;  %v441_v52 = vld [vmem:[%s6137_s11 + $0xd8] sm:$0xff] }
  0xbe   : > { %v434_v41 = vld [vmem:[%s6137_s11 + $0xa0] sm:$0xff]  ;;  %v5158_v54 = vld [vmem:[#allocation13 + $0x18] sm:$0xff]   ;;  %v519_v55 = vld [vmem:[%s6137_s11 + $0x348] sm:$0xff] }
  0xbf   : > { %v514_v50 = vld [vmem:[%s6137_s11 + $0x320] sm:$0xff]  ;;  %v521_v56 = vld [vmem:[%s6137_s11 + $0x358] sm:$0xff]  ;;  %v520_v62 = vld [vmem:[%s6137_s11 + $0x350] sm:$0xff] }
  0xc0   : > { %823 = vmatpush1.bf16.msra.mxu0 %v5116_v20  ;;  %4992 = vmatpush1.bf16.msra.mxu1 %v5116_v20  ;;  %v431_v20 = vld [vmem:[%s6137_s11 + $0x88] sm:$0xff]  ;;  %v518_v61 = vld [vmem:[%s6137_s11 + $0x340] sm:$0xff]  ;;  %v440_v4 = vld [vmem:[%s6137_s11 + $0xd0] sm:$0xff] }
  0xc1   : > { %824 = vmatprep.subr.bf16.mxu0 %v5117_v21  ;;  %4977 = vmatprep.subr.bf16.mxu1 %v5117_v21  ;;  %v433_v21 = vld [vmem:[%s6137_s11 + $0x98] sm:$0xff]  ;;  %v5160_v63 = vld [vmem:[#allocation13 + $0x20] sm:$0xff]   ;;  %v523_v0 = vld [vmem:[%s6137_s11 + $0x368] sm:$0xff] }
  0xc2   : > { %v438_v3 = vld [vmem:[%s6137_s11 + $0xc0] sm:$0xff]  ;;  %v5159_v5 = vld [vmem:[#allocation14 + $0x58] sm:$0xff]   ;;  %v524_v14 = vld [vmem:[%s6137_s11 + $0x370] sm:$0xff] }
  0xc3   : > { %v522_v13 = vld [vmem:[%s6137_s11 + $0x360] sm:$0xff] }
  0xc4   : > { %825 = vmatpush1.bf16.msra.mxu0 %v5119_v22  ;;  %4993 = vmatpush1.bf16.msra.mxu1 %v5119_v22  ;;  %v588_v22 = vpack.c.bf16 %v508_v19, %v506_v18  ;;  %v596_v18 = vpack.c.bf16 %v524_v14, %v522_v13  ;;  %v442_v19 = vld [vmem:[%s6137_s11 + $0xe0] sm:$0xff]  ;;  %v540_v13 = vld [vmem:[%s6137_s11 + $0x3f0] sm:$0xff] }
  0xc5   : > { %826 = vmatprep.subr.bf16.mxu0 %v5120_v23  ;;  %4978 = vmatprep.subr.bf16.mxu1 %v5120_v23  ;;  %v548_v23 = vpack.c.bf16 %v428_v12, %v426_v11  ;;  %v5162_v12 = vld [vmem:[#allocation14 + $0x60] sm:$0xff]  }
  0xc8   : > { %827 = vmatpush1.bf16.msra.mxu0 %v5122_v24  ;;  %4994 = vmatpush1.bf16.msra.mxu1 %v5122_v24  ;;  %v551_v24 = vpack.c.bf16 %v433_v21, %v431_v20  ;;  %v444_v20 = vld [vmem:[%s6137_s11 + $0xf0] sm:$0xff] }
  0xc9   : > { %828 = vmatprep.subr.bf16.mxu0 %v5123_v25  ;;  %4979 = vmatprep.subr.bf16.mxu1 %v5123_v25  ;;  %v5150_v25 = vld [vmem:[#allocation14 + $0x30] sm:$0xff]  }
  0xcc   : > { %829 = vmatpush1.bf16.msra.mxu0 %v5125_v26  ;;  %4995 = vmatpush1.bf16.msra.mxu1 %v5125_v26  ;;  %v430_v26 = vld [vmem:[%s6137_s11 + $0x80] sm:$0xff] }
  0xcd   : > { %830 = vmatprep.subr.bf16.mxu0 %v5126_v27  ;;  %4980 = vmatprep.subr.bf16.mxu1 %v5126_v27  ;;  %v432_v27 = vld [vmem:[%s6137_s11 + $0x90] sm:$0xff] }
  0xd0   : > { %831 = vmatpush1.bf16.msra.mxu0 %v5128_v28  ;;  %4996 = vmatpush1.bf16.msra.mxu1 %v5128_v28  ;;  %v5155_v28 = vld [vmem:[#allocation13 + $0x8] sm:$0xff]  }
  0xd1   : > { %832 = vmatprep.subr.bf16.mxu0 %v5129_v29  ;;  %4981 = vmatprep.subr.bf16.mxu1 %v5129_v29  ;;  %v511_v29 = vld [vmem:[%s6137_s11 + $0x308] sm:$0xff] }
  0xd4   : > { %833 = vmatpush1.bf16.msra.mxu0 %v5131_v30  ;;  %4997 = vmatpush1.bf16.msra.mxu1 %v5131_v30  ;;  %v513_v30 = vld [vmem:[%s6137_s11 + $0x318] sm:$0xff] }
  0xd5   : > { %834 = vmatprep.subr.bf16.mxu0 %v5132_v31  ;;  %4982 = vmatprep.subr.bf16.mxu1 %v5132_v31  ;;  %v5151_v31 = vld [vmem:[#allocation14 + $0x38] sm:$0xff]  }
  0xd8   : > { %835 = vmatpush1.bf16.msra.mxu0 %v5134_v32  ;;  %4998 = vmatpush1.bf16.msra.mxu1 %v5134_v32  ;;  %v591_v32 = vpack.c.bf16 %v513_v30, %v511_v29  ;;  %v528_v29 = vld [vmem:[%s6137_s11 + $0x390] sm:$0xff] }
  0xd9   : > { %836 = vmatprep.subr.bf16.mxu0 %v5135_v33  ;;  %4983 = vmatprep.subr.bf16.mxu1 %v5135_v33  ;;  %v510_v33 = vld [vmem:[%s6137_s11 + $0x300] sm:$0xff]  ;;  %v5169_v30 = vld [vmem:[#allocation14 + $0x70] sm:$0xff]  }
  0xdc   : > { %837 = vmatpush1.bf16.msra.mxu0 %v5137_v34  ;;  %4999 = vmatpush1.bf16.msra.mxu1 %v5137_v34  ;;  %v512_v34 = vld [vmem:[%s6137_s11 + $0x310] sm:$0xff] }
  0xdd   : > { %838 = vmatprep.subr.bf16.mxu0 %v5138_v35  ;;  %4984 = vmatprep.subr.bf16.mxu1 %v5138_v35  ;;  %v435_v35 = vld [vmem:[%s6137_s11 + $0xa8] sm:$0xff] }
  0xe0   : > { %839 = vmatpush1.bf16.msra.mxu0 %v5140_v36  ;;  %5000 = vmatpush1.bf16.msra.mxu1 %v5140_v36  ;;  %v437_v36 = vld [vmem:[%s6137_s11 + $0xb8] sm:$0xff] }
  0xe1   : > { %840 = vmatprep.subr.bf16.mxu0 %v5141_v37  ;;  %4985 = vmatprep.subr.bf16.mxu1 %v5141_v37  ;;  %v590_v37 = vpack.c.bf16 %v512_v34, %v510_v33  ;;  %v553_v39 = vpack.c.bf16 %v437_v36, %v435_v35  ;;  %v533_v33 = vld [vmem:[%s6137_s11 + $0x3b8] sm:$0xff]  ;;  %v446_v35 = vld [vmem:[%s6137_s11 + $0x100] sm:$0xff]  ;;  %v448_v36 = vld [vmem:[%s6137_s11 + $0x110] sm:$0xff] }
  0xe4   : > { %841 = vmatpush1.bf16.msra.mxu0 %v5143_v38  ;;  %5001 = vmatpush1.bf16.msra.mxu1 %v5143_v38  ;;  %v550_v38 = vpack.c.bf16 %v432_v27, %v430_v26  ;;  %v556_v26 = vpack.c.bf16 %v444_v20, %v442_v19  ;;  %v5175_v19 = vld [vmem:[#allocation13 + $0x78] sm:$0xff]   ;;  %v462_v20 = vld [vmem:[%s6137_s11 + $0x180] sm:$0xff] }
  0xe5   : > { %2431 = vmatprep.subr.bf16.mxu0 %v9035_v46  ;;  %1943 = vmatprep.subr.bf16.mxu1 %v9035_v46 }
  0xe7   : > { %843 = vmatmul.mubr.bf16.vlgmr.msra.gmra.mrb[0].mxu0 %v542_v44  ;;  %1053 = vmatmul.mubr.bf16.vlgmr.msra.gmra.mrb[0].mxu1 %v584_v57  ;;  %v5157_v44 = vld [vmem:[#allocation13 + $0x10] sm:$0xff]   ;;  %v552_v57 = vpack.c.bf16 %v436_v42, %v434_v41  ;;  %v558_v41 = vpack.c.bf16 %v448_v36, %v446_v35  ;;  %v477_v35 = vld [vmem:[%s6137_s11 + $0x1f8] sm:$0xff] }
  0xe8   : > { %852 = vmatprep.mubr.bf16.mxu0 %v545_v45  ;;  %2432 = vmatpush1.bf16.msra.mxu0 %v5144_v43  ;;  %v439_v43 = vld [vmem:[%s6137_s11 + $0xc8] sm:$0xff] }
  0xe9   : > { %2433 = vmatprep.subr.bf16.mxu0 %v9035_v46  ;;  %1062 = vmatprep.mubr.bf16.mxu1 %v587_v2  ;;  %v515_v45 = vld [vmem:[%s6137_s11 + $0x328] sm:$0xff]  ;;  %v594_v2 = vpack.c.bf16 %v520_v62, %v518_v61  ;;  %v454_v62 = vld [vmem:[%s6137_s11 + $0x140] sm:$0xff] }
  0xea   : > { %1944 = vmatpush1.bf16.msra.mxu1 %v5153_v15  ;;  %v593_v49 = vpack.c.bf16 %v517_v47, %v515_v45  ;;  %v5163_v15 = vld [vmem:[#allocation13 + $0x30] sm:$0xff]   ;;  %v535_v47 = vld [vmem:[%s6137_s11 + $0x3c8] sm:$0xff] }
  0xeb   : > { %1945 = vmatprep.subr.bf16.mxu1 %v9035_v46  ;;  %v5168_v45 = vld [vmem:[#allocation13 + $0x50] sm:$0xff]  }
  0xec   : > { %2434 = vmatpush1.bf16.msra.mxu0 %v5145_v51  ;;  %v516_v51 = vld [vmem:[%s6137_s11 + $0x330] sm:$0xff] }
  0xed   : > { %2435 = vmatprep.subr.bf16.mxu0 %v9035_v46  ;;  %v592_v53 = vpack.c.bf16 %v516_v51, %v514_v50  ;;  %v450_v50 = vld [vmem:[%s6137_s11 + $0x120] sm:$0xff]  ;;  %v452_v51 = vld [vmem:[%s6137_s11 + $0x130] sm:$0xff] }
  0xee   : > { %1946 = vmatpush1.bf16.msra.mxu1 %v5155_v28  ;;  %v526_v28 = vld [vmem:[%s6137_s11 + $0x380] sm:$0xff] }
  0xef   : > { %853 = vmatmul.mubr.bf16.gmra.mrb[4].mxu0 %v544_v58  ;;  %1063 = vmatmul.mubr.bf16.gmra.mrb[4].mxu1 %v586_v7  ;;  %v595_v58 = vpack.c.bf16 %v521_v56, %v519_v55  ;;  %v443_v7 = vld [vmem:[%s6137_s11 + $0xe8] sm:$0xff]  ;;  %v598_v34 = vpack.c.bf16 %v528_v29, %v526_v28  ;;  %v5170_v55 = vld [vmem:[#allocation13 + $0x58] sm:$0xff]   ;;  %v560_v56 = vpack.c.bf16 %v452_v51, %v450_v50  ;;  %v482_v51 = vld [vmem:[%s6137_s11 + $0x220] sm:$0xff] }
  0xf0   : > { %862 = vmatprep.mubr.bf16.mxu0 %v547_v59  ;;  %2436 = vmatpush1.bf16.msra.mxu0 %v5146_v60  ;;  %v555_v59 = vpack.c.bf16 %v441_v52, %v439_v43  ;;  %v5156_v60 = vld [vmem:[#allocation14 + $0x50] sm:$0xff]   ;;  %v530_v43 = vld [vmem:[%s6137_s11 + $0x3a0] sm:$0xff]  ;;  %v471_v28 = vld [vmem:[%s6137_s11 + $0x1c8] sm:$0xff] }
  0xf1   : > { %2437 = vmatprep.subr.bf16.mxu0 %v9035_v46  ;;  %1072 = vmatprep.mubr.bf16.mxu1 %v589_v17  ;;  %v529_v17 = vld [vmem:[%s6137_s11 + $0x398] sm:$0xff] }
  0xf2   : > { %1947 = vmatprep.subr.bf16.mxu1 %v9035_v46  ;;  %v473_v29 = vld [vmem:[%s6137_s11 + $0x1d8] sm:$0xff] }
  0xf3   : > { %1948 = vmatpush1.bf16.msra.mxu1 %v5157_v44  ;;  %v532_v44 = vld [vmem:[%s6137_s11 + $0x3b0] sm:$0xff] }
  0xf4   : > { %2438 = vmatpush1.bf16.msra.mxu0 %v5147_v1  ;;  %1949 = vmatprep.subr.bf16.mxu1 %v9035_v46  ;;  %v525_v1 = vld [vmem:[%s6137_s11 + $0x378] sm:$0xff] }
  0xf5   : > { %2439 = vmatprep.subr.bf16.mxu0 %v9035_v46  ;;  %v597_v6 = vpack.c.bf16 %v525_v1, %v523_v0  ;;  %v459_v0 = vld [vmem:[%s6137_s11 + $0x168] sm:$0xff]  ;;  %v461_v1 = vld [vmem:[%s6137_s11 + $0x178] sm:$0xff] }
  0xf7   : > { %863 = vmatmul.mubr.bf16.gmra.mrb[8].mxu0 %v546_v8  ;;  %1073 = vmatmul.mubr.bf16.gmra.mrb[8].mxu1 %v588_v22  ;;  %v445_v8 = vld [vmem:[%s6137_s11 + $0xf8] sm:$0xff]  ;;  %v5166_v22 = vld [vmem:[#allocation14 + $0x68] sm:$0xff]  }
  0xf8   : > { %872 = vmatprep.mubr.bf16.mxu0 %v549_v9  ;;  %2440 = vmatpush1.bf16.msra.mxu0 %v5148_v10  ;;  %v5161_v9 = vld [vmem:[#allocation13 + $0x28] sm:$0xff]   ;;  %v554_v10 = vpack.c.bf16 %v440_v4, %v438_v3  ;;  %v557_v11 = vpack.c.bf16 %v445_v8, %v443_v7  ;;  %v565_v4 = vpack.c.bf16 %v461_v1, %v459_v0  ;;  %v465_v8 = vld [vmem:[%s6137_s11 + $0x198] sm:$0xff]  ;;  %v492_v0 = vld [vmem:[%s6137_s11 + $0x270] sm:$0xff] }
  0xf9   : > { %2441 = vmatprep.subr.bf16.mxu0 %v9035_v46  ;;  %1082 = vmatprep.mubr.bf16.mxu1 %v591_v32  ;;  %v531_v32 = vld [vmem:[%s6137_s11 + $0x3a8] sm:$0xff] }
  0xfa   : > { %1950 = vmatpush1.bf16.msra.mxu1 %v5158_v54  ;;  %v457_v54 = vld [vmem:[%s6137_s11 + $0x158] sm:$0xff]  ;;  %v463_v7 = vld [vmem:[%s6137_s11 + $0x188] sm:$0xff] }
  0xfb   : > { %1951 = vmatprep.subr.bf16.mxu1 %v9035_v46  ;;  %v495_v1 = vld [vmem:[%s6137_s11 + $0x288] sm:$0xff] }
  0xfc   : > { %2442 = vmatpush1.bf16.msra.mxu0 %v5149_v16  ;;  %v527_v16 = vld [vmem:[%s6137_s11 + $0x388] sm:$0xff] }
  0xfd   : > { %2443 = vmatprep.subr.bf16.mxu0 %v9035_v46  ;;  %v599_v21 = vpack.c.bf16 %v529_v17, %v527_v16  ;;  %v5174_v16 = vld [vmem:[#allocation13 + $0x70] sm:$0xff]   ;;  %v567_v17 = vpack.c.bf16 %v465_v8, %v463_v7  ;;  %v9034_v8 = vlaneseq }
  0xfe   : > { %1952 = vmatpush1.bf16.msra.mxu1 %v5160_v63  ;;  %v456_v63 = vld [vmem:[%s6137_s11 + $0x150] sm:$0xff] }
  0xff   : > { %873 = vmatmul.mubr.bf16.gmra.mrb[12].mxu0 %v548_v23  ;;  %1083 = vmatmul.mubr.bf16.gmra.mrb[12].mxu1 %v590_v37  ;;  %v447_v23 = vld [vmem:[%s6137_s11 + $0x108] sm:$0xff]  ;;  %v601_v37 = vpack.c.bf16 %v533_v33, %v531_v32  ;;  %v562_v3 = vpack.c.bf16 %v456_v63, %v454_v62  ;;  %v470_v32 = vld [vmem:[%s6137_s11 + $0x1c0] sm:$0xff]  ;;  %v472_v33 = vld [vmem:[%s6137_s11 + $0x1d0] sm:$0xff] }
 0x100   : > { %882 = vmatprep.mubr.bf16.mxu0 %v551_v24  ;;  %2444 = vmatpush1.bf16.msra.mxu0 %v5150_v25  ;;  %v449_v24 = vld [vmem:[%s6137_s11 + $0x118] sm:$0xff]  ;;  %v570_v36 = vpack.c.bf16 %v472_v33, %v470_v32  ;;  %v490_v63 = vld [vmem:[%s6137_s11 + $0x260] sm:$0xff] }
 0x101   : > { %2445 = vmatprep.subr.bf16.mxu0 %v9035_v46  ;;  %1092 = vmatprep.mubr.bf16.mxu1 %v593_v49  ;;  %v5164_v25 = vld [vmem:[#allocation13 + $0x38] sm:$0xff]   ;;  %v559_v27 = vpack.c.bf16 %v449_v24, %v447_v23  ;;  %v600_v49 = vpack.c.bf16 %v532_v44, %v530_v43  ;;  %v478_v44 = vld [vmem:[%s6137_s11 + $0x200] sm:$0xff] }
 0x102   : > { %1953 = vmatprep.subr.bf16.mxu1 %v9035_v46  ;;  %v469_v23 = vld [vmem:[%s6137_s11 + $0x1b8] sm:$0xff] }
 0x103   : > { %1954 = vmatpush1.bf16.msra.mxu1 %v5161_v9  ;;  %v539_v9 = vld [vmem:[%s6137_s11 + $0x3e8] sm:$0xff] }
 0x104   : > { %2446 = vmatpush1.bf16.msra.mxu0 %v5151_v31  ;;  %1955 = vmatprep.subr.bf16.mxu1 %v9035_v46  ;;  %v5165_v31 = vld [vmem:[#allocation13 + $0x40] sm:$0xff]  }
 0x105   : > { %2447 = vmatprep.subr.bf16.mxu0 %v9035_v46 }
 0x107   : > { %883 = vmatmul.mubr.bf16.gmra.mrb[16].mxu0 %v550_v38  ;;  %1093 = vmatmul.mubr.bf16.gmra.mrb[16].mxu1 %v592_v53  ;;  %v451_v38 = vld [vmem:[%s6137_s11 + $0x128] sm:$0xff] }
 0x108   : > { %892 = vmatprep.mubr.bf16.mxu0 %v553_v39  ;;  %2448 = vmatpush1.bf16.msra.mxu0 %v5152_v40  ;;  %v453_v39 = vld [vmem:[%s6137_s11 + $0x138] sm:$0xff]  ;;  %v5167_v40 = vld [vmem:[#allocation13 + $0x48] sm:$0xff]  }
 0x109   : > { %2449 = vmatprep.subr.bf16.mxu0 %v9035_v46  ;;  %1102 = vmatprep.mubr.bf16.mxu1 %v595_v58  ;;  %v561_v42 = vpack.c.bf16 %v453_v39, %v451_v38  ;;  %v455_v53 = vld [vmem:[%s6137_s11 + $0x148] sm:$0xff]  ;;  %v534_v58 = vld [vmem:[%s6137_s11 + $0x3c0] sm:$0xff]  ;;  %v476_v39 = vld [vmem:[%s6137_s11 + $0x1f0] sm:$0xff] }
 0x10a   : > { %1956 = vmatpush1.bf16.msra.mxu1 %v5163_v15  ;;  %v474_v38 = vld [vmem:[%s6137_s11 + $0x1e0] sm:$0xff] }
 0x10b   : > { %1957 = vmatprep.subr.bf16.mxu1 %v9035_v46 }
 0x10c   : > { %2450 = vmatpush1.bf16.msra.mxu0 %v5154_v48  ;;  %v537_v48 = vld [vmem:[%s6137_s11 + $0x3d8] sm:$0xff] }
 0x10d   : > { %2451 = vmatprep.subr.bf16.mxu0 %v9035_v46  ;;  %v603_v52 = vpack.c.bf16 %v537_v48, %v535_v47  ;;  %v483_v47 = vld [vmem:[%s6137_s11 + $0x228] sm:$0xff]  ;;  %v485_v48 = vld [vmem:[%s6137_s11 + $0x238] sm:$0xff] }
 0x10e   : > { %1958 = vmatpush1.bf16.msra.mxu1 %v5164_v25  ;;  %v577_v50 = vpack.c.bf16 %v485_v48, %v483_v47 }
 0x10f   : > { %893 = vmatmul.mubr.bf16.gmra.mrb[20].mxu0 %v552_v57  ;;  %1103 = vmatmul.mubr.bf16.gmra.mrb[20].mxu1 %v594_v2  ;;  %v563_v57 = vpack.c.bf16 %v457_v54, %v455_v53  ;;  %v5172_v2 = vld [vmem:[#allocation13 + $0x68] sm:$0xff]   ;;  %v489_v54 = vld [vmem:[%s6137_s11 + $0x258] sm:$0xff] }
 0x110   : > { %902 = vmatprep.mubr.bf16.mxu0 %v555_v59  ;;  %2452 = vmatpush1.bf16.msra.mxu0 %v5156_v60  ;;  %v536_v59 = vld [vmem:[%s6137_s11 + $0x3d0] sm:$0xff]  ;;  %v5171_v60 = vld [vmem:[#allocation13 + $0x60] sm:$0xff]   ;;  %v487_v53 = vld [vmem:[%s6137_s11 + $0x248] sm:$0xff] }
 0x111   : > { %2453 = vmatprep.subr.bf16.mxu0 %v9035_v46  ;;  %1112 = vmatprep.mubr.bf16.mxu1 %v597_v6  ;;  %v602_v61 = vpack.c.bf16 %v536_v59, %v534_v58  ;;  %v460_v6 = vld [vmem:[%s6137_s11 + $0x170] sm:$0xff]  ;;  %v491_v59 = vld [vmem:[%s6137_s11 + $0x268] sm:$0xff] }
 0x112   : > { %1959 = vmatprep.subr.bf16.mxu1 %v9035_v46  ;;  %v488_v58 = vld [vmem:[%s6137_s11 + $0x250] sm:$0xff] }
 0x113   : > { %1960 = vmatpush1.bf16.msra.mxu1 %v5165_v31  ;;  %v571_v31 = vpack.c.bf16 %v473_v29, %v471_v28 }
 0x114   : > { %2454 = vmatpush1.bf16.msra.mxu0 %v5159_v5  ;;  %1961 = vmatprep.subr.bf16.mxu1 %v9035_v46  ;;  %v458_v5 = vld [vmem:[%s6137_s11 + $0x160] sm:$0xff] }
 0x115   : > { %2455 = vmatprep.subr.bf16.mxu0 %v9035_v46  ;;  %v564_v14 = vpack.c.bf16 %v460_v6, %v458_v5  ;;  %v494_v5 = vld [vmem:[%s6137_s11 + $0x280] sm:$0xff]  ;;  %v496_v6 = vld [vmem:[%s6137_s11 + $0x290] sm:$0xff] }
 0x116   : > { %v582_v7 = vpack.c.bf16 %v496_v6, %v494_v5 }
 0x117   : > { %903 = vmatmul.mubr.bf16.gmra.mrb[24].mxu0 %v554_v10  ;;  %1113 = vmatmul.mubr.bf16.gmra.mrb[24].mxu1 %v596_v18  ;;  %v541_v10 = vld [vmem:[%s6137_s11 + $0x3f8] sm:$0xff] }
 0x118   : > { %912 = vmatprep.mubr.bf16.mxu0 %v557_v11  ;;  %2456 = vmatpush1.bf16.msra.mxu0 %v5162_v12  ;;  %v605_v11 = vpack.c.bf16 %v541_v10, %v539_v9  ;;  %v538_v12 = vld [vmem:[%s6137_s11 + $0x3e0] sm:$0xff]  ;;  %v5173_v18 = vld [vmem:[#allocation14 + $0x78] sm:$0xff]   ;;  %v6314_v9 = vshrl.u32 %v9034_v8, 7 }
 0x119   : > { %2457 = vmatprep.subr.bf16.mxu0 %v9035_v46  ;;  %1122 = vmatprep.mubr.bf16.mxu1 %v599_v21  ;;  %v604_v15 = vpack.c.bf16 %v540_v13, %v538_v12  ;;  %v464_v21 = vld [vmem:[%s6137_s11 + $0x190] sm:$0xff] }
 0x11a   : > { %1962 = vmatpush1.bf16.msra.mxu1 %v5167_v40  ;;  %v566_v24 = vpack.c.bf16 %v464_v21, %v462_v20  ;;  %v479_v40 = vld [vmem:[%s6137_s11 + $0x208] sm:$0xff]  ;;  %9247 = vst [vmem:[#allocation23_spill] sm:$0xff] %v6314_v9  ;;  %v6317_v10 = vsub.s32 0, %v6314_v9  ;;  %v646_v12 = vsub.s32 1, %v6314_v9  ;;  %v1294_v13 = vadd.s32 8, %v6314_v9 }
 0x11b   : > { %1963 = vmatprep.subr.bf16.mxu1 %v9035_v46  ;;  %v1296_v29 = vadd.s32 24, %v6314_v9  ;;  %v1297_v48 = vadd.s32 32, %v6314_v9  ;;  %v1300_v5 = vadd.s32 56, %v6314_v9 }
 0x11c   : > { %2458 = vmatpush1.bf16.msra.mxu0 %v5166_v22  ;;  %v467_v22 = vld [vmem:[%s6137_s11 + $0x1a8] sm:$0xff]  ;;  %9248 = vst [vmem:[#allocation24_spill] sm:$0xff] %v6317_v10 }
 0x11d   : > { %2459 = vmatprep.subr.bf16.mxu0 %v9035_v46  ;;  %v569_v25 = vpack.c.bf16 %v469_v23, %v467_v22  ;;  %v6340_v22 = vstv %s1422_s25 }
 0x11e   : > { %1964 = vmatpush1.bf16.msra.mxu1 %v5168_v45  ;;  %v480_v45 = vld [vmem:[%s6137_s11 + $0x210] sm:$0xff] }
 0x11f   : > { %913 = vmatmul.mubr.bf16.gmra.mrb[28].mxu0 %v556_v26  ;;  %1123 = vmatmul.mubr.bf16.gmra.mrb[28].mxu1 %v598_v34  ;;  %v466_v26 = vld [vmem:[%s6137_s11 + $0x1a0] sm:$0xff]  ;;  %v475_v34 = vld [vmem:[%s6137_s11 + $0x1e8] sm:$0xff] }
 0x120   : > { %922 = vmatprep.mubr.bf16.mxu0 %v559_v27  ;;  %2460 = vmatpush1.bf16.msra.mxu0 %v5169_v30  ;;  %v468_v27 = vld [vmem:[%s6137_s11 + $0x1b0] sm:$0xff] }
 0x121   : > { %2461 = vmatprep.subr.bf16.mxu0 %v9035_v46  ;;  %1132 = vmatprep.mubr.bf16.mxu1 %v601_v37  ;;  %v568_v30 = vpack.c.bf16 %v468_v27, %v466_v26  ;;  %v573_v37 = vpack.c.bf16 %v477_v35, %v475_v34  ;;  %v1295_v27 = vadd.s32 16, %v6314_v9 }
 0x122   : > { %1965 = vmatprep.subr.bf16.mxu1 %v9035_v46 }
 0x123   : > { %1966 = vmatpush1.bf16.msra.mxu1 %v5170_v55 }
 0x124   : > { %1967 = vmatprep.subr.bf16.mxu1 %v9035_v46  ;;  %2462 = vmatpush1.bf16.msra.mxu0 %v5173_v18 }
 0x127   : > { %923 = vmatmul.mubr.bf16.gmra.mrb[32].mxu0 %v558_v41  ;;  %1133 = vmatmul.mubr.bf16.gmra.mrb[32].mxu1 %v600_v49  ;;  %v481_v41 = vld [vmem:[%s6137_s11 + $0x218] sm:$0xff]  ;;  %v574_v49 = vpack.c.bf16 %v480_v45, %v478_v44 }
 0x128   : > { %932 = vmatprep.mubr.bf16.mxu0 %v561_v42  ;;  %1142 = vmatprep.mubr.bf16.mxu1 %v603_v52  ;;  %v572_v42 = vpack.c.bf16 %v476_v39, %v474_v38  ;;  %v575_v43 = vpack.c.bf16 %v481_v41, %v479_v40  ;;  %v484_v52 = vld [vmem:[%s6137_s11 + $0x230] sm:$0xff] }
 0x129   : > { %1968 = vmatpush1.bf16.msra.mxu1 %v5171_v60  ;;  %v576_v55 = vpack.c.bf16 %v484_v52, %v482_v51  ;;  %v493_v60 = vld [vmem:[%s6137_s11 + $0x278] sm:$0xff] }
 0x12a   : > { %1969 = vmatprep.subr.bf16.mxu1 %v9035_v46  ;;  %v581_v62 = vpack.c.bf16 %v493_v60, %v491_v59 }
 0x12d   : > { %1970 = vmatpush1.bf16.msra.mxu1 %v5172_v2  ;;  %v497_v2 = vld [vmem:[%s6137_s11 + $0x298] sm:$0xff] }
 0x12e   : > { %1971 = vmatprep.subr.bf16.mxu1 %v9035_v46 }
 0x12f   : > { %933 = vmatmul.mubr.bf16.gmra.mrb[36].mxu0 %v560_v56  ;;  %1143 = vmatmul.mubr.bf16.gmra.mrb[36].mxu1 %v602_v61  ;;  %v579_v56 = vpack.c.bf16 %v489_v54, %v487_v53 }
 0x130   : > { %942 = vmatprep.mubr.bf16.mxu0 %v563_v57  ;;  %1152 = vmatprep.mubr.bf16.mxu1 %v605_v11  ;;  %v486_v57 = vld [vmem:[%s6137_s11 + $0x240] sm:$0xff]  ;;  %v638_v11 = vld [vmem:[%s9016_s3] sm:$0x3] }
 0x131   : > { %1972 = vmatpush1.bf16.msra.mxu1 %v5174_v16  ;;  %v578_v61 = vpack.c.bf16 %v488_v58, %v486_v57  ;;  %v6330_v16 = vrot.slane %v638_v11, %v646_v12 }
 0x132   : > { %1973 = vmatprep.subr.bf16.mxu1 %v9035_v46 }
 0x135   : > { %1974 = vmatpush1.bf16.msra.mxu1 %v5175_v19 }
 0x137   : > { %943 = vmatmul.mubr.bf16.gmra.mrb[40].mxu0 %v562_v3  ;;  %1153 = vmatmul.mubr.bf16.gmra.mrb[40].mxu1 %v604_v15  ;;  %v580_v3 = vpack.c.bf16 %v492_v0, %v490_v63  ;;  %v6328_v15 = vstv %s4286_s21  ;;  %v1299_v0 = vadd.s32 48, %v6314_v9 }
 0x138   : > { %952 = vmatprep.mubr.bf16.mxu0 %v565_v4  ;;  %v583_v4 = vpack.c.bf16 %v497_v2, %v495_v1  ;;  %v6334_v18 = vadd.s32 %v6328_v15, %v6314_v9  ;;  %v6337_v19 = vadd.s32 %v6328_v15, %v1294_v13  ;;  %v6365_v39 = vadd.s32 %v6328_v15, %v1296_v29 }
 0x139   : > { %v6400_v58 = vadd.s32 %v6328_v15, %v1297_v48 }
 0x13a   : > { %vm9159_vm2 = vcmp.lt.s32.totalorder %v6334_v18, %v6340_v22  ;;  %vm9148_vm3 = vcmp.lt.s32.totalorder %v6337_v19, %v6340_v22  ;;  %vm9097_vm6 = vcmp.lt.s32.totalorder %v6365_v39, %v6340_v22 }
 0x13b   : > { %vm6357_vm4 = vmpackc.low %vm9148_vm3, %vm9159_vm2  ;;  %vm9115_vm8 = vcmp.lt.s32.totalorder %v6400_v58, %v6340_v22 }
 0x13f   : > { %953 = vmatmul.mubr.bf16.gmra.mrb[44].mxu0 %v564_v14  ;;  %v6326_v14 = vrot.slane %v638_v11, %v6317_v10 }
 0x140   : > { %962 = vmatprep.mubr.bf16.mxu0 %v567_v17 }
 0x147   : > { %963 = vmatmul.mubr.bf16.gmra.mrb[48].mxu0 %v566_v24 }
 0x148   : > { %972 = vmatprep.mubr.bf16.mxu0 %v569_v25 }
 0x14f   : > { %973 = vmatmul.mubr.bf16.gmra.mrb[52].mxu0 %v568_v30 }
 0x150   : > { %982 = vmatprep.mubr.bf16.mxu0 %v571_v31 }
 0x157   : > { %983 = vmatmul.mubr.bf16.gmra.mrb[56].mxu0 %v570_v36  ;;  %v6362_v36 = vadd.s32 %v6328_v15, %v1295_v27 }
 0x158   : > { %992 = vmatprep.mubr.bf16.mxu0 %v573_v37 }
 0x159   : > { %vm9129_vm5 = vcmp.lt.s32.totalorder %v6362_v36, %v6340_v22 }
 0x15a   : > { %vm6395_vm7 = vmpackc.low %vm9097_vm6, %vm9129_vm5 }
 0x15f   : > { %993 = vmatmul.mubr.bf16.gmra.mrb[60].mxu0 %v572_v42 }
 0x160   : > { %1002 = vmatprep.mubr.bf16.mxu0 %v575_v43 }
 0x167   : > { %1003 = vmatmul.mubr.bf16.gmra.mrb[64].mxu0 %v574_v49  ;;  %v1298_v49 = vadd.s32 40, %v6314_v9 }
 0x168   : > { %1012 = vmatprep.mubr.bf16.mxu0 %v577_v50 }
 0x169   : > { %v6403_v59 = vadd.s32 %v6328_v15, %v1298_v49  ;;  %v1302_v49 = vadd.s32 72, %v6314_v9 }
 0x16b   : > { %vm9122_vm9 = vcmp.lt.s32.totalorder %v6403_v59, %v6340_v22 }
 0x16c   : > { %vm6436_vm10 = vmpackc.low %vm9122_vm9, %vm9115_vm8 }
 0x16f   : > { %1013 = vmatmul.mubr.bf16.gmra.mrb[68].mxu0 %v576_v55 }
 0x170   : > { %1022 = vmatprep.mubr.bf16.mxu0 %v579_v56 }
 0x177   : > { %1023 = vmatmul.mubr.bf16.gmra.mrb[72].mxu0 %v578_v61 }
 0x178   : > { %1032 = vmatprep.mubr.bf16.mxu0 %v581_v62 }
 0x17f   : > { %1033 = vmatmul.mubr.bf16.gmra.mrb[76].mxu0 %v580_v3 }
 0x180   : > { %1042 = vmatprep.mubr.bf16.mxu0 %v583_v4 }
 0x187   : > { %1043 = vmatmul.mubr.bf16.gmra.mrb[80].mxu0 %v582_v7 }
 0x1ba   : > { %v844_v17 = vpop.f32.mrb[0].mxu0  ;;  %v1054_v3 = vpop.f32.mrb[0].mxu1 }
 0x1bb   : > { %v845_v20 = vadd.f32 %v844_v17, %v6326_v14  ;;  %v846_v21 = vpop.f32.mrb[1].mxu0  ;;  %v1056_v6 = vpop.f32.mrb[1].mxu1 }
 0x1bc   : > { %v847_v23 = vadd.f32 %v846_v21, %v6330_v16  ;;  %v848_v24 = vpop.f32.mrb[2].mxu0  ;;  %v1058_v12 = vpop.f32.mrb[2].mxu1 }
 0x1bd   : > { %v849_v25 = vadd.f32 %v848_v24, %v6326_v14  ;;  %v850_v26 = vpop.f32.mrb[3].mxu0  ;;  %v1163_v30 = vmax.f32 %v845_v20, 0.0  ;;  %v6428_v20 = vadd.s32 %v6328_v15, %v1299_v0  ;;  %v1060_v21 = vpop.f32.mrb[3].mxu1  ;;  %v1059_v27 = vadd.f32 %v1058_v12, %v6326_v14 }
 0x1be   : > { %v851_v28 = vadd.f32 %v850_v26, %v6330_v16  ;;  %v1164_v32 = vmax.f32 %v847_v23, 0.0  ;;  %v1057_v26 = vadd.f32 %v1056_v6, %v6330_v16  ;;  %v1304_v24 = vadd.s32 88, %v6314_v9 }
 0x1bf   : > { %v1165_v31 = vmax.f32 %v849_v25, 0.0  ;;  %v1055_v25 = vadd.f32 %v1054_v3, %v6326_v14  ;;  %vm9096_vm11 = vcmp.lt.s32.totalorder %v6428_v20, %v6340_v22 }
 0x1c0   : > { %v1166_v33 = vmax.f32 %v851_v28, 0.0  ;;  %v1248_v35 = vmax.f32 %v1057_v26, 0.0 }
 0x1c1   : > { %v4308_v34 = vpack.c.bf16 %v1165_v31, %v1163_v30  ;;  %v6444_v30 = vadd.s32 %v6328_v15, %v1300_v5  ;;  %v1061_v31 = vadd.f32 %v1060_v21, %v6330_v16 }
 0x1c2   : > { %v4305_v37 = vpack.c.bf16 %v1166_v33, %v1164_v32  ;;  %v854_v38 = vpop.f32.mrb[4].mxu0 }
 0x1c3   : > { %v855_v40 = vadd.f32 %v854_v38, %v6326_v14  ;;  %v856_v41 = vpop.f32.mrb[5].mxu0  ;;  %vm9108_vm12 = vcmp.lt.s32.totalorder %v6444_v30, %v6340_v22 }
 0x1c4   : > { %v857_v42 = vadd.f32 %v856_v41, %v6330_v16  ;;  %v858_v43 = vpop.f32.mrb[6].mxu0  ;;  %4306 = vmatprep.mubr.msk.bf16.mxu1 %vm6357_vm4, %v4305_v37  ;;  %4515 = vmatprep.mubr.msk.bf16.mxu0 %vm6357_vm4, %v4305_v37  ;;  %v1301_v41 = vadd.s32 64, %v6314_v9  ;;  %vm6482_vm13 = vmpackc.low %vm9108_vm12, %vm9096_vm11 }
 0x1c5   : > { %v859_v44 = vadd.f32 %v858_v43, %v6326_v14  ;;  %4772 = vmatprep.subr.msk.bf16.mxu1 %vm6357_vm4, %v4305_v37  ;;  %v860_v45 = vpop.f32.mrb[7].mxu0  ;;  %4309 = vmatmul.mubr.msk.bf16.vlgmr.msra.gmra.mrb[44].mxu1 %vm6357_vm4, %v4308_v34  ;;  %v1167_v50 = vmax.f32 %v855_v40, 0.0  ;;  %v1249_v37 = vmax.f32 %v1059_v27, 0.0 }
 0x1c6   : > { %v861_v47 = vadd.f32 %v860_v45, %v6330_v16  ;;  %4518 = vmatmul.mubr.msk.bf16.vlgmr.msra.gmra.mrb[84].mxu0 %vm6357_vm4, %v4308_v34  ;;  %4775 = vmatpush1.bf16.msk.msra.mxu1 %vm6357_vm4, %v4308_v34  ;;  %v1168_v52 = vmax.f32 %v857_v42, 0.0  ;;  %v1247_v34 = vmax.f32 %v1055_v25, 0.0  ;;  %v1250_v42 = vmax.f32 %v1061_v31, 0.0 }
 0x1c7   : > { %v1169_v51 = vmax.f32 %v859_v44, 0.0 }
 0x1c8   : > { %v1170_v53 = vmax.f32 %v861_v47, 0.0  ;;  %v6461_v45 = vpack.c.bf16 %v1249_v37, %v1247_v34  ;;  %v1064_v47 = vpop.f32.mrb[4].mxu1 }
 0x1c9   : > { %v4314_v54 = vpack.c.bf16 %v1169_v51, %v1167_v50  ;;  %v6471_v50 = vpack.c.bf16 %v1250_v42, %v1248_v35  ;;  %v1066_v51 = vpop.f32.mrb[5].mxu1  ;;  %v6523_v42 = vadd.s32 %v6328_v15, %v1304_v24 }
 0x1ca   : > { %v4311_v56 = vpack.c.bf16 %v1170_v53, %v1168_v52  ;;  %v864_v57 = vpop.f32.mrb[8].mxu0  ;;  %9255 = vst [vmem:[#allocation25_spill] sm:$0xff] %v6461_v45  ;;  %v1067_v0 = vadd.f32 %v1066_v51, %v6330_v16 }
 0x1cb   : > { %v865_v60 = vadd.f32 %v864_v57, %v6326_v14  ;;  %v866_v61 = vpop.f32.mrb[9].mxu0  ;;  %9256 = vst [vmem:[#allocation26_spill] sm:$0xff] %v6471_v50  ;;  %v6474_v57 = vadd.s32 %v6328_v15, %v1301_v41  ;;  %vm9042_vm4 = vcmp.lt.s32.totalorder %v6523_v42, %v6340_v22 }
 0x1cc   : > { %v867_v62 = vadd.f32 %v866_v61, %v6330_v16  ;;  %v868_v63 = vpop.f32.mrb[10].mxu0  ;;  %4312 = vmatprep.mubr.msk.bf16.mxu1 %vm6395_vm7, %v4311_v56  ;;  %4521 = vmatprep.mubr.msk.bf16.mxu0 %vm6395_vm7, %v4311_v56  ;;  %v1252_v12 = vmax.f32 %v1067_v0, 0.0 }
 0x1cd   : > { %v869_v1 = vadd.f32 %v868_v63, %v6326_v14  ;;  %4778 = vmatprep.subr.msk.bf16.mxu1 %vm6395_vm7, %v4311_v56  ;;  %v870_v2 = vpop.f32.mrb[11].mxu0  ;;  %4315 = vmatmul.mubr.msk.bf16.gmra.mrb[48].mxu1 %vm6395_vm7, %v4314_v54  ;;  %v1171_v7 = vmax.f32 %v865_v60, 0.0  ;;  %v1065_v63 = vadd.f32 %v1064_v47, %v6326_v14  ;;  %vm9095_vm14 = vcmp.lt.s32.totalorder %v6474_v57, %v6340_v22 }
 0x1ce   : > { %v871_v4 = vadd.f32 %v870_v2, %v6330_v16  ;;  %4524 = vmatmul.mubr.msk.bf16.gmra.mrb[88].mxu0 %vm6395_vm7, %v4314_v54  ;;  %4781 = vmatpush1.bf16.msk.msra.mxu1 %vm6395_vm7, %v4314_v54  ;;  %v1172_v13 = vmax.f32 %v867_v62, 0.0  ;;  %v1068_v54 = vpop.f32.mrb[6].mxu1 }
 0x1cf   : > { %v1173_v11 = vmax.f32 %v869_v1, 0.0  ;;  %v1070_v60 = vpop.f32.mrb[7].mxu1  ;;  %v1069_v1 = vadd.f32 %v1068_v54, %v6326_v14 }
 0x1d0   : > { %v1174_v17 = vmax.f32 %v871_v4, 0.0  ;;  %v6490_v4 = vadd.s32 %v6328_v15, %v1302_v49  ;;  %v1071_v5 = vadd.f32 %v1070_v60, %v6330_v16 }
 0x1d1   : > { %v4320_v23 = vpack.c.bf16 %v1173_v11, %v1171_v7  ;;  %v1251_v11 = vmax.f32 %v1065_v63, 0.0 }
 0x1d2   : > { %v4317_v28 = vpack.c.bf16 %v1174_v17, %v1172_v13  ;;  %v874_v29 = vpop.f32.mrb[12].mxu0  ;;  %v1253_v13 = vmax.f32 %v1069_v1, 0.0  ;;  %v1254_v25 = vmax.f32 %v1071_v5, 0.0  ;;  %vm9094_vm15 = vcmp.lt.s32.totalorder %v6490_v4, %v6340_v22 }
 0x1d3   : > { %v875_v32 = vadd.f32 %v874_v29, %v6326_v14  ;;  %v876_v33 = vpop.f32.mrb[13].mxu0  ;;  %v1074_v29 = vpop.f32.mrb[8].mxu1  ;;  %vm6531_vm0 = vmpackc.low %vm9094_vm15, %vm9095_vm14 }
 0x1d4   : > { %v877_v38 = vadd.f32 %v876_v33, %v6330_v16  ;;  %v878_v40 = vpop.f32.mrb[14].mxu0  ;;  %4318 = vmatprep.mubr.msk.bf16.mxu1 %vm6436_vm10, %v4317_v28  ;;  %4527 = vmatprep.mubr.msk.bf16.mxu0 %vm6436_vm10, %v4317_v28  ;;  %v1076_v33 = vpop.f32.mrb[9].mxu1 }
 0x1d5   : > { %v879_v43 = vadd.f32 %v878_v40, %v6326_v14  ;;  %4784 = vmatprep.subr.msk.bf16.mxu1 %vm6436_vm10, %v4317_v28  ;;  %v880_v44 = vpop.f32.mrb[15].mxu0  ;;  %4321 = vmatmul.mubr.msk.bf16.gmra.mrb[52].mxu1 %vm6436_vm10, %v4320_v23  ;;  %v1175_v52 = vmax.f32 %v875_v32, 0.0  ;;  %v6508_v28 = vpack.c.bf16 %v1253_v13, %v1251_v11  ;;  %v6517_v32 = vpack.c.bf16 %v1254_v25, %v1252_v12  ;;  %v1078_v37 = vpop.f32.mrb[10].mxu1 }
 0x1d6   : > { %v881_v48 = vadd.f32 %v880_v44, %v6330_v16  ;;  %4530 = vmatmul.mubr.msk.bf16.gmra.mrb[92].mxu0 %vm6436_vm10, %v4320_v23  ;;  %4787 = vmatpush1.bf16.msk.msra.mxu1 %vm6436_vm10, %v4320_v23  ;;  %v1176_v55 = vmax.f32 %v877_v38, 0.0  ;;  %v1303_v23 = vadd.s32 80, %v6314_v9  ;;  %v1077_v49 = vadd.f32 %v1076_v33, %v6330_v16 }
 0x1d7   : > { %v1177_v53 = vmax.f32 %v879_v43, 0.0  ;;  %9259 = vst [vmem:[#allocation27_spill] sm:$0xff] %v6508_v28  ;;  %9260 = vst [vmem:[#allocation28_spill] sm:$0xff] %v6517_v32  ;;  %v1080_v43 = vpop.f32.mrb[11].mxu1  ;;  %v1079_v51 = vadd.f32 %v1078_v37, %v6326_v14  ;;  %v1305_v11 = vadd.s32 96, %v6314_v9 }
 0x1d8   : > { %v1178_v56 = vmax.f32 %v881_v48, 0.0  ;;  %v6520_v41 = vadd.s32 %v6328_v15, %v1303_v23  ;;  %v1075_v48 = vadd.f32 %v1074_v29, %v6326_v14  ;;  %v1081_v54 = vadd.f32 %v1080_v43, %v6330_v16 }
 0x1d9   : > { %v4326_v61 = vpack.c.bf16 %v1177_v53, %v1175_v52  ;;  %v1256_v62 = vmax.f32 %v1077_v49, 0.0  ;;  %v1257_v63 = vmax.f32 %v1079_v51, 0.0  ;;  %v6580_v51 = vadd.s32 %v6328_v15, %v1305_v11 }
 0x1da   : > { %v4323_v2 = vpack.c.bf16 %v1178_v56, %v1176_v55  ;;  %v884_v3 = vpop.f32.mrb[16].mxu0  ;;  %v1084_v55 = vpop.f32.mrb[12].mxu1  ;;  %vm9086_vm1 = vcmp.lt.s32.totalorder %v6520_v41, %v6340_v22 }
 0x1db   : > { %v885_v6 = vadd.f32 %v884_v3, %v6326_v14  ;;  %v886_v7 = vpop.f32.mrb[17].mxu0  ;;  %v1085_v3 = vadd.f32 %v1084_v55, %v6326_v14  ;;  %v1086_v5 = vpop.f32.mrb[13].mxu1  ;;  %vm6575_vm7 = vmpackc.low %vm9042_vm4, %vm9086_vm1  ;;  %vm9041_vm10 = vcmp.lt.s32.totalorder %v6580_v51, %v6340_v22 }
 0x1dc   : > { %v887_v17 = vadd.f32 %v886_v7, %v6330_v16  ;;  %v888_v21 = vpop.f32.mrb[18].mxu0  ;;  %4324 = vmatprep.mubr.msk.bf16.mxu1 %vm6482_vm13, %v4323_v2  ;;  %4533 = vmatprep.mubr.msk.bf16.mxu0 %vm6482_vm13, %v4323_v2  ;;  %v1088_v24 = vpop.f32.mrb[14].mxu1 }
 0x1dd   : > { %v889_v26 = vadd.f32 %v888_v21, %v6326_v14  ;;  %4790 = vmatprep.subr.msk.bf16.mxu1 %vm6482_vm13, %v4323_v2  ;;  %v890_v27 = vpop.f32.mrb[19].mxu0  ;;  %4327 = vmatmul.mubr.msk.bf16.gmra.mrb[56].mxu1 %vm6482_vm13, %v4326_v61  ;;  %v1179_v34 = vmax.f32 %v885_v6, 0.0  ;;  %v1258_v2 = vmax.f32 %v1081_v54, 0.0  ;;  %v1306_v21 = vadd.s32 104, %v6314_v9 }
 0x1de   : > { %v891_v31 = vadd.f32 %v890_v27, %v6330_v16  ;;  %4536 = vmatmul.mubr.msk.bf16.gmra.mrb[96].mxu0 %vm6482_vm13, %v4326_v61  ;;  %4793 = vmatpush1.bf16.msk.msra.mxu1 %vm6482_vm13, %v4326_v61  ;;  %v1180_v38 = vmax.f32 %v887_v17, 0.0  ;;  %v1255_v61 = vmax.f32 %v1075_v48, 0.0  ;;  %v1087_v27 = vadd.f32 %v1086_v5, %v6330_v16 }
 0x1df   : > { %v1181_v35 = vmax.f32 %v889_v26, 0.0  ;;  %v6564_v23 = vpack.c.bf16 %v1258_v2, %v1256_v62  ;;  %v1259_v26 = vmax.f32 %v1085_v3, 0.0  ;;  %v1089_v29 = vadd.f32 %v1088_v24, %v6326_v14 }
 0x1e0   : > { %v1182_v40 = vmax.f32 %v891_v31, 0.0  ;;  %v6556_v12 = vpack.c.bf16 %v1257_v63, %v1255_v61  ;;  %v1090_v31 = vpop.f32.mrb[15].mxu1  ;;  %v1260_v43 = vmax.f32 %v1087_v27, 0.0  ;;  %v1307_v3 = vadd.s32 112, %v6314_v9 }
 0x1e1   : > { %v4332_v44 = vpack.c.bf16 %v1181_v35, %v1179_v34  ;;  %9264 = vst [vmem:[#allocation30_spill] sm:$0xff] %v6564_v23  ;;  %v1091_v35 = vadd.f32 %v1090_v31, %v6330_v16  ;;  %v1094_v37 = vpop.f32.mrb[16].mxu1 }
 0x1e2   : > { %v4329_v52 = vpack.c.bf16 %v1182_v40, %v1180_v38  ;;  %v894_v53 = vpop.f32.mrb[20].mxu0  ;;  %9263 = vst [vmem:[#allocation29_spill] sm:$0xff] %v6556_v12  ;;  %v1096_v47 = vpop.f32.mrb[17].mxu1 }
 0x1e3   : > { %v895_v56 = vadd.f32 %v894_v53, %v6326_v14  ;;  %v896_v60 = vpop.f32.mrb[21].mxu0  ;;  %v1262_v53 = vmax.f32 %v1091_v35, 0.0  ;;  %v6626_v35 = vadd.s32 %v6328_v15, %v1307_v3  ;;  %v1309_v3 = vadd.s32 128, %v6314_v9 }
 0x1e4   : > { %v897_v0 = vadd.f32 %v896_v60, %v6330_v16  ;;  %v898_v1 = vpop.f32.mrb[22].mxu0  ;;  %4330 = vmatprep.mubr.msk.bf16.mxu1 %vm6531_vm0, %v4329_v52  ;;  %4539 = vmatprep.mubr.msk.bf16.mxu0 %vm6531_vm0, %v4329_v52  ;;  %v1095_v60 = vadd.f32 %v1094_v37, %v6326_v14 }
 0x1e5   : > { %v899_v6 = vadd.f32 %v898_v1, %v6326_v14  ;;  %4796 = vmatprep.subr.msk.bf16.mxu1 %vm6531_vm0, %v4329_v52  ;;  %v900_v7 = vpop.f32.mrb[23].mxu0  ;;  %4333 = vmatmul.mubr.msk.bf16.gmra.mrb[60].mxu1 %vm6531_vm0, %v4332_v44  ;;  %v1183_v13 = vmax.f32 %v895_v56, 0.0  ;;  %v6583_v52 = vadd.s32 %v6328_v15, %v1306_v21  ;;  %v6594_v63 = vpack.c.bf16 %v1262_v53, %v1260_v43 }
 0x1e6   : > { %v901_v17 = vadd.f32 %v900_v7, %v6330_v16  ;;  %4542 = vmatmul.mubr.msk.bf16.gmra.mrb[100].mxu0 %vm6531_vm0, %v4332_v44  ;;  %4799 = vmatpush1.bf16.msk.msra.mxu1 %vm6531_vm0, %v4332_v44  ;;  %v1184_v33 = vmax.f32 %v897_v0, 0.0  ;;  %v1261_v44 = vmax.f32 %v1089_v29, 0.0  ;;  %v1097_v0 = vadd.f32 %v1096_v47, %v6330_v16  ;;  %v1098_v7 = vpop.f32.mrb[18].mxu1  ;;  %9272 = vst [vmem:[#allocation34_spill] sm:$0xff] %v6626_v35 }
 0x1e7   : > { %v1185_v25 = vmax.f32 %v899_v6, 0.0  ;;  %9267 = vst [vmem:[#allocation31_spill] sm:$0xff] %v6583_v52  ;;  %9269 = vst [vmem:[#allocation33_spill] sm:$0xff] %v6594_v63  ;;  %vm9029_vm13 = vcmp.lt.s32.totalorder %v6583_v52, %v6340_v22  ;;  %v1308_v6 = vadd.s32 120, %v6314_v9  ;;  %v1099_v21 = vadd.f32 %v1098_v7, %v6326_v14  ;;  %v1100_v24 = vpop.f32.mrb[19].mxu1 }
 0x1e8   : > { %v1186_v34 = vmax.f32 %v901_v17, 0.0  ;;  %v6586_v56 = vpack.c.bf16 %v1261_v44, %v1259_v26  ;;  %v1263_v17 = vmax.f32 %v1095_v60, 0.0  ;;  %v1264_v27 = vmax.f32 %v1097_v0, 0.0  ;;  %v1104_v31 = vpop.f32.mrb[20].mxu1  ;;  %vm6621_vm0 = vmpackc.low %vm9029_vm13, %vm9041_vm10 }
 0x1e9   : > { %v4338_v38 = vpack.c.bf16 %v1185_v25, %v1183_v13  ;;  %v1101_v29 = vadd.f32 %v1100_v24, %v6330_v16  ;;  %v1265_v37 = vmax.f32 %v1099_v21, 0.0  ;;  %v6629_v44 = vadd.s32 %v6328_v15, %v1308_v6 }
 0x1ea   : > { %v4335_v48 = vpack.c.bf16 %v1186_v34, %v1184_v33  ;;  %v904_v49 = vpop.f32.mrb[24].mxu0  ;;  %9268 = vst [vmem:[#allocation32_spill] sm:$0xff] %v6586_v56 }
 0x1eb   : > { %v905_v54 = vadd.f32 %v904_v49, %v6326_v14  ;;  %v906_v55 = vpop.f32.mrb[25].mxu0  ;;  %9273 = vst [vmem:[#allocation35_spill] sm:$0xff] %v6629_v44  ;;  %v1266_v47 = vmax.f32 %v1101_v29, 0.0  ;;  %v6632_v53 = vpack.c.bf16 %v1265_v37, %v1263_v17  ;;  %vm9030_vm13 = vcmp.lt.s32.totalorder %v6629_v44, %v6340_v22 }
 0x1ec   : > { %v907_v61 = vadd.f32 %v906_v55, %v6330_v16  ;;  %v908_v62 = vpop.f32.mrb[26].mxu0  ;;  %4336 = vmatprep.mubr.msk.bf16.mxu1 %vm6575_vm7, %v4335_v48  ;;  %4545 = vmatprep.mubr.msk.bf16.mxu0 %vm6575_vm7, %v4335_v48 }
 0x1ed   : > { %v909_v1 = vadd.f32 %v908_v62, %v6326_v14  ;;  %4802 = vmatprep.subr.msk.bf16.mxu1 %vm6575_vm7, %v4335_v48  ;;  %v910_v2 = vpop.f32.mrb[27].mxu0  ;;  %4339 = vmatmul.mubr.msk.bf16.gmra.mrb[64].mxu1 %vm6575_vm7, %v4338_v38  ;;  %v1187_v11 = vmax.f32 %v905_v54, 0.0  ;;  %9274 = vst [vmem:[#allocation36_spill] sm:$0xff] %v6632_v53  ;;  %v1105_v54 = vadd.f32 %v1104_v31, %v6326_v14 }
 0x1ee   : > { %v911_v5 = vadd.f32 %v910_v2, %v6330_v16  ;;  %4548 = vmatmul.mubr.msk.bf16.gmra.mrb[104].mxu0 %vm6575_vm7, %v4338_v38  ;;  %4805 = vmatpush1.bf16.msk.msra.mxu1 %vm6575_vm7, %v4338_v38  ;;  %v1188_v25 = vmax.f32 %v907_v61, 0.0  ;;  %v1106_v38 = vpop.f32.mrb[21].mxu1  ;;  %v6640_v61 = vpack.c.bf16 %v1266_v47, %v1264_v27  ;;  %vm9031_vm7 = vcmp.lt.s32.totalorder %v6626_v35, %v6340_v22 }
 0x1ef   : > { %v1189_v13 = vmax.f32 %v909_v1, 0.0  ;;  %v1107_v62 = vadd.f32 %v1106_v38, %v6330_v16  ;;  %v1108_v6 = vpop.f32.mrb[22].mxu1 }
 0x1f0   : > { %v1190_v26 = vmax.f32 %v911_v5, 0.0  ;;  %9275 = vst [vmem:[#allocation37_spill] sm:$0xff] %v6640_v61  ;;  %v1310_v5 = vadd.s32 136, %v6314_v9  ;;  %v1109_v17 = vadd.f32 %v1108_v6, %v6326_v14  ;;  %v1110_v21 = vpop.f32.mrb[23].mxu1  ;;  %v1311_v6 = vadd.s32 144, %v6314_v9 }
 0x1f1   : > { %v4344_v33 = vpack.c.bf16 %v1189_v13, %v1187_v11  ;;  %v1267_v13 = vmax.f32 %v1105_v54, 0.0  ;;  %v1111_v27 = vadd.f32 %v1110_v21, %v6330_v16  ;;  %v1114_v29 = vpop.f32.mrb[24].mxu1 }
 0x1f2   : > { %v4341_v40 = vpack.c.bf16 %v1190_v26, %v1188_v25  ;;  %v914_v43 = vpop.f32.mrb[28].mxu0  ;;  %v1268_v26 = vmax.f32 %v1107_v62, 0.0  ;;  %v1269_v34 = vmax.f32 %v1109_v17, 0.0  ;;  %v1116_v37 = vpop.f32.mrb[25].mxu1  ;;  %v6675_v47 = vadd.s32 %v6328_v15, %v1310_v5 }
 0x1f3   : > { %v915_v48 = vadd.f32 %v914_v43, %v6326_v14  ;;  %v916_v49 = vpop.f32.mrb[29].mxu0  ;;  %v6672_v43 = vadd.s32 %v6328_v15, %v1309_v3 }
 0x1f4   : > { %v917_v55 = vadd.f32 %v916_v49, %v6330_v16  ;;  %v918_v60 = vpop.f32.mrb[30].mxu0  ;;  %4342 = vmatprep.mubr.msk.bf16.mxu1 %vm6621_vm0, %v4341_v40  ;;  %4551 = vmatprep.mubr.msk.bf16.mxu0 %vm6621_vm0, %v4341_v40  ;;  %9279 = vst [vmem:[#allocation39_spill] sm:$0xff] %v6675_v47 }
 0x1f5   : > { %v919_v0 = vadd.f32 %v918_v60, %v6326_v14  ;;  %4808 = vmatprep.subr.msk.bf16.mxu1 %vm6621_vm0, %v4341_v40  ;;  %v920_v1 = vpop.f32.mrb[31].mxu0  ;;  %4345 = vmatmul.mubr.msk.bf16.gmra.mrb[68].mxu1 %vm6621_vm0, %v4344_v33  ;;  %v1191_v7 = vmax.f32 %v915_v48, 0.0  ;;  %9278 = vst [vmem:[#allocation38_spill] sm:$0xff] %v6672_v43  ;;  %v1270_v48 = vmax.f32 %v1111_v27, 0.0  ;;  %v1115_v60 = vadd.f32 %v1114_v29, %v6326_v14 }
 0x1f6   : > { %v921_v2 = vadd.f32 %v920_v1, %v6330_v16  ;;  %4554 = vmatmul.mubr.msk.bf16.gmra.mrb[108].mxu0 %vm6621_vm0, %v4344_v33  ;;  %4811 = vmatpush1.bf16.msk.msra.mxu1 %vm6621_vm0, %v4344_v33  ;;  %v1192_v24 = vmax.f32 %v917_v55, 0.0  ;;  %vm6667_vm0 = vmpackc.low %vm9030_vm13, %vm9031_vm7  ;;  %v6678_v55 = vpack.c.bf16 %v1269_v34, %v1267_v13  ;;  %vm9033_vm13 = vcmp.lt.s32.totalorder %v6672_v43, %v6340_v22  ;;  %v1118_v13 = vpop.f32.mrb[26].mxu1 }
 0x1f7   : > { %v1193_v11 = vmax.f32 %v919_v0, 0.0  ;;  %v6686_v1 = vpack.c.bf16 %v1270_v48, %v1268_v26  ;;  %vm9032_vm7 = vcmp.lt.s32.totalorder %v6675_v47, %v6340_v22  ;;  %v1120_v26 = vpop.f32.mrb[27].mxu1 }
 0x1f8   : > { %v1194_v25 = vmax.f32 %v921_v2, 0.0  ;;  %9280 = vst [vmem:[#allocation40_spill] sm:$0xff] %v6678_v55  ;;  %v1117_v2 = vadd.f32 %v1116_v37, %v6330_v16  ;;  %v1124_v33 = vpop.f32.mrb[28].mxu1 }
 0x1f9   : > { %v4350_v31 = vpack.c.bf16 %v1193_v11, %v1191_v7  ;;  %9281 = vst [vmem:[#allocation41_spill] sm:$0xff] %v6686_v1  ;;  %v1312_v11 = vadd.s32 152, %v6314_v9 }
 0x1fa   : > { %v4347_v38 = vpack.c.bf16 %v1194_v25, %v1192_v24  ;;  %v924_v40 = vpop.f32.mrb[32].mxu0  ;;  %v1271_v24 = vmax.f32 %v1115_v60, 0.0  ;;  %v1119_v25 = vadd.f32 %v1118_v13, %v6326_v14  ;;  %v1272_v34 = vmax.f32 %v1117_v2, 0.0 }
 0x1fb   : > { %v925_v49 = vadd.f32 %v924_v40, %v6326_v14  ;;  %v926_v54 = vpop.f32.mrb[33].mxu0  ;;  %v6718_v40 = vadd.s32 %v6328_v15, %v1311_v6 }
 0x1fc   : > { %v927_v62 = vadd.f32 %v926_v54, %v6330_v16  ;;  %v928_v0 = vpop.f32.mrb[34].mxu0  ;;  %4348 = vmatprep.mubr.msk.bf16.mxu1 %vm6667_vm0, %v4347_v38  ;;  %4557 = vmatprep.mubr.msk.bf16.mxu0 %vm6667_vm0, %v4347_v38  ;;  %v1273_v48 = vmax.f32 %v1119_v25, 0.0  ;;  %v1313_v25 = vadd.s32 160, %v6314_v9 }
 0x1fd   : > { %v929_v3 = vadd.f32 %v928_v0, %v6326_v14  ;;  %4814 = vmatprep.subr.msk.bf16.mxu1 %vm6667_vm0, %v4347_v38  ;;  %v930_v5 = vpop.f32.mrb[35].mxu0  ;;  %4351 = vmatmul.mubr.msk.bf16.gmra.mrb[72].mxu1 %vm6667_vm0, %v4350_v31  ;;  %v1195_v17 = vmax.f32 %v925_v49, 0.0  ;;  %9284 = vst [vmem:[#allocation42_spill] sm:$0xff] %v6718_v40  ;;  %v1126_v49 = vpop.f32.mrb[29].mxu1 }
 0x1fe   : > { %v931_v7 = vadd.f32 %v930_v5, %v6330_v16  ;;  %4560 = vmatmul.mubr.msk.bf16.gmra.mrb[112].mxu0 %vm6667_vm0, %v4350_v31  ;;  %4817 = vmatpush1.bf16.msk.msra.mxu1 %vm6667_vm0, %v4350_v31  ;;  %v1196_v27 = vmax.f32 %v927_v62, 0.0  ;;  %v1121_v31 = vadd.f32 %v1120_v26, %v6330_v16  ;;  %vm6713_vm0 = vmpackc.low %vm9032_vm7, %vm9033_vm13  ;;  %v6721_v62 = vadd.s32 %v6328_v15, %v1312_v11 }
 0x1ff   : > { %v1197_v21 = vmax.f32 %v929_v3, 0.0  ;;  %v6724_v5 = vpack.c.bf16 %v1273_v48, %v1271_v24  ;;  %v1127_v11 = vadd.f32 %v1126_v49, %v6330_v16  ;;  %vm9040_vm7 = vcmp.lt.s32.totalorder %v6718_v40, %v6340_v22 }
 0x200   : > { %v1198_v29 = vmax.f32 %v931_v7, 0.0  ;;  %9285 = vst [vmem:[#allocation43_spill] sm:$0xff] %v6721_v62  ;;  %v1274_v0 = vmax.f32 %v1121_v31, 0.0  ;;  %v1125_v7 = vadd.f32 %v1124_v33, %v6326_v14  ;;  %vm9039_vm13 = vcmp.lt.s32.totalorder %v6721_v62, %v6340_v22 }
 0x201   : > { %v4356_v37 = vpack.c.bf16 %v1197_v21, %v1195_v17  ;;  %9286 = vst [vmem:[#allocation44_spill] sm:$0xff] %v6724_v5 }
 0x202   : > { %v4353_v54 = vpack.c.bf16 %v1198_v29, %v1196_v27  ;;  %v934_v60 = vpop.f32.mrb[36].mxu0  ;;  %v6732_v6 = vpack.c.bf16 %v1274_v0, %v1272_v34  ;;  %v1314_v27 = vadd.s32 168, %v6314_v9  ;;  %v1315_v29 = vadd.s32 176, %v6314_v9  ;;  %v1128_v34 = vpop.f32.mrb[30].mxu1 }
 0x203   : > { %v935_v2 = vadd.f32 %v934_v60, %v6326_v14  ;;  %v936_v3 = vpop.f32.mrb[37].mxu0  ;;  %v1275_v48 = vmax.f32 %v1125_v7, 0.0  ;;  %v1129_v49 = vadd.f32 %v1128_v34, %v6326_v14  ;;  %v6765_v7 = vadd.s32 %v6328_v15, %v1313_v25 }
 0x204   : > { %v937_v13 = vadd.f32 %v936_v3, %v6330_v16  ;;  %v938_v17 = vpop.f32.mrb[38].mxu0  ;;  %4354 = vmatprep.mubr.msk.bf16.mxu1 %vm6713_vm0, %v4353_v54  ;;  %4563 = vmatprep.mubr.msk.bf16.mxu0 %vm6713_vm0, %v4353_v54  ;;  %9287 = vst [vmem:[#allocation45_spill] sm:$0xff] %v6732_v6  ;;  %v1276_v3 = vmax.f32 %v1127_v11, 0.0  ;;  %v6769_v34 = vadd.s32 %v6328_v15, %v1314_v27 }
 0x205   : > { %v939_v21 = vadd.f32 %v938_v17, %v6326_v14  ;;  %4820 = vmatprep.subr.msk.bf16.mxu1 %vm6713_vm0, %v4353_v54  ;;  %v940_v24 = vpop.f32.mrb[39].mxu0  ;;  %4357 = vmatmul.mubr.msk.bf16.gmra.mrb[76].mxu1 %vm6713_vm0, %v4356_v37  ;;  %v1199_v31 = vmax.f32 %v935_v2, 0.0  ;;  %v1130_v54 = vpop.f32.mrb[31].mxu1  ;;  %9290 = vst [vmem:[#allocation46_spill] sm:$0xff] %v6765_v7  ;;  %v1277_v11 = vmax.f32 %v1129_v49, 0.0 }
 0x206   : > { %v941_v26 = vadd.f32 %v940_v24, %v6330_v16  ;;  %4566 = vmatmul.mubr.msk.bf16.gmra.mrb[116].mxu0 %vm6713_vm0, %v4356_v37  ;;  %4823 = vmatpush1.bf16.msk.msra.mxu1 %vm6713_vm0, %v4356_v37  ;;  %v1200_v60 = vmax.f32 %v937_v13, 0.0  ;;  %v1131_v38 = vadd.f32 %v1130_v54, %v6330_v16  ;;  %v1134_v37 = vpop.f32.mrb[32].mxu1  ;;  %vm6760_vm0 = vmpackc.low %vm9039_vm13, %vm9040_vm7  ;;  %v1316_v13 = vadd.s32 184, %v6314_v9  ;;  %9291 = vst [vmem:[#allocation47_spill] sm:$0xff] %v6769_v34 }
 0x207   : > { %v1201_v33 = vmax.f32 %v939_v21, 0.0  ;;  %v1136_v21 = vpop.f32.mrb[33].mxu1  ;;  %v6775_v46 = vpack.c.bf16 %v1277_v11, %v1275_v48  ;;  %v1135_v25 = vadd.f32 %v1134_v37, %v6326_v14  ;;  %vm9076_vm13 = vcmp.lt.s32.totalorder %v6765_v7, %v6340_v22 }
 0x208   : > { %v1202_v0 = vmax.f32 %v941_v26, 0.0  ;;  %vm9056_vm7 = vcmp.lt.s32.totalorder %v6769_v34, %v6340_v22 }
 0x209   : > { %v4362_v17 = vpack.c.bf16 %v1201_v33, %v1199_v31  ;;  %v6772_v31 = vadd.s32 %v6328_v15, %v1315_v29  ;;  %v1278_v33 = vmax.f32 %v1131_v38, 0.0  ;;  %9292 = vst [vmem:[#allocation48_spill] sm:$0xff] %v6775_v46  ;;  %v1137_v29 = vadd.f32 %v1136_v21, %v6330_v16 }
 0x20a   : > { %v4359_v24 = vpack.c.bf16 %v1202_v0, %v1200_v60  ;;  %v944_v26 = vpop.f32.mrb[40].mxu0  ;;  %v1279_v11 = vmax.f32 %v1135_v25, 0.0 }
 0x20b   : > { %v945_v54 = vadd.f32 %v944_v26, %v6326_v14  ;;  %v946_v8 = vpop.f32.mrb[41].mxu0  ;;  %v6783_v27 = vpack.c.bf16 %v1278_v33, %v1276_v3  ;;  %vm9053_vm10 = vcmp.lt.s32.totalorder %v6772_v31, %v6340_v22  ;;  %v1138_v3 = vpop.f32.mrb[34].mxu1  ;;  %v1280_v33 = vmax.f32 %v1137_v29, 0.0 }
 0x20c   : > { %v947_v10 = vadd.f32 %v946_v8, %v6330_v16  ;;  %v948_v49 = vpop.f32.mrb[42].mxu0  ;;  %4360 = vmatprep.mubr.msk.bf16.mxu1 %vm6760_vm0, %v4359_v24  ;;  %4569 = vmatprep.mubr.msk.bf16.mxu0 %vm6760_vm0, %v4359_v24  ;;  %v6794_v8 = vadd.s32 %v6328_v15, %v1316_v13  ;;  %v1139_v13 = vadd.f32 %v1138_v3, %v6326_v14  ;;  %v1140_v21 = vpop.f32.mrb[35].mxu1 }
 0x20d   : > { %9293 = vst [vmem:[#allocation49_spill] sm:$0xff] %v6783_v27  ;;  %v949_v60 = vadd.f32 %v948_v49, %v6326_v14  ;;  %4826 = vmatprep.subr.msk.bf16.mxu1 %vm6760_vm0, %v4359_v24  ;;  %v950_v48 = vpop.f32.mrb[43].mxu0  ;;  %4363 = vmatmul.mubr.msk.bf16.gmra.mrb[80].mxu1 %vm6760_vm0, %v4362_v17  ;;  %v1203_v38 = vmax.f32 %v945_v54, 0.0  ;;  %v1141_v49 = vadd.f32 %v1140_v21, %v6330_v16  ;;  %v1144_v2 = vpop.f32.mrb[36].mxu1 }
 0x20e   : > { %v951_v0 = vadd.f32 %v950_v48, %v6330_v16  ;;  %4572 = vmatmul.mubr.msk.bf16.gmra.mrb[120].mxu0 %vm6760_vm0, %v4362_v17  ;;  %4829 = vmatpush1.bf16.msk.msra.mxu1 %vm6760_vm0, %v4362_v17  ;;  %v1204_v24 = vmax.f32 %v947_v10, 0.0  ;;  %vm6813_vm0 = vmpackc.low %vm9056_vm7, %vm9076_vm13  ;;  %vm9052_vm4 = vcmp.lt.s32.totalorder %v6794_v8, %v6340_v22  ;;  %v1281_v10 = vmax.f32 %v1139_v13, 0.0  ;;  %v1146_v29 = vpop.f32.mrb[37].mxu1 }
 0x20f   : > { %v1205_v37 = vmax.f32 %v949_v60, 0.0  ;;  %v1145_v25 = vadd.f32 %v1144_v2, %v6326_v14  ;;  %v1282_v3 = vmax.f32 %v1141_v49, 0.0 }
 0x210   : > { %v1206_v26 = vmax.f32 %v951_v0, 0.0  ;;  %v1317_v0 = vadd.s32 192, %v6314_v9  ;;  %v6823_v7 = vpack.c.bf16 %v1281_v10, %v1279_v11 }
 0x211   : > { %v4368_v17 = vpack.c.bf16 %v1205_v37, %v1203_v38  ;;  %v1147_v38 = vadd.f32 %v1146_v29, %v6330_v16  ;;  %v1148_v37 = vpop.f32.mrb[38].mxu1  ;;  %v1283_v62 = vmax.f32 %v1145_v25, 0.0 }
 0x212   : > { %v4365_v60 = vpack.c.bf16 %v1206_v26, %v1204_v24  ;;  %v954_v48 = vpop.f32.mrb[44].mxu0  ;;  %9296 = vst [vmem:[#allocation50_spill] sm:$0xff] %v6823_v7  ;;  %v1149_v40 = vadd.f32 %v1148_v37, %v6326_v14  ;;  %v1150_v13 = vpop.f32.mrb[39].mxu1  ;;  %v6831_v24 = vpack.c.bf16 %v1282_v3, %v1280_v33 }
 0x213   : > { %v955_v21 = vadd.f32 %v954_v48, %v6326_v14  ;;  %v956_v34 = vpop.f32.mrb[45].mxu0  ;;  %v1284_v26 = vmax.f32 %v1147_v38, 0.0  ;;  %v1151_v49 = vadd.f32 %v1150_v13, %v6330_v16  ;;  %v1154_v11 = vpop.f32.mrb[40].mxu1 }
 0x214   : > { %v957_v2 = vadd.f32 %v956_v34, %v6330_v16  ;;  %v958_v47 = vpop.f32.mrb[46].mxu0  ;;  %4366 = vmatprep.mubr.msk.bf16.mxu1 %vm6813_vm0, %v4365_v60  ;;  %4575 = vmatprep.mubr.msk.bf16.mxu0 %vm6813_vm0, %v4365_v60  ;;  %9297 = vst [vmem:[#allocation51_spill] sm:$0xff] %v6831_v24  ;;  %v1318_v34 = vadd.s32 200, %v6314_v9  ;;  %v1285_v29 = vmax.f32 %v1149_v40, 0.0  ;;  %v1155_v48 = vadd.f32 %v1154_v11, %v6326_v14  ;;  %v1156_v33 = vpop.f32.mrb[41].mxu1 }
 0x215   : > { %v959_v10 = vadd.f32 %v958_v47, %v6326_v14  ;;  %4832 = vmatprep.subr.msk.bf16.mxu1 %vm6813_vm0, %v4365_v60  ;;  %v960_v25 = vpop.f32.mrb[47].mxu0  ;;  %4369 = vmatmul.mubr.msk.bf16.gmra.mrb[84].mxu1 %vm6813_vm0, %v4368_v17  ;;  %v1207_v3 = vmax.f32 %v955_v21, 0.0  ;;  %v1286_v47 = vmax.f32 %v1151_v49, 0.0  ;;  %v1157_v60 = vadd.f32 %v1156_v33, %v6330_v16  ;;  %v1158_v37 = vpop.f32.mrb[42].mxu1 }
 0x216   : > { %v961_v38 = vadd.f32 %v960_v25, %v6330_v16  ;;  %4578 = vmatmul.mubr.msk.bf16.gmra.mrb[124].mxu0 %vm6813_vm0, %v4368_v17  ;;  %4835 = vmatpush1.bf16.msk.msra.mxu1 %vm6813_vm0, %v4368_v17  ;;  %v6847_v43 = vpack.c.bf16 %v1285_v29, %v1283_v62  ;;  %v1287_v40 = vmax.f32 %v1155_v48, 0.0  ;;  %v1159_v11 = vadd.f32 %v1158_v37, %v6326_v14  ;;  %v1160_v44 = vpop.f32.mrb[43].mxu1  ;;  %vm6858_vm0 = vmpackc.low %vm9052_vm4, %vm9053_vm10 }
 0x217   : > { %v1209_v13 = vmax.f32 %v959_v10, 0.0  ;;  %v1208_v21 = vmax.f32 %v957_v2, 0.0  ;;  %v6850_v25 = vpack.c.bf16 %v1286_v47, %v1284_v26  ;;  %v1288_v62 = vmax.f32 %v1157_v60, 0.0 }
 0x218   : > { %9298 = vst [vmem:[#allocation52_spill] sm:$0xff] %v6847_v43  ;;  %v1210_v35 = vmax.f32 %v961_v38, 0.0  ;;  %v1289_v54 = vmax.f32 %v1159_v11, 0.0  ;;  %v1161_v49 = vadd.f32 %v1160_v44, %v6330_v16  ;;  %v6864_v26 = vadd.s32 %v6328_v15, %v1317_v0 }
 0x219   : > { %9299 = vst [vmem:[#allocation53_spill] sm:$0xff] %v6850_v25  ;;  %v4374_v52 = vpack.c.bf16 %v1209_v13, %v1207_v3  ;;  %v6867_v29 = vadd.s32 %v6328_v15, %v1318_v34  ;;  %v1319_v0 = vadd.s32 208, %v6314_v9  ;;  %v1320_v13 = vadd.s32 216, %v6314_v9 }
 0x21a   : > { %v4371_v10 = vpack.c.bf16 %v1210_v35, %v1208_v21  ;;  %v964_v2 = vpop.f32.mrb[48].mxu0  ;;  %v6870_v3 = vpack.c.bf16 %v1289_v54, %v1287_v40  ;;  %v1290_v38 = vmax.f32 %v1161_v49, 0.0  ;;  %vm9055_vm4 = vcmp.lt.s32.totalorder %v6864_v26, %v6340_v22 }
 0x21b   : > { %v965_v48 = vadd.f32 %v964_v2, %v6326_v14  ;;  %v966_v33 = vpop.f32.mrb[49].mxu0  ;;  %vm9054_vm10 = vcmp.lt.s32.totalorder %v6867_v29, %v6340_v22  ;;  %v6906_v17 = vadd.s32 %v6328_v15, %v1319_v0  ;;  %v6909_v2 = vadd.s32 %v6328_v15, %v1320_v13 }
 0x21c   : > { %9302 = vst [vmem:[#allocation54_spill] sm:$0xff] %v6870_v3  ;;  %v967_v47 = vadd.f32 %v966_v33, %v6330_v16  ;;  %v968_v60 = vpop.f32.mrb[50].mxu0  ;;  %4372 = vmatprep.mubr.msk.bf16.mxu1 %vm6858_vm0, %v4371_v10  ;;  %4581 = vmatprep.mubr.msk.bf16.mxu0 %vm6858_vm0, %v4371_v10  ;;  %v6883_v34 = vpack.c.bf16 %v1290_v38, %v1288_v62  ;;  %v1321_v0 = vadd.s32 224, %v6314_v9 }
 0x21d   : > { %v969_v35 = vadd.f32 %v968_v60, %v6326_v14  ;;  %4838 = vmatprep.subr.msk.bf16.mxu1 %vm6858_vm0, %v4371_v10  ;;  %v970_v44 = vpop.f32.mrb[51].mxu0  ;;  %4375 = vmatmul.mubr.msk.bf16.gmra.mrb[88].mxu1 %vm6858_vm0, %v4374_v52  ;;  %v1211_v40 = vmax.f32 %v965_v48, 0.0 }
 0x21e   : > { %9303 = vst [vmem:[#allocation55_spill] sm:$0xff] %v6883_v34  ;;  %v971_v37 = vadd.f32 %v970_v44, %v6330_v16  ;;  %4584 = vmatmul.mubr.msk.bf16.gmra.mrb[128].mxu0 %vm6858_vm0, %v4374_v52  ;;  %4841 = vmatpush1.bf16.msk.msra.mxu1 %vm6858_vm0, %v4374_v52  ;;  %v1212_v21 = vmax.f32 %v967_v47, 0.0  ;;  %vm6901_vm0 = vmpackc.low %vm9054_vm10, %vm9055_vm4  ;;  %vm9060_vm10 = vcmp.lt.s32.totalorder %v6906_v17, %v6340_v22 }
 0x21f   : > { %v1213_v11 = vmax.f32 %v969_v35, 0.0  ;;  %vm9057_vm4 = vcmp.lt.s32.totalorder %v6909_v2, %v6340_v22 }
 0x220   : > { %v1214_v62 = vmax.f32 %v971_v37, 0.0  ;;  %v1322_v37 = vadd.s32 232, %v6314_v9  ;;  %vm6939_vm7 = vmpackc.low %vm9057_vm4, %vm9060_vm10 }
 0x221   : > { %v4380_v54 = vpack.c.bf16 %v1213_v11, %v1211_v40 }
 0x222   : > { %v4377_v49 = vpack.c.bf16 %v1214_v62, %v1212_v21  ;;  %v974_v10 = vpop.f32.mrb[52].mxu0 }
 0x223   : > { %v975_v48 = vadd.f32 %v974_v10, %v6326_v14  ;;  %v976_v33 = vpop.f32.mrb[53].mxu0  ;;  %v6944_v10 = vadd.s32 %v6328_v15, %v1321_v0  ;;  %v1323_v0 = vadd.s32 240, %v6314_v9 }
 0x224   : > { %v977_v38 = vadd.f32 %v976_v33, %v6330_v16  ;;  %v978_v47 = vpop.f32.mrb[54].mxu0  ;;  %4378 = vmatprep.mubr.msk.bf16.mxu1 %vm6901_vm0, %v4377_v49  ;;  %4587 = vmatprep.mubr.msk.bf16.mxu0 %vm6901_vm0, %v4377_v49 }
 0x225   : > { %v979_v60 = vadd.f32 %v978_v47, %v6326_v14  ;;  %4844 = vmatprep.subr.msk.bf16.mxu1 %vm6901_vm0, %v4377_v49  ;;  %v980_v35 = vpop.f32.mrb[55].mxu0  ;;  %4381 = vmatmul.mubr.msk.bf16.gmra.mrb[92].mxu1 %vm6901_vm0, %v4380_v54  ;;  %v1215_v13 = vmax.f32 %v975_v48, 0.0  ;;  %v6947_v48 = vadd.s32 %v6328_v15, %v1322_v37 }
 0x226   : > { %v981_v44 = vadd.f32 %v980_v35, %v6330_v16  ;;  %4590 = vmatmul.mubr.msk.bf16.gmra.mrb[132].mxu0 %vm6901_vm0, %v4380_v54  ;;  %4847 = vmatpush1.bf16.msk.msra.mxu1 %vm6901_vm0, %v4380_v54  ;;  %v1216_v11 = vmax.f32 %v977_v38, 0.0  ;;  %vm9059_vm0 = vcmp.lt.s32.totalorder %v6944_v10, %v6340_v22  ;;  %v6982_v54 = vadd.s32 %v6328_v15, %v1323_v0 }
 0x227   : > { %v1217_v40 = vmax.f32 %v979_v60, 0.0  ;;  %9308 = vst [vmem:[#allocation56_spill] sm:$0xff] %v6947_v48  ;;  %vm9058_vm4 = vcmp.lt.s32.totalorder %v6947_v48, %v6340_v22 }
 0x228   : > { %v1218_v21 = vmax.f32 %v981_v44, 0.0  ;;  %9311 = vst [vmem:[#allocation57_spill] sm:$0xff] %v6982_v54 }
 0x229   : > { %v4386_v62 = vpack.c.bf16 %v1217_v40, %v1215_v13  ;;  %v1324_v13 = vadd.s32 248, %v6314_v9 }
 0x22a   : > { %v4383_v52 = vpack.c.bf16 %v1218_v21, %v1216_v11  ;;  %v984_v49 = vpop.f32.mrb[56].mxu0 }
 0x22b   : > { %v985_v33 = vadd.f32 %v984_v49, %v6326_v14  ;;  %v986_v38 = vpop.f32.mrb[57].mxu0 }
 0x22c   : > { %v987_v47 = vadd.f32 %v986_v38, %v6330_v16  ;;  %v988_v60 = vpop.f32.mrb[58].mxu0  ;;  %4384 = vmatprep.mubr.msk.bf16.mxu1 %vm6939_vm7, %v4383_v52  ;;  %4593 = vmatprep.mubr.msk.bf16.mxu0 %vm6939_vm7, %v4383_v52 }
 0x22d   : > { %v989_v35 = vadd.f32 %v988_v60, %v6326_v14  ;;  %4850 = vmatprep.subr.msk.bf16.mxu1 %vm6939_vm7, %v4383_v52  ;;  %v990_v44 = vpop.f32.mrb[59].mxu0  ;;  %4387 = vmatmul.mubr.msk.bf16.gmra.mrb[96].mxu1 %vm6939_vm7, %v4386_v62  ;;  %v1219_v40 = vmax.f32 %v985_v33, 0.0  ;;  %v6985_v33 = vadd.s32 %v6328_v15, %v1324_v13 }
 0x22e   : > { %v991_v37 = vadd.f32 %v990_v44, %v6330_v16  ;;  %4596 = vmatmul.mubr.msk.bf16.gmra.mrb[136].mxu0 %vm6939_vm7, %v4386_v62  ;;  %4853 = vmatpush1.bf16.msk.msra.mxu1 %vm6939_vm7, %v4386_v62  ;;  %v1220_v21 = vmax.f32 %v987_v47, 0.0  ;;  %vm6977_vm7 = vmpackc.low %vm9058_vm4, %vm9059_vm0  ;;  %vm9068_vm4 = vcmp.lt.s32.totalorder %v6982_v54, %v6340_v22 }
 0x22f   : > { %v1221_v11 = vmax.f32 %v989_v35, 0.0  ;;  %9312 = vst [vmem:[#allocation58_spill] sm:$0xff] %v6985_v33  ;;  %vm9062_vm0 = vcmp.lt.s32.totalorder %v6985_v33, %v6340_v22 }
 0x230   : > { %v1222_v52 = vmax.f32 %v991_v37, 0.0  ;;  %vm7015_vm10 = vmpackc.low %vm9062_vm0, %vm9068_vm4 }
 0x231   : > { %v4392_v49 = vpack.c.bf16 %v1221_v11, %v1219_v40  ;;  %v1325_v11 = vadd.s32 256, %v6314_v9 }
 0x232   : > { %v4389_v38 = vpack.c.bf16 %v1222_v52, %v1220_v21  ;;  %v994_v60 = vpop.f32.mrb[60].mxu0  ;;  %v1326_v21 = vadd.s32 264, %v6314_v9 }
 0x233   : > { %v995_v47 = vadd.f32 %v994_v60, %v6326_v14  ;;  %v996_v35 = vpop.f32.mrb[61].mxu0  ;;  %v7020_v48 = vadd.s32 %v6328_v15, %v1325_v11 }
 0x234   : > { %v997_v44 = vadd.f32 %v996_v35, %v6330_v16  ;;  %v998_v37 = vpop.f32.mrb[62].mxu0  ;;  %4390 = vmatprep.mubr.msk.bf16.mxu1 %vm6977_vm7, %v4389_v38  ;;  %4599 = vmatprep.mubr.msk.bf16.mxu0 %vm6977_vm7, %v4389_v38 }
 0x235   : > { %v999_v0 = vadd.f32 %v998_v37, %v6326_v14  ;;  %4856 = vmatprep.subr.msk.bf16.mxu1 %vm6977_vm7, %v4389_v38  ;;  %v1000_v40 = vpop.f32.mrb[63].mxu0  ;;  %4393 = vmatmul.mubr.msk.bf16.gmra.mrb[100].mxu1 %vm6977_vm7, %v4392_v49  ;;  %v1223_v52 = vmax.f32 %v995_v47, 0.0  ;;  %9315 = vst [vmem:[#allocation59_spill] sm:$0xff] %v7020_v48  ;;  %v7023_v47 = vadd.s32 %v6328_v15, %v1326_v21  ;;  %v1327_v21 = vadd.s32 272, %v6314_v9 }
 0x236   : > { %v1001_v13 = vadd.f32 %v1000_v40, %v6330_v16  ;;  %4602 = vmatmul.mubr.msk.bf16.gmra.mrb[140].mxu0 %vm6977_vm7, %v4392_v49  ;;  %4859 = vmatpush1.bf16.msk.msra.mxu1 %vm6977_vm7, %v4392_v49  ;;  %v1224_v60 = vmax.f32 %v997_v44, 0.0  ;;  %vm9065_vm7 = vcmp.lt.s32.totalorder %v7020_v48, %v6340_v22 }
 0x237   : > { %v1225_v38 = vmax.f32 %v999_v0, 0.0  ;;  %9316 = vst [vmem:[#allocation60_spill] sm:$0xff] %v7023_v47  ;;  %vm9064_vm0 = vcmp.lt.s32.totalorder %v7023_v47, %v6340_v22  ;;  %v7060_v49 = vadd.s32 %v6328_v15, %v1327_v21 }
 0x238   : > { %v1226_v35 = vmax.f32 %v1001_v13, 0.0 }
 0x239   : > { %v4398_v37 = vpack.c.bf16 %v1225_v38, %v1223_v52  ;;  %9321 = vst [vmem:[#allocation63_spill] sm:$0xff] %v7060_v49 }
 0x23a   : > { %v4395_v62 = vpack.c.bf16 %v1226_v35, %v1224_v60  ;;  %v1004_v40 = vpop.f32.mrb[64].mxu0  ;;  %v1328_v35 = vadd.s32 280, %v6314_v9 }
 0x23b   : > { %v1005_v44 = vadd.f32 %v1004_v40, %v6326_v14  ;;  %v1006_v0 = vpop.f32.mrb[65].mxu0 }
 0x23c   : > { %v1007_v13 = vadd.f32 %v1006_v0, %v6330_v16  ;;  %v1008_v52 = vpop.f32.mrb[66].mxu0  ;;  %4396 = vmatprep.mubr.msk.bf16.mxu1 %vm7015_vm10, %v4395_v62  ;;  %4605 = vmatprep.mubr.msk.bf16.mxu0 %vm7015_vm10, %v4395_v62 }
 0x23d   : > { %v1009_v38 = vadd.f32 %v1008_v52, %v6326_v14  ;;  %4862 = vmatprep.subr.msk.bf16.mxu1 %vm7015_vm10, %v4395_v62  ;;  %v1010_v11 = vpop.f32.mrb[67].mxu0  ;;  %4399 = vmatmul.mubr.msk.bf16.gmra.mrb[104].mxu1 %vm7015_vm10, %v4398_v37  ;;  %v1227_v62 = vmax.f32 %v1005_v44, 0.0 }
 0x23e   : > { %v1011_v60 = vadd.f32 %v1010_v11, %v6330_v16  ;;  %4608 = vmatmul.mubr.msk.bf16.gmra.mrb[144].mxu0 %vm7015_vm10, %v4398_v37  ;;  %4865 = vmatpush1.bf16.msk.msra.mxu1 %vm7015_vm10, %v4398_v37  ;;  %v1228_v0 = vmax.f32 %v1007_v13, 0.0  ;;  %vm7055_vm10 = vmpackc.low %vm9064_vm0, %vm9065_vm7  ;;  %v9318_v37 = vmov 0  ;;  %v7063_v13 = vadd.s32 %v6328_v15, %v1328_v35 }
 0x23f   : > { %v1229_v40 = vmax.f32 %v1009_v38, 0.0  ;;  %v9319_v37 = vsel %vm7055_vm10, 4294967295, %v9318_v37  ;;  %vm9072_vm0 = vcmp.lt.s32.totalorder %v7060_v49, %v6340_v22 }
 0x240   : > { %v1230_v52 = vmax.f32 %v1011_v60, 0.0  ;;  %9320 = vst [vmem:[#allocation62_spill] sm:$0xff] %v9319_v37  ;;  %9322 = vst [vmem:[#allocation64_spill] sm:$0xff] %v7063_v13  ;;  %vm9071_vm7 = vcmp.lt.s32.totalorder %v7063_v13, %v6340_v22 }
 0x241   : > { %v7047_v33 = vpack.c.bf16 %v1229_v40, %v1227_v62  ;;  %vm7095_vm4 = vmpackc.low %vm9071_vm7, %vm9072_vm0 }
 0x242   : > { %v4401_v11 = vpack.c.bf16 %v1230_v52, %v1228_v0  ;;  %v1014_v44 = vpop.f32.mrb[68].mxu0  ;;  %v1329_v52 = vadd.s32 288, %v6314_v9 }
 0x243   : > { %9317 = vst [vmem:[#allocation61_spill] sm:$0xff] %v7047_v33  ;;  %v1015_v38 = vadd.f32 %v1014_v44, %v6326_v14  ;;  %v1016_v60 = vpop.f32.mrb[69].mxu0 }
 0x244   : > { %v1017_v62 = vadd.f32 %v1016_v60, %v6330_v16  ;;  %v1018_v40 = vpop.f32.mrb[70].mxu0  ;;  %4402 = vmatprep.mubr.msk.bf16.mxu1 %vm7055_vm10, %v4401_v11  ;;  %4611 = vmatprep.mubr.msk.bf16.mxu0 %vm7055_vm10, %v4401_v11 }
 0x245   : > { %v1019_v21 = vadd.f32 %v1018_v40, %v6326_v14  ;;  %4868 = vmatprep.subr.msk.bf16.mxu1 %vm7055_vm10, %v4401_v11  ;;  %v1020_v0 = vpop.f32.mrb[71].mxu0  ;;  %4405 = vmatmul.mubr.msk.bf16.gmra.mrb[108].mxu1 %vm7055_vm10, %v7047_v33  ;;  %v1330_v11 = vadd.s32 296, %v6314_v9  ;;  %v1231_v44 = vmax.f32 %v1015_v38, 0.0  ;;  %v7102_v38 = vadd.s32 %v6328_v15, %v1329_v52 }
 0x246   : > { %v1021_v35 = vadd.f32 %v1020_v0, %v6330_v16  ;;  %4614 = vmatmul.mubr.msk.bf16.gmra.mrb[148].mxu0 %vm7055_vm10, %v7047_v33  ;;  %v1232_v40 = vmax.f32 %v1017_v62, 0.0  ;;  %v9324_v0 = vmov 0 }
 0x247   : > { %v1233_v60 = vmax.f32 %v1019_v21, 0.0  ;;  %v9325_v0 = vsel %vm7095_vm4, 4294967295, %v9324_v0  ;;  %9328 = vst [vmem:[#allocation68_spill] sm:$0xff] %v7102_v38  ;;  %v7105_v62 = vadd.s32 %v6328_v15, %v1330_v11  ;;  %vm9081_vm7 = vcmp.lt.s32.totalorder %v7102_v38, %v6340_v22 }
 0x248   : > { %v1234_v47 = vmax.f32 %v1021_v35, 0.0  ;;  %9326 = vst [vmem:[#allocation66_spill] sm:$0xff] %v9325_v0 }
 0x249   : > { %v7087_v48 = vpack.c.bf16 %v1233_v60, %v1231_v44  ;;  %9329 = vst [vmem:[#allocation69_spill] sm:$0xff] %v7105_v62  ;;  %vm9080_vm0 = vcmp.lt.s32.totalorder %v7105_v62, %v6340_v22  ;;  %v1336_v62 = vadd.s32 344, %v6314_v9 }
 0x24a   : > { %v7099_v37 = vpack.c.bf16 %v1234_v47, %v1232_v40  ;;  %v1024_v33 = vpop.f32.mrb[72].mxu0  ;;  %v1332_v40 = vadd.s32 312, %v6314_v9  ;;  %vm7137_vm13 = vmpackc.low %vm9080_vm0, %vm9081_vm7 }
 0x24b   : > { %9323 = vst [vmem:[#allocation65_spill] sm:$0xff] %v7087_v48  ;;  %v1025_v21 = vadd.f32 %v1024_v33, %v6326_v14  ;;  %v1026_v35 = vpop.f32.mrb[73].mxu0  ;;  %v1331_v33 = vadd.s32 304, %v6314_v9 }
 0x24c   : > { %9327 = vst [vmem:[#allocation67_spill] sm:$0xff] %v7099_v37  ;;  %v1027_v44 = vadd.f32 %v1026_v35, %v6330_v16  ;;  %v1028_v60 = vpop.f32.mrb[74].mxu0  ;;  %4408 = vmatprep.mubr.msk.bf16.mxu1 %vm7095_vm4, %v7099_v37  ;;  %4617 = vmatprep.mubr.msk.bf16.mxu0 %vm7095_vm4, %v7099_v37 }
 0x24d   : > { %v1029_v47 = vadd.f32 %v1028_v60, %v6326_v14  ;;  %v1030_v52 = vpop.f32.mrb[75].mxu0  ;;  %4411 = vmatmul.mubr.msk.bf16.gmra.mrb[112].mxu1 %vm7095_vm4, %v7087_v48  ;;  %v1235_v35 = vmax.f32 %v1025_v21, 0.0 }
 0x24e   : > { %v1031_v11 = vadd.f32 %v1030_v52, %v6330_v16  ;;  %4620 = vmatmul.mubr.msk.bf16.gmra.mrb[152].mxu0 %vm7095_vm4, %v7087_v48  ;;  %v1236_v37 = vmax.f32 %v1027_v44, 0.0  ;;  %v9331_v52 = vmov 0  ;;  %v7142_v48 = vadd.s32 %v6328_v15, %v1331_v33 }
 0x24f   : > { %v1237_v60 = vmax.f32 %v1029_v47, 0.0  ;;  %v9332_v52 = vsel %vm7137_vm13, 4294967295, %v9331_v52  ;;  %v7147_v44 = vadd.s32 %v6328_v15, %v1332_v40  ;;  %v1333_v40 = vadd.s32 320, %v6314_v9 }
 0x250   : > { %v1238_v13 = vmax.f32 %v1031_v11, 0.0  ;;  %9333 = vst [vmem:[#allocation71_spill] sm:$0xff] %v9332_v52  ;;  %9334 = vst [vmem:[#allocation72_spill] sm:$0xff] %v7142_v48  ;;  %vm9093_vm0 = vcmp.lt.s32.totalorder %v7142_v48, %v6340_v22 }
 0x251   : > { %v7129_v49 = vpack.c.bf16 %v1237_v60, %v1235_v35  ;;  %9336 = vst [vmem:[#allocation74_spill] sm:$0xff] %v7147_v44  ;;  %vm9092_vm7 = vcmp.lt.s32.totalorder %v7147_v44, %v6340_v22  ;;  %v7188_v52 = vadd.s32 %v6328_v15, %v1333_v40  ;;  %v7198_v44 = vadd.s32 %v6328_v15, %v1336_v62 }
 0x252   : > { %v7144_v0 = vpack.c.bf16 %v1238_v13, %v1236_v37  ;;  %v1034_v21 = vpop.f32.mrb[76].mxu0  ;;  %vm7181_vm1 = vmpackc.low %vm9092_vm7, %vm9093_vm0 }
 0x253   : > { %9330 = vst [vmem:[#allocation70_spill] sm:$0xff] %v7129_v49  ;;  %v1035_v47 = vadd.f32 %v1034_v21, %v6326_v14  ;;  %v1036_v11 = vpop.f32.mrb[77].mxu0  ;;  %v1334_v21 = vadd.s32 328, %v6314_v9  ;;  %vm9103_vm7 = vcmp.lt.s32.totalorder %v7188_v52, %v6340_v22  ;;  %vm9098_vm14 = vcmp.lt.s32.totalorder %v7198_v44, %v6340_v22 }
 0x254   : > { %9335 = vst [vmem:[#allocation73_spill] sm:$0xff] %v7144_v0  ;;  %v1037_v35 = vadd.f32 %v1036_v11, %v6330_v16  ;;  %v1038_v60 = vpop.f32.mrb[78].mxu0  ;;  %4414 = vmatprep.mubr.msk.bf16.mxu1 %vm7137_vm13, %v7144_v0  ;;  %4623 = vmatprep.mubr.msk.bf16.mxu0 %vm7137_vm13, %v7144_v0  ;;  %v1335_v0 = vadd.s32 336, %v6314_v9 }
 0x255   : > { %v1039_v37 = vadd.f32 %v1038_v60, %v6326_v14  ;;  %v1040_v13 = vpop.f32.mrb[79].mxu0  ;;  %4417 = vmatmul.mubr.msk.bf16.gmra.mrb[116].mxu1 %vm7137_vm13, %v7129_v49  ;;  %v1239_v11 = vmax.f32 %v1035_v47, 0.0 }
 0x256   : > { %v1041_v33 = vadd.f32 %v1040_v13, %v6330_v16  ;;  %4626 = vmatmul.mubr.msk.bf16.gmra.mrb[156].mxu0 %vm7137_vm13, %v7129_v49  ;;  %v1240_v38 = vmax.f32 %v1037_v35, 0.0  ;;  %v9338_v49 = vmov 0  ;;  %v7191_v35 = vadd.s32 %v6328_v15, %v1334_v21 }
 0x257   : > { %v1241_v60 = vmax.f32 %v1039_v37, 0.0  ;;  %v9339_v49 = vsel %vm7181_vm1, 4294967295, %v9338_v49 }
 0x258   : > { %v1242_v54 = vmax.f32 %v1041_v33, 0.0  ;;  %9340 = vst [vmem:[#allocation76_spill] sm:$0xff] %v9339_v49  ;;  %vm9100_vm0 = vcmp.lt.s32.totalorder %v7191_v35, %v6340_v22  ;;  %v9376_v49 = vmov 0 }
 0x259   : > { %v7173_v13 = vpack.c.bf16 %v1241_v60, %v1239_v11  ;;  %v7195_v60 = vadd.s32 %v6328_v15, %v1335_v0  ;;  %vm7233_vm11 = vmpackc.low %vm9100_vm0, %vm9103_vm7 }
 0x25a   : > { %v7185_v47 = vpack.c.bf16 %v1242_v54, %v1240_v38  ;;  %v1044_v37 = vpop.f32.mrb[80].mxu0 }
 0x25b   : > { %9337 = vst [vmem:[#allocation75_spill] sm:$0xff] %v7173_v13  ;;  %v1045_v33 = vadd.f32 %v1044_v37, %v6326_v14  ;;  %v1046_v11 = vpop.f32.mrb[81].mxu0  ;;  %vm9099_vm15 = vcmp.lt.s32.totalorder %v7195_v60, %v6340_v22  ;;  %v1337_v37 = vadd.s32 352, %v6314_v9 }
 0x25c   : > { %9341 = vst [vmem:[#allocation77_spill] sm:$0xff] %v7185_v47  ;;  %v1047_v48 = vadd.f32 %v1046_v11, %v6330_v16  ;;  %v1048_v54 = vpop.f32.mrb[82].mxu0  ;;  %4420 = vmatprep.mubr.msk.bf16.mxu1 %vm7181_vm1, %v7185_v47  ;;  %4629 = vmatprep.mubr.msk.bf16.mxu0 %vm7181_vm1, %v7185_v47  ;;  %v1338_v11 = vadd.s32 360, %v6314_v9  ;;  %vm7245_vm6 = vmpackc.low %vm9098_vm14, %vm9099_vm15 }
 0x25d   : > { %v1049_v38 = vadd.f32 %v1048_v54, %v6326_v14  ;;  %v1050_v40 = vpop.f32.mrb[83].mxu0  ;;  %4423 = vmatmul.mubr.msk.bf16.gmra.mrb[120].mxu1 %vm7181_vm1, %v7173_v13  ;;  %v1243_v62 = vmax.f32 %v1045_v33, 0.0  ;;  %v9343_v33 = vmov 0 }
 0x25e   : > { %v1051_v0 = vadd.f32 %v1050_v40, %v6330_v16  ;;  %4632 = vmatmul.mubr.msk.bf16.gmra.mrb[160].mxu0 %vm7181_vm1, %v7173_v13  ;;  %v1244_v14 = vmax.f32 %v1047_v48, 0.0  ;;  %v9344_v33 = vsel %vm7233_vm11, 4294967295, %v9343_v33  ;;  %v9347_v48 = vmov 0 }
 0x25f   : > { %v1245_v21 = vmax.f32 %v1049_v38, 0.0  ;;  %9345 = vst [vmem:[#allocation79_spill] sm:$0xff] %v9344_v33  ;;  %v9348_v48 = vsel %vm7245_vm6, 4294967295, %v9347_v48  ;;  %v7256_v40 = vadd.s32 %v6328_v15, %v1337_v37 }
 0x260   : > { %v1246_v16 = vmax.f32 %v1051_v0, 0.0  ;;  %9349 = vst [vmem:[#allocation81_spill] sm:$0xff] %v9348_v48  ;;  %v7259_v0 = vadd.s32 %v6328_v15, %v1338_v11  ;;  %v1341_v11 = vadd.s32 384, %v6314_v9  ;;  %v3367_v48 = vld [vmem:[#allocation7] sm:$0x1] }
 0x261   : > { %v7225_v54 = vpack.c.bf16 %v1245_v21, %v1243_v62  ;;  %vm9102_vm14 = vcmp.lt.s32.totalorder %v7256_v40, %v6340_v22  ;;  %v1339_v62 = vadd.s32 368, %v6314_v9  ;;  %v1340_v21 = vadd.s32 376, %v6314_v9  ;;  %5006 = vpush %v3367_v48 }
 0x262   : > { %v7237_v38 = vpack.c.bf16 %v1246_v16, %v1244_v14  ;;  %vm9101_vm15 = vcmp.lt.s32.totalorder %v7259_v0, %v6340_v22  ;;  %v9350_v14 = vmov 0  ;;  %v1352_v48 = vadd.s32 472, %v6314_v9 }
 0x263   : > { %9342 = vst [vmem:[#allocation78_spill] sm:$0xff] %v7225_v54  ;;  %vm7285_vm0 = vmpackc.low %vm9101_vm15, %vm9102_vm14  ;;  %v7290_v16 = vadd.s32 %v6328_v15, %v1339_v62  ;;  %v7293_v37 = vadd.s32 %v6328_v15, %v1340_v21  ;;  %v1342_v62 = vadd.s32 392, %v6314_v9  ;;  %v9353_v21 = vmov 0 }
 0x264   : > { %9346 = vst [vmem:[#allocation80_spill] sm:$0xff] %v7237_v38  ;;  %4426 = vmatprep.mubr.msk.bf16.mxu1 %vm7233_vm11, %v7237_v38  ;;  %4635 = vmatprep.mubr.msk.bf16.mxu0 %vm7233_vm11, %v7237_v38  ;;  %v9351_v14 = vsel %vm7285_vm0, 4294967295, %v9350_v14 }
 0x265   : > { %4429 = vmatmul.mubr.msk.bf16.gmra.mrb[124].mxu1 %vm7233_vm11, %v7225_v54  ;;  %9352 = vst [vmem:[#allocation82_spill] sm:$0xff] %v9351_v14  ;;  %vm9107_vm15 = vcmp.lt.s32.totalorder %v7290_v16, %v6340_v22  ;;  %vm9106_vm14 = vcmp.lt.s32.totalorder %v7293_v37, %v6340_v22 }
 0x266   : > { %4638 = vmatmul.mubr.msk.bf16.gmra.mrb[164].mxu0 %vm7233_vm11, %v7225_v54  ;;  %4432 = vmatprep.mubr.msk.bf16.mxu1 %vm7245_vm6, %v6471_v50  ;;  %vm7319_vm7 = vmpackc.low %vm9106_vm14, %vm9107_vm15 }
 0x267   : > { %4641 = vmatprep.mubr.msk.bf16.mxu0 %vm7245_vm6, %v6471_v50  ;;  %v9354_v21 = vsel %vm7319_vm7, 4294967295, %v9353_v21 }
 0x268   : > { %9355 = vst [vmem:[#allocation83_spill] sm:$0xff] %v9354_v21 }
 0x26d   : > { %4435 = vmatmul.mubr.msk.bf16.gmra.mrb[128].mxu1 %vm7245_vm6, %v6461_v45 }
 0x26e   : > { %4644 = vmatmul.mubr.msk.bf16.gmra.mrb[168].mxu0 %vm7245_vm6, %v6461_v45  ;;  %4438 = vmatprep.mubr.msk.bf16.mxu1 %vm7285_vm0, %v6517_v32  ;;  %v7327_v45 = vadd.s32 %v6328_v15, %v1342_v62  ;;  %v1344_v62 = vadd.s32 408, %v6314_v9 }
 0x26f   : > { %4647 = vmatprep.mubr.msk.bf16.mxu0 %vm7285_vm0, %v6517_v32  ;;  %v7324_v32 = vadd.s32 %v6328_v15, %v1341_v11  ;;  %v1343_v11 = vadd.s32 400, %v6314_v9 }
 0x270   : > { %vm9113_vm15 = vcmp.lt.s32.totalorder %v7327_v45, %v6340_v22  ;;  %v7361_v14 = vadd.s32 %v6328_v15, %v1344_v62  ;;  %v1346_v62 = vadd.s32 424, %v6314_v9 }
 0x271   : > { %vm9114_vm14 = vcmp.lt.s32.totalorder %v7324_v32, %v6340_v22 }
 0x272   : > { %vm7353_vm12 = vmpackc.low %vm9113_vm15, %vm9114_vm14  ;;  %9360 = vst [vmem:[#allocation86_spill] sm:$0xff] %v7361_v14  ;;  %vm9120_vm14 = vcmp.lt.s32.totalorder %v7361_v14, %v6340_v22  ;;  %v7395_v21 = vadd.s32 %v6328_v15, %v1346_v62  ;;  %v1348_v62 = vadd.s32 440, %v6314_v9 }
 0x274   : > { %9365 = vst [vmem:[#allocation89_spill] sm:$0xff] %v7395_v21 }
 0x275   : > { %4441 = vmatmul.mubr.msk.bf16.gmra.mrb[132].mxu1 %vm7285_vm0, %v6508_v28 }
 0x276   : > { %4650 = vmatmul.mubr.msk.bf16.gmra.mrb[172].mxu0 %vm7285_vm0, %v6508_v28  ;;  %4444 = vmatprep.mubr.msk.bf16.mxu1 %vm7319_vm7, %v6564_v23  ;;  %v9356_v28 = vmov 0 }
 0x277   : > { %4653 = vmatprep.mubr.msk.bf16.mxu0 %vm7319_vm7, %v6564_v23  ;;  %v9357_v28 = vsel %vm7353_vm12, 4294967295, %v9356_v28  ;;  %v7358_v23 = vadd.s32 %v6328_v15, %v1343_v11  ;;  %v1345_v11 = vadd.s32 416, %v6314_v9 }
 0x278   : > { %9358 = vst [vmem:[#allocation84_spill] sm:$0xff] %v9357_v28  ;;  %v7429_v28 = vadd.s32 %v6328_v15, %v1348_v62  ;;  %v1350_v62 = vadd.s32 456, %v6314_v9 }
 0x279   : > { %9359 = vst [vmem:[#allocation85_spill] sm:$0xff] %v7358_v23  ;;  %vm9121_vm15 = vcmp.lt.s32.totalorder %v7358_v23, %v6340_v22 }
 0x27a   : > { %vm7387_vm8 = vmpackc.low %vm9120_vm14, %vm9121_vm15  ;;  %vm9127_vm15 = vcmp.lt.s32.totalorder %v7395_v21, %v6340_v22  ;;  %9370 = vst [vmem:[#allocation92_spill] sm:$0xff] %v7429_v28 }
 0x27d   : > { %4447 = vmatmul.mubr.msk.bf16.gmra.mrb[136].mxu1 %vm7319_vm7, %v6556_v12 }
 0x27e   : > { %4656 = vmatmul.mubr.msk.bf16.gmra.mrb[176].mxu0 %vm7319_vm7, %v6556_v12  ;;  %4450 = vmatprep.mubr.msk.bf16.mxu1 %vm7353_vm12, %v6594_v63  ;;  %v9361_v12 = vmov 0 }
 0x27f   : > { %4659 = vmatprep.mubr.msk.bf16.mxu0 %vm7353_vm12, %v6594_v63  ;;  %v9362_v12 = vsel %vm7387_vm8, 4294967295, %v9361_v12  ;;  %v7392_v63 = vadd.s32 %v6328_v15, %v1345_v11  ;;  %v1347_v11 = vadd.s32 432, %v6314_v9 }
 0x280   : > { %9363 = vst [vmem:[#allocation87_spill] sm:$0xff] %v9362_v12  ;;  %v7463_v12 = vadd.s32 %v6328_v15, %v1350_v62 }
 0x281   : > { %9364 = vst [vmem:[#allocation88_spill] sm:$0xff] %v7392_v63  ;;  %vm9128_vm14 = vcmp.lt.s32.totalorder %v7392_v63, %v6340_v22 }
 0x282   : > { %vm7421_vm9 = vmpackc.low %vm9127_vm15, %vm9128_vm14  ;;  %vm9136_vm14 = vcmp.lt.s32.totalorder %v7429_v28, %v6340_v22  ;;  %9375 = vst [vmem:[#allocation95_spill] sm:$0xff] %v7463_v12 }
 0x285   : > { %4453 = vmatmul.mubr.msk.bf16.gmra.mrb[140].mxu1 %vm7353_vm12, %v6586_v56 }
 0x286   : > { %4662 = vmatmul.mubr.msk.bf16.gmra.mrb[180].mxu0 %vm7353_vm12, %v6586_v56  ;;  %4456 = vmatprep.mubr.msk.bf16.mxu1 %vm7387_vm8, %v6640_v61  ;;  %v9366_v56 = vmov 0 }
 0x287   : > { %4665 = vmatprep.mubr.msk.bf16.mxu0 %vm7387_vm8, %v6640_v61  ;;  %v9367_v56 = vsel %vm7421_vm9, 4294967295, %v9366_v56  ;;  %v7426_v61 = vadd.s32 %v6328_v15, %v1347_v11  ;;  %v1349_v11 = vadd.s32 448, %v6314_v9 }
 0x288   : > { %9368 = vst [vmem:[#allocation90_spill] sm:$0xff] %v9367_v56 }
 0x289   : > { %9369 = vst [vmem:[#allocation91_spill] sm:$0xff] %v7426_v61  ;;  %vm9137_vm15 = vcmp.lt.s32.totalorder %v7426_v61, %v6340_v22 }
 0x28a   : > { %vm7455_vm5 = vmpackc.low %vm9136_vm14, %vm9137_vm15  ;;  %vm9153_vm15 = vcmp.lt.s32.totalorder %v7463_v12, %v6340_v22  ;;  %v9381_v12 = vmov 0 }
 0x28d   : > { %4459 = vmatmul.mubr.msk.bf16.gmra.mrb[144].mxu1 %vm7387_vm8, %v6632_v53 }
 0x28e   : > { %4668 = vmatmul.mubr.msk.bf16.gmra.mrb[184].mxu0 %vm7387_vm8, %v6632_v53  ;;  %4462 = vmatprep.mubr.msk.bf16.mxu1 %vm7421_vm9, %v6686_v1  ;;  %v9371_v53 = vmov 0 }
 0x28f   : > { %4671 = vmatprep.mubr.msk.bf16.mxu0 %vm7421_vm9, %v6686_v1  ;;  %v9372_v53 = vsel %vm7455_vm5, 4294967295, %v9371_v53  ;;  %v7460_v1 = vadd.s32 %v6328_v15, %v1349_v11  ;;  %v7480_v11 = vld [vmem:[%s9020_s7] ss:$0 sm:$0xff] }
 0x290   : > { %9373 = vst [vmem:[#allocation93_spill] sm:$0xff] %v9372_v53 }
 0x291   : > { %9374 = vst [vmem:[#allocation94_spill] sm:$0xff] %v7460_v1  ;;  %vm9154_vm14 = vcmp.lt.s32.totalorder %v7460_v1, %v6340_v22 }
 0x292   : > { %vm7495_vm3 = vmpackc.low %vm9153_vm15, %vm9154_vm14  ;;  %s5007_s9 = spop %5006 }
 0x293   : > { %v9377_v49 = vsel %vm7495_vm3, 4294967295, %v9376_v49 }
 0x294   : > { %9378 = vst [vmem:[#allocation96_spill] sm:$0xff] %v9377_v49 }
 0x295   : > { %4465 = vmatmul.mubr.msk.bf16.gmra.mrb[148].mxu1 %vm7421_vm9, %v6678_v55 }
 0x296   : > { %4674 = vmatmul.mubr.msk.bf16.gmra.mrb[188].mxu0 %vm7421_vm9, %v6678_v55  ;;  %4468 = vmatprep.mubr.msk.bf16.mxu1 %vm7455_vm5, %v6732_v6  ;;  %v1351_v55 = vadd.s32 464, %v6314_v9 }
 0x297   : > { %4677 = vmatprep.mubr.msk.bf16.mxu0 %vm7455_vm5, %v6732_v6 }
 0x298   : > { %v1977_v62 = vpop.f32.mrb[44].mxu1 }
 0x299   : > { %v2465_v56 = vpop.f32.mrb[84].mxu0  ;;  %v1979_v50 = vpop.f32.mrb[45].mxu1 }
 0x29a   : > { %v2466_v6 = vadd.f32 %v7480_v11, %v2465_v56  ;;  %v2467_v54 = vpop.f32.mrb[85].mxu0  ;;  %v1980_v33 = vpop.f32.mrb[46].mxu1  ;;  %v7501_v56 = vadd.s32 %v6328_v15, %v1351_v55  ;;  %v1353_v55 = vadd.s32 480, %v6314_v9 }
 0x29b   : > { %v2468_v38 = vpop.f32.mrb[86].mxu0  ;;  %v1982_v13 = vpop.f32.mrb[47].mxu1  ;;  %v7504_v54 = vadd.s32 %v6328_v15, %v1352_v48 }
 0x29c   : > { %v4705_v47 = vmul.f32 -1.442695, %v2466_v6  ;;  %v2469_v28 = vadd.f32 %v7480_v11, %v2468_v38  ;;  %v2470_v50 = vpop.f32.mrb[87].mxu0  ;;  %9379 = vst [vmem:[#allocation97_spill] sm:$0xff] %v7501_v56  ;;  %vm9165_vm15 = vcmp.lt.s32.totalorder %v7501_v56, %v6340_v22 }
 0x29d   : > { %9380 = vst [vmem:[#allocation98_spill] sm:$0xff] %v7504_v54  ;;  %4471 = vmatmul.mubr.msk.bf16.gmra.mrb[152].mxu1 %vm7455_vm5, %v6724_v5  ;;  %vm9164_vm14 = vcmp.lt.s32.totalorder %v7504_v54, %v6340_v22 }
 0x29e   : > { %5176 = vpow2.f32 %v4705_v47  ;;  %v4706_v13 = vmul.f32 -1.442695, %v2469_v28  ;;  %4680 = vmatmul.mubr.msk.bf16.gmra.mrb[192].mxu0 %vm7455_vm5, %v6724_v5  ;;  %4474 = vmatprep.mubr.msk.bf16.mxu1 %vm7495_vm3, %v6783_v27  ;;  %v1354_v28 = vadd.s32 488, %v6314_v9  ;;  %vm7536_vm2 = vmpackc.low %vm9164_vm14, %vm9165_vm15 }
 0x29f   : > { %4683 = vmatprep.mubr.msk.bf16.mxu0 %vm7495_vm3, %v6783_v27  ;;  %v7528_v27 = vld [vmem:[%s9018_s5] ss:$0 sm:$0xff]  ;;  %v9382_v12 = vsel %vm7536_vm2, 4294967295, %v9381_v12 }
 0x2a0   : > { %5178 = vpow2.f32 %v4706_v13  ;;  %v1985_v6 = vpop.f32.mrb[48].mxu1  ;;  %9383 = vst [vmem:[#allocation99_spill] sm:$0xff] %v9382_v12  ;;  %v7545_v61 = vadd.s32 %v6328_v15, %v1354_v28 }
 0x2a1   : > { %v2473_v47 = vpop.f32.mrb[88].mxu0  ;;  %v1987_v38 = vpop.f32.mrb[49].mxu1 }
 0x2a2   : > { %v2474_v48 = vadd.f32 %v7480_v11, %v2473_v47  ;;  %v2475_v50 = vpop.f32.mrb[89].mxu0  ;;  %v1988_v5 = vpop.f32.mrb[50].mxu1  ;;  %v7541_v47 = vadd.s32 %v6328_v15, %v1353_v55  ;;  %9385 = vst [vmem:[#allocation101_spill] sm:$0xff] %v7545_v61  ;;  %v1981_v55 = vadd.f32 %v7528_v27, %v1980_v33  ;;  %vm9175_vm15 = vcmp.lt.s32.totalorder %v7545_v61, %v6340_v22 }
 0x2a3   : > { %v2476_v13 = vpop.f32.mrb[90].mxu0  ;;  %v1990_v53 = vpop.f32.mrb[51].mxu1 }
 0x2a4   : > { %9384 = vst [vmem:[#allocation100_spill] sm:$0xff] %v7541_v47  ;;  %v4707_v38 = vmul.f32 -1.442695, %v2474_v48  ;;  %v2477_v50 = vadd.f32 %v7480_v11, %v2476_v13  ;;  %v2478_v1 = vpop.f32.mrb[91].mxu0  ;;  %v1978_v53 = vadd.f32 %v7528_v27, %v1977_v62  ;;  %vm9176_vm14 = vcmp.lt.s32.totalorder %v7541_v47, %v6340_v22 }
 0x2a5   : > { %4477 = vmatmul.mubr.msk.bf16.gmra.mrb[156].mxu1 %vm7495_vm3, %v6775_v46  ;;  %v1355_v1 = vadd.s32 496, %v6314_v9  ;;  %v1356_v48 = vadd.s32 504, %v6314_v9 }
 0x2a6   : > { %5180 = vpow2.f32 %v4707_v38  ;;  %v4708_v54 = vmul.f32 -1.442695, %v2477_v50  ;;  %4686 = vmatmul.mubr.msk.bf16.gmra.mrb[196].mxu0 %vm7495_vm3, %v6775_v46  ;;  %4480 = vmatprep.mubr.msk.bf16.mxu1 %vm7536_vm2, %v6831_v24  ;;  %vm7574_vm3 = vmpackc.low %vm9175_vm15, %vm9176_vm14 }
 0x2a7   : > { %4689 = vmatprep.mubr.msk.bf16.mxu0 %vm7536_vm2, %v6831_v24 }
 0x2a8   : > { %v5177_v62 = vpop.eup %5176  ;;  %5182 = vpow2.f32 %v4708_v54  ;;  %v1993_v28 = vpop.f32.mrb[52].mxu1  ;;  %v9386_v54 = vmov 0 }
 0x2a9   : > { %v2912_v13 = vadd.f32 1.0, %v5177_v62  ;;  %v2481_v38 = vpop.f32.mrb[92].mxu0  ;;  %v1995_v50 = vpop.f32.mrb[53].mxu1  ;;  %5184 = vtanh.f32 %v1978_v53  ;;  %v9387_v54 = vsel %vm7574_vm3, 4294967295, %v9386_v54  ;;  %v7579_v53 = vadd.s32 %v6328_v15, %v1355_v1 }
 0x2aa   : > { %v5179_v46 = vpop.eup %5178  ;;  %v2482_v24 = vadd.f32 %v7480_v11, %v2481_v38  ;;  %v2483_v49 = vpop.f32.mrb[93].mxu0  ;;  %9388 = vst [vmem:[#allocation102_spill] sm:$0xff] %v9387_v54  ;;  %v1986_v38 = vadd.f32 %v7528_v27, %v1985_v6 }
 0x2ab   : > { %v1996_v56 = vpop.f32.mrb[54].mxu1  ;;  %5186 = vrcp.f32 %v2912_v13  ;;  %v2913_v21 = vadd.f32 1.0, %v5179_v46  ;;  %v2484_v63 = vpop.f32.mrb[94].mxu0  ;;  %9389 = vst [vmem:[#allocation103_spill] sm:$0xff] %v7579_v53  ;;  %v7583_v13 = vadd.s32 %v6328_v15, %v1356_v48  ;;  %vm9198_vm15 = vcmp.lt.s32.totalorder %v7579_v53, %v6340_v22 }
 0x2ac   : > { %v1998_v33 = vpop.f32.mrb[55].mxu1  ;;  %5188 = vtanh.f32 %v1981_v55  ;;  %v4709_v49 = vmul.f32 -1.442695, %v2482_v24  ;;  %v2485_v62 = vadd.f32 %v7480_v11, %v2484_v63  ;;  %v2486_v46 = vpop.f32.mrb[95].mxu0  ;;  %v1989_v63 = vadd.f32 %v7528_v27, %v1988_v5 }
 0x2ad   : > { %9390 = vst [vmem:[#allocation104_spill] sm:$0xff] %v7583_v13  ;;  %5190 = vrcp.f32 %v2913_v21  ;;  %4483 = vmatmul.mubr.msk.bf16.gmra.mrb[160].mxu1 %vm7536_vm2, %v6823_v7  ;;  %vm9196_vm14 = vcmp.lt.s32.totalorder %v7583_v13, %v6340_v22 }
 0x2ae   : > { %5192 = vpow2.f32 %v4709_v49  ;;  %v4710_v50 = vmul.f32 -1.442695, %v2485_v62  ;;  %4692 = vmatmul.mubr.msk.bf16.gmra.mrb[200].mxu0 %vm7536_vm2, %v6823_v7  ;;  %4486 = vmatprep.mubr.msk.bf16.mxu1 %vm7574_vm3, %v6850_v25  ;;  %vm7612_vm2 = vmpackc.low %vm9196_vm14, %vm9198_vm15  ;;  %vm9394_vm14 = vcmp.lt.s32.totalorder %v6334_v18, %v6340_v22  ;;  %vm9395_vm15 = vcmp.lt.s32.totalorder %v6337_v19, %v6340_v22 }
 0x2af   : > { %4695 = vmatprep.mubr.msk.bf16.mxu0 %vm7574_vm3, %v6850_v25 }
 0x2b0   : > { %v5181_v15 = vpop.eup %5180  ;;  %5194 = vpow2.f32 %v4710_v50  ;;  %v7599_v24 = vpop.f32.mrb[56].mxu1  ;;  %v9391_v50 = vmov 0 }
 0x2b1   : > { %v2914_v21 = vadd.f32 1.0, %v5181_v15  ;;  %v2489_v6 = vpop.f32.mrb[96].mxu0  ;;  %v2003_v1 = vpop.f32.mrb[57].mxu1  ;;  %5196 = vtanh.f32 %v1986_v38  ;;  %v9392_v50 = vsel %vm7612_vm2, 4294967295, %v9391_v50 }
 0x2b2   : > { %v5183_v55 = vpop.eup %5182  ;;  %v2490_v48 = vadd.f32 %v7480_v11, %v2489_v6  ;;  %v2491_v33 = vpop.f32.mrb[97].mxu0  ;;  %9393 = vst [vmem:[#allocation105_spill] sm:$0xff] %v9392_v50 }
 0x2b3   : > { %v2004_v49 = vpop.f32.mrb[58].mxu1  ;;  %5198 = vrcp.f32 %v2914_v21  ;;  %v2915_v5 = vadd.f32 1.0, %v5183_v55  ;;  %v2492_v62 = vpop.f32.mrb[98].mxu0  ;;  %v7623_v55 = vld [vmem:[%s9021_s8] ss:$0 sm:$0xff] }
 0x2b4   : > { %v2006_v46 = vpop.f32.mrb[59].mxu1  ;;  %v5185_v15 = vpop.eup %5184  ;;  %5200 = vtanh.f32 %v1989_v63  ;;  %v4711_v38 = vmul.f32 -1.442695, %v2490_v48  ;;  %v2493_v6 = vadd.f32 %v7480_v11, %v2492_v62 }
 0x2b5   : > { %v2494_v1 = vpop.f32.mrb[99].mxu0  ;;  %v5187_v21 = vpop.eup %5186  ;;  %5202 = vrcp.f32 %v2915_v5  ;;  %4489 = vmatmul.mubr.msk.bf16.gmra.mrb[164].mxu1 %vm7574_vm3, %v6847_v43  ;;  %v1994_v46 = vadd.f32 %v7528_v27, %v1993_v28 }
 0x2b6   : > { %v5189_v33 = vpop.eup %5188  ;;  %5204 = vpow2.f32 %v4711_v38  ;;  %v4712_v63 = vmul.f32 -1.442695, %v2493_v6  ;;  %4698 = vmatmul.mubr.msk.bf16.gmra.mrb[204].mxu0 %vm7574_vm3, %v6847_v43  ;;  %4492 = vmatprep.mubr.msk.bf16.mxu1 %vm7612_vm2, %v6883_v34  ;;  %v3104_v48 = vmul.f32 %v5187_v21, %v5185_v15  ;;  %v1997_v1 = vadd.f32 %v7528_v27, %v1996_v56 }
 0x2b7   : > { %v5191_v5 = vpop.eup %5190  ;;  %4701 = vmatprep.mubr.msk.bf16.mxu0 %vm7612_vm2, %v6883_v34 }
 0x2b8   : > { %v5193_v62 = vpop.eup %5192  ;;  %5206 = vpow2.f32 %v4712_v63  ;;  %v2009_v28 = vpop.f32.mrb[60].mxu1  ;;  %v3175_v38 = vmul.f32 %v7623_v55, %v3104_v48  ;;  %v3105_v6 = vmul.f32 %v5191_v5, %v5189_v33 }
 0x2b9   : > { %v2916_v9 = vadd.f32 1.0, %v5193_v62  ;;  %v2497_v43 = vpop.f32.mrb[100].mxu0  ;;  %v2011_v54 = vpop.f32.mrb[61].mxu1  ;;  %5208 = vtanh.f32 %v1994_v46 }
 0x2ba   : > { %v5195_v25 = vpop.eup %5194  ;;  %v2498_v15 = vadd.f32 %v7480_v11, %v2497_v43  ;;  %v2499_v21 = vpop.f32.mrb[101].mxu0  ;;  %3239 = vadd.xlane.f32.xlu0 %v3175_v38  ;;  %v3176_v5 = vmul.f32 %v7623_v55, %v3105_v6 }
 0x2bb   : > { %v2012_v7 = vpop.f32.mrb[62].mxu1  ;;  %5210 = vrcp.f32 %v2916_v9  ;;  %v2917_v34 = vadd.f32 1.0, %v5195_v25  ;;  %v2500_v12 = vpop.f32.mrb[102].mxu0  ;;  %v2002_v9 = vadd.f32 %v7528_v27, %v7599_v24 }
 0x2bc   : > { %v2014_v13 = vpop.f32.mrb[63].mxu1  ;;  %v5197_v56 = vpop.eup %5196  ;;  %5212 = vtanh.f32 %v1997_v1  ;;  %v4713_v63 = vmul.f32 -1.442695, %v2498_v15  ;;  %v2501_v48 = vadd.f32 %v7480_v11, %v2500_v12 }
 0x2bd   : > { %v2502_v33 = vpop.f32.mrb[103].mxu0  ;;  %v5199_v54 = vpop.eup %5198  ;;  %5214 = vrcp.f32 %v2917_v34  ;;  %4495 = vmatmul.mubr.msk.bf16.gmra.mrb[168].mxu1 %vm7612_vm2, %v6870_v3  ;;  %v2005_v34 = vadd.f32 %v7528_v27, %v2004_v49 }
 0x2be   : > { %v5201_v43 = vpop.eup %5200  ;;  %5216 = vpow2.f32 %v4713_v63  ;;  %v4714_v25 = vmul.f32 -1.442695, %v2501_v48  ;;  %4704 = vmatmul.mubr.msk.bf16.gmra.mrb[208].mxu0 %vm7612_vm2, %v6870_v3  ;;  %3241 = vadd.xlane.f32.xlu0 %v3176_v5  ;;  %v3106_v12 = vmul.f32 %v5199_v54, %v5197_v56  ;;  %vm9398_vm2 = vcmp.lt.s32.totalorder %v6400_v58, %v6340_v22 }
 0x2bf   : > { %v5203_v13 = vpop.eup %5202 }
 0x2c0   : > { %v5205_v46 = vpop.eup %5204  ;;  %5218 = vpow2.f32 %v4714_v25  ;;  %v2017_v62 = vpop.f32.mrb[64].mxu1  ;;  %v3177_v1 = vmul.f32 %v7623_v55, %v3106_v12  ;;  %v3107_v38 = vmul.f32 %v5203_v13, %v5201_v43 }
 0x2c1   : > { %v2918_v6 = vadd.f32 1.0, %v5205_v46  ;;  %v2505_v15 = vpop.f32.mrb[104].mxu0  ;;  %v2019_v24 = vpop.f32.mrb[65].mxu1  ;;  %5220 = vtanh.f32 %v2002_v9 }
 0x2c2   : > { %v5207_v21 = vpop.eup %5206  ;;  %v2506_v63 = vadd.f32 %v7480_v11, %v2505_v15  ;;  %v2507_v48 = vpop.f32.mrb[105].mxu0  ;;  %3243 = vadd.xlane.f32.xlu1 %v3177_v1  ;;  %v3178_v13 = vmul.f32 %v7623_v55, %v3107_v38  ;;  %v2010_v15 = vadd.f32 %v7528_v27, %v2009_v28 }
 0x2c3   : > { %v2020_v33 = vpop.f32.mrb[66].mxu1  ;;  %5222 = vrcp.f32 %v2918_v6  ;;  %v2919_v56 = vadd.f32 1.0, %v5207_v21  ;;  %v2508_v5 = vpop.f32.mrb[106].mxu0  ;;  %v2013_v48 = vadd.f32 %v7528_v27, %v2012_v7 }
 0x2c4   : > { %v2022_v54 = vpop.f32.mrb[67].mxu1  ;;  %v5209_v49 = vpop.eup %5208  ;;  %5224 = vtanh.f32 %v2005_v34  ;;  %v4715_v25 = vmul.f32 -1.442695, %v2506_v63  ;;  %v2509_v12 = vadd.f32 %v7480_v11, %v2508_v5 }
 0x2c5   : > { %v2510_v43 = vpop.f32.mrb[107].mxu0  ;;  %v5211_v46 = vpop.eup %5210  ;;  %5226 = vrcp.f32 %v2919_v56 }
 0x2c6   : > { %v5213_v9 = vpop.eup %5212  ;;  %5228 = vpow2.f32 %v4715_v25  ;;  %v4716_v1 = vmul.f32 -1.442695, %v2509_v12  ;;  %3245 = vadd.xlane.f32.xlu1 %v3178_v13  ;;  %v3108_v6 = vmul.f32 %v5211_v46, %v5209_v49 }
 0x2c7   : > { %v5215_v24 = vpop.eup %5214 }
 0x2c8   : > { %v5217_v21 = vpop.eup %5216  ;;  %5230 = vpow2.f32 %v4716_v1  ;;  %v2025_v34 = vpop.f32.mrb[68].mxu1  ;;  %v3179_v63 = vmul.f32 %v7623_v55, %v3108_v6  ;;  %v3109_v5 = vmul.f32 %v5215_v24, %v5213_v9 }
 0x2c9   : > { %v2920_v54 = vadd.f32 1.0, %v5217_v21  ;;  %v2513_v38 = vpop.f32.mrb[108].mxu0  ;;  %v2027_v43 = vpop.f32.mrb[69].mxu1  ;;  %5232 = vtanh.f32 %v2010_v15 }
 0x2ca   : > { %v5219_v56 = vpop.eup %5218  ;;  %v2514_v28 = vadd.f32 %v7480_v11, %v2513_v38  ;;  %v2515_v25 = vpop.f32.mrb[109].mxu0  ;;  %3247 = vadd.xlane.f32.xlu0 %v3179_v63  ;;  %v3180_v49 = vmul.f32 %v7623_v55, %v3109_v5  ;;  %v2018_v38 = vadd.f32 %v7528_v27, %v2017_v62 }
 0x2cb   : > { %v2028_v12 = vpop.f32.mrb[70].mxu1  ;;  %5234 = vrcp.f32 %v2920_v54  ;;  %v2921_v13 = vadd.f32 1.0, %v5219_v56  ;;  %v2516_v7 = vpop.f32.mrb[110].mxu0  ;;  %v2021_v56 = vadd.f32 %v7528_v27, %v2020_v33 }
 0x2cc   : > { %v2030_v46 = vpop.f32.mrb[71].mxu1  ;;  %v5221_v1 = vpop.eup %5220  ;;  %5236 = vtanh.f32 %v2013_v48  ;;  %v4717_v6 = vmul.f32 -1.442695, %v2514_v28  ;;  %v2517_v9 = vadd.f32 %v7480_v11, %v2516_v7  ;;  %3249 = vadd.xlane.f32.xlu1 %v3180_v49 }
 0x2cd   : > { %v2518_v24 = vpop.f32.mrb[111].mxu0  ;;  %v5223_v21 = vpop.eup %5222  ;;  %5238 = vrcp.f32 %v2921_v13 }
 0x2ce   : > { %v5225_v15 = vpop.eup %5224  ;;  %5240 = vpow2.f32 %v4717_v6  ;;  %v4718_v63 = vmul.f32 -1.442695, %v2517_v9  ;;  %v3110_v43 = vmul.f32 %v5223_v21, %v5221_v1 }
 0x2cf   : > { %v5227_v5 = vpop.eup %5226 }
 0x2d0   : > { %v5229_v54 = vpop.eup %5228  ;;  %5242 = vpow2.f32 %v4718_v63  ;;  %v2033_v25 = vpop.f32.mrb[72].mxu1  ;;  %v3181_v48 = vmul.f32 %v7623_v55, %v3110_v43  ;;  %v3111_v28 = vmul.f32 %v5227_v5, %v5225_v15 }
 0x2d1   : > { %v2922_v7 = vadd.f32 1.0, %v5229_v54  ;;  %v2521_v46 = vpop.f32.mrb[112].mxu0  ;;  %v2035_v49 = vpop.f32.mrb[73].mxu1  ;;  %5244 = vtanh.f32 %v2018_v38 }
 0x2d2   : > { %v5231_v24 = vpop.eup %5230  ;;  %v2522_v13 = vadd.f32 %v7480_v11, %v2521_v46  ;;  %v2523_v62 = vpop.f32.mrb[113].mxu0  ;;  %3251 = vadd.xlane.f32.xlu0 %v3181_v48  ;;  %v3182_v1 = vmul.f32 %v7623_v55, %v3111_v28  ;;  %v2026_v46 = vadd.f32 %v7528_v27, %v2025_v34 }
 0x2d3   : > { %v2036_v6 = vpop.f32.mrb[74].mxu1  ;;  %5246 = vrcp.f32 %v2922_v7  ;;  %v2923_v9 = vadd.f32 1.0, %v5231_v24  ;;  %v2524_v33 = vpop.f32.mrb[114].mxu0  ;;  %v2029_v24 = vadd.f32 %v7528_v27, %v2028_v12 }
 0x2d4   : > { %v2038_v21 = vpop.f32.mrb[75].mxu1  ;;  %v5233_v63 = vpop.eup %5232  ;;  %5248 = vtanh.f32 %v2021_v56  ;;  %v4719_v43 = vmul.f32 -1.442695, %v2522_v13  ;;  %v2525_v15 = vadd.f32 %v7480_v11, %v2524_v33  ;;  %3253 = vadd.xlane.f32.xlu1 %v3182_v1 }
 0x2d5   : > { %v2526_v5 = vpop.f32.mrb[115].mxu0  ;;  %v5235_v54 = vpop.eup %5234  ;;  %5250 = vrcp.f32 %v2923_v9 }
 0x2d6   : > { %v5237_v38 = vpop.eup %5236  ;;  %5252 = vpow2.f32 %v4719_v43  ;;  %v4720_v48 = vmul.f32 -1.442695, %v2525_v15  ;;  %v3112_v49 = vmul.f32 %v5235_v54, %v5233_v63 }
 0x2d7   : > { %v5239_v28 = vpop.eup %5238 }
 0x2d8   : > { %v5241_v7 = vpop.eup %5240  ;;  %5254 = vpow2.f32 %v4720_v48  ;;  %v2041_v62 = vpop.f32.mrb[76].mxu1  ;;  %v3183_v56 = vmul.f32 %v7623_v55, %v3112_v49  ;;  %v3113_v13 = vmul.f32 %v5239_v28, %v5237_v38 }
 0x2d9   : > { %v2924_v33 = vadd.f32 1.0, %v5241_v7  ;;  %v2529_v21 = vpop.f32.mrb[116].mxu0  ;;  %v2043_v1 = vpop.f32.mrb[77].mxu1  ;;  %5256 = vtanh.f32 %v2026_v46 }
 0x2da   : > { %v5243_v5 = vpop.eup %5242  ;;  %v2530_v9 = vadd.f32 %v7480_v11, %v2529_v21  ;;  %v2531_v34 = vpop.f32.mrb[117].mxu0  ;;  %3255 = vadd.xlane.f32.xlu0 %v3183_v56  ;;  %v3184_v63 = vmul.f32 %v7623_v55, %v3113_v13  ;;  %v2034_v21 = vadd.f32 %v7528_v27, %v2033_v25 }
 0x2db   : > { %v2044_v43 = vpop.f32.mrb[78].mxu1  ;;  %5258 = vrcp.f32 %v2924_v33  ;;  %v2925_v15 = vadd.f32 1.0, %v5243_v5  ;;  %v2532_v12 = vpop.f32.mrb[118].mxu0  ;;  %v2037_v5 = vadd.f32 %v7528_v27, %v2036_v6 }
 0x2dc   : > { %v2046_v54 = vpop.f32.mrb[79].mxu1  ;;  %v5245_v48 = vpop.eup %5244  ;;  %5260 = vtanh.f32 %v2029_v24  ;;  %v4721_v49 = vmul.f32 -1.442695, %v2530_v9  ;;  %v2533_v38 = vadd.f32 %v7480_v11, %v2532_v12  ;;  %3257 = vadd.xlane.f32.xlu1 %v3184_v63 }
 0x2dd   : > { %v2534_v28 = vpop.f32.mrb[119].mxu0  ;;  %v5247_v7 = vpop.eup %5246  ;;  %5262 = vrcp.f32 %v2925_v15 }
 0x2de   : > { %v5249_v46 = vpop.eup %5248  ;;  %5264 = vpow2.f32 %v4721_v49  ;;  %v4722_v56 = vmul.f32 -1.442695, %v2533_v38  ;;  %v3114_v1 = vmul.f32 %v5247_v7, %v5245_v48 }
 0x2df   : > { %v5251_v13 = vpop.eup %5250 }
 0x2e0   : > { %v5253_v33 = vpop.eup %5252  ;;  %5266 = vpow2.f32 %v4722_v56  ;;  %v2049_v34 = vpop.f32.mrb[80].mxu1  ;;  %v3185_v24 = vmul.f32 %v7623_v55, %v3114_v1  ;;  %v3115_v9 = vmul.f32 %v5251_v13, %v5249_v46 }
 0x2e1   : > { %v2926_v12 = vadd.f32 1.0, %v5253_v33  ;;  %v2537_v54 = vpop.f32.mrb[120].mxu0  ;;  %v2051_v63 = vpop.f32.mrb[81].mxu1  ;;  %5268 = vtanh.f32 %v2034_v21 }
 0x2e2   : > { %v5255_v28 = vpop.eup %5254  ;;  %v2538_v15 = vadd.f32 %v7480_v11, %v2537_v54  ;;  %v2539_v25 = vpop.f32.mrb[121].mxu0  ;;  %3259 = vadd.xlane.f32.xlu0 %v3185_v24  ;;  %v3186_v48 = vmul.f32 %v7623_v55, %v3115_v9  ;;  %v2042_v54 = vadd.f32 %v7528_v27, %v2041_v62 }
 0x2e3   : > { %v2052_v49 = vpop.f32.mrb[82].mxu1  ;;  %5270 = vrcp.f32 %v2926_v12  ;;  %v2927_v38 = vadd.f32 1.0, %v5255_v28  ;;  %v2540_v6 = vpop.f32.mrb[122].mxu0  ;;  %v2045_v28 = vadd.f32 %v7528_v27, %v2044_v43 }
 0x2e4   : > { %v2054_v7 = vpop.f32.mrb[83].mxu1  ;;  %v5257_v56 = vpop.eup %5256  ;;  %5272 = vtanh.f32 %v2037_v5  ;;  %v4723_v1 = vmul.f32 -1.442695, %v2538_v15  ;;  %v2541_v46 = vadd.f32 %v7480_v11, %v2540_v6  ;;  %3261 = vadd.xlane.f32.xlu1 %v3186_v48 }
 0x2e5   : > { %v2542_v13 = vpop.f32.mrb[123].mxu0  ;;  %v5259_v33 = vpop.eup %5258  ;;  %5274 = vrcp.f32 %v2927_v38 }
 0x2e6   : > { %v5261_v21 = vpop.eup %5260  ;;  %5276 = vpow2.f32 %v4723_v1  ;;  %v4724_v24 = vmul.f32 -1.442695, %v2541_v46  ;;  %v3116_v63 = vmul.f32 %v5259_v33, %v5257_v56 }
 0x2e7   : > { %v5263_v9 = vpop.eup %5262 }
 0x2e8   : > { %v5265_v12 = vpop.eup %5264  ;;  %5278 = vpow2.f32 %v4724_v24  ;;  %v2057_v25 = vpop.f32.mrb[84].mxu1  ;;  %v3187_v5 = vmul.f32 %v7623_v55, %v3116_v63  ;;  %v3117_v15 = vmul.f32 %v5263_v9, %v5261_v21 }
 0x2e9   : > { %v2928_v6 = vadd.f32 1.0, %v5265_v12  ;;  %v2545_v7 = vpop.f32.mrb[124].mxu0  ;;  %v2059_v48 = vpop.f32.mrb[85].mxu1  ;;  %5280 = vtanh.f32 %v2042_v54 }
 0x2ea   : > { %v5267_v13 = vpop.eup %5266  ;;  %v2546_v38 = vadd.f32 %v7480_v11, %v2545_v7  ;;  %v2547_v62 = vpop.f32.mrb[125].mxu0  ;;  %3263 = vadd.xlane.f32.xlu0 %v3187_v5  ;;  %v3188_v56 = vmul.f32 %v7623_v55, %v3117_v15  ;;  %v2050_v7 = vadd.f32 %v7528_v27, %v2049_v34 }
 0x2eb   : > { %v2060_v1 = vpop.f32.mrb[86].mxu1  ;;  %5282 = vrcp.f32 %v2928_v6  ;;  %v2929_v46 = vadd.f32 1.0, %v5267_v13  ;;  %v2548_v43 = vpop.f32.mrb[126].mxu0  ;;  %v2053_v13 = vadd.f32 %v7528_v27, %v2052_v49 }
 0x2ec   : > { %v2062_v33 = vpop.f32.mrb[87].mxu1  ;;  %v5269_v24 = vpop.eup %5268  ;;  %5284 = vtanh.f32 %v2045_v28  ;;  %v4725_v63 = vmul.f32 -1.442695, %v2546_v38  ;;  %v2549_v21 = vadd.f32 %v7480_v11, %v2548_v43  ;;  %3265 = vadd.xlane.f32.xlu1 %v3188_v56 }
 0x2ed   : > { %v2550_v9 = vpop.f32.mrb[127].mxu0  ;;  %v5271_v12 = vpop.eup %5270  ;;  %5286 = vrcp.f32 %v2929_v46 }
 0x2ee   : > { %v5273_v54 = vpop.eup %5272  ;;  %5288 = vpow2.f32 %v4725_v63  ;;  %v4726_v5 = vmul.f32 -1.442695, %v2549_v21  ;;  %v3118_v48 = vmul.f32 %v5271_v12, %v5269_v24 }
 0x2ef   : > { %v5275_v15 = vpop.eup %5274 }
 0x2f0   : > { %v5277_v6 = vpop.eup %5276  ;;  %5290 = vpow2.f32 %v4726_v5  ;;  %v2065_v62 = vpop.f32.mrb[88].mxu1  ;;  %v3189_v28 = vmul.f32 %v7623_v55, %v3118_v48  ;;  %v3119_v38 = vmul.f32 %v5275_v15, %v5273_v54 }
 0x2f1   : > { %v2930_v43 = vadd.f32 1.0, %v5277_v6  ;;  %v2553_v33 = vpop.f32.mrb[128].mxu0  ;;  %v2067_v56 = vpop.f32.mrb[89].mxu1  ;;  %5292 = vtanh.f32 %v2050_v7 }
 0x2f2   : > { %v5279_v9 = vpop.eup %5278  ;;  %v2554_v46 = vadd.f32 %v7480_v11, %v2553_v33  ;;  %v2555_v34 = vpop.f32.mrb[129].mxu0  ;;  %3267 = vadd.xlane.f32.xlu0 %v3189_v28  ;;  %v3190_v24 = vmul.f32 %v7623_v55, %v3119_v38  ;;  %v2058_v33 = vadd.f32 %v7528_v27, %v2057_v25 }
 0x2f3   : > { %v2068_v63 = vpop.f32.mrb[90].mxu1  ;;  %5294 = vrcp.f32 %v2930_v43  ;;  %v2931_v21 = vadd.f32 1.0, %v5279_v9  ;;  %v2556_v49 = vpop.f32.mrb[130].mxu0  ;;  %v2061_v9 = vadd.f32 %v7528_v27, %v2060_v1 }
 0x2f4   : > { %v2070_v12 = vpop.f32.mrb[91].mxu1  ;;  %v5281_v5 = vpop.eup %5280  ;;  %5296 = vtanh.f32 %v2053_v13  ;;  %v4727_v48 = vmul.f32 -1.442695, %v2554_v46  ;;  %v2557_v54 = vadd.f32 %v7480_v11, %v2556_v49  ;;  %3269 = vadd.xlane.f32.xlu1 %v3190_v24 }
 0x2f5   : > { %v2558_v15 = vpop.f32.mrb[131].mxu0  ;;  %v5283_v6 = vpop.eup %5282  ;;  %5298 = vrcp.f32 %v2931_v21 }
 0x2f6   : > { %v5285_v7 = vpop.eup %5284  ;;  %5300 = vpow2.f32 %v4727_v48  ;;  %v4728_v28 = vmul.f32 -1.442695, %v2557_v54  ;;  %v3120_v56 = vmul.f32 %v5283_v6, %v5281_v5 }
 0x2f7   : > { %v5287_v38 = vpop.eup %5286 }
 0x2f8   : > { %v5289_v43 = vpop.eup %5288  ;;  %5302 = vpow2.f32 %v4728_v28  ;;  %v2073_v34 = vpop.f32.mrb[92].mxu1  ;;  %v3191_v13 = vmul.f32 %v7623_v55, %v3120_v56  ;;  %v3121_v46 = vmul.f32 %v5287_v38, %v5285_v7 }
 0x2f9   : > { %v2932_v49 = vadd.f32 1.0, %v5289_v43  ;;  %v2561_v12 = vpop.f32.mrb[132].mxu0  ;;  %v2075_v24 = vpop.f32.mrb[93].mxu1  ;;  %5304 = vtanh.f32 %v2058_v33 }
 0x2fa   : > { %v5291_v15 = vpop.eup %5290  ;;  %v2562_v21 = vadd.f32 %v7480_v11, %v2561_v12  ;;  %v2563_v25 = vpop.f32.mrb[133].mxu0  ;;  %3271 = vadd.xlane.f32.xlu0 %v3191_v13  ;;  %v3192_v5 = vmul.f32 %v7623_v55, %v3121_v46  ;;  %v2066_v12 = vadd.f32 %v7528_v27, %v2065_v62 }
 0x2fb   : > { %v2076_v48 = vpop.f32.mrb[94].mxu1  ;;  %5306 = vrcp.f32 %v2932_v49  ;;  %v2933_v54 = vadd.f32 1.0, %v5291_v15  ;;  %v2564_v1 = vpop.f32.mrb[134].mxu0  ;;  %v2069_v15 = vadd.f32 %v7528_v27, %v2068_v63 }
 0x2fc   : > { %v2078_v6 = vpop.f32.mrb[95].mxu1  ;;  %v5293_v28 = vpop.eup %5292  ;;  %5308 = vtanh.f32 %v2061_v9  ;;  %v4729_v56 = vmul.f32 -1.442695, %v2562_v21  ;;  %v2565_v7 = vadd.f32 %v7480_v11, %v2564_v1  ;;  %3273 = vadd.xlane.f32.xlu1 %v3192_v5 }
 0x2fd   : > { %v2566_v38 = vpop.f32.mrb[135].mxu0  ;;  %v5295_v43 = vpop.eup %5294  ;;  %5310 = vrcp.f32 %v2933_v54 }
 0x2fe   : > { %v5297_v33 = vpop.eup %5296  ;;  %5312 = vpow2.f32 %v4729_v56  ;;  %v4730_v13 = vmul.f32 -1.442695, %v2565_v7  ;;  %v3122_v24 = vmul.f32 %v5295_v43, %v5293_v28 }
 0x2ff   : > { %v5299_v46 = vpop.eup %5298 }
 0x300   : > { %v5301_v49 = vpop.eup %5300  ;;  %5314 = vpow2.f32 %v4730_v13  ;;  %v2081_v25 = vpop.f32.mrb[96].mxu1  ;;  %v3193_v9 = vmul.f32 %v7623_v55, %v3122_v24  ;;  %v3123_v21 = vmul.f32 %v5299_v46, %v5297_v33 }
 0x301   : > { %v2934_v1 = vadd.f32 1.0, %v5301_v49  ;;  %v2569_v6 = vpop.f32.mrb[136].mxu0  ;;  %v2083_v5 = vpop.f32.mrb[97].mxu1  ;;  %5316 = vtanh.f32 %v2066_v12 }
 0x302   : > { %v5303_v38 = vpop.eup %5302  ;;  %v2570_v54 = vadd.f32 %v7480_v11, %v2569_v6  ;;  %v2571_v62 = vpop.f32.mrb[137].mxu0  ;;  %3275 = vadd.xlane.f32.xlu0 %v3193_v9  ;;  %v3194_v28 = vmul.f32 %v7623_v55, %v3123_v21  ;;  %v2074_v6 = vadd.f32 %v7528_v27, %v2073_v34 }
 0x303   : > { %v2084_v56 = vpop.f32.mrb[98].mxu1  ;;  %5318 = vrcp.f32 %v2934_v1  ;;  %v2935_v7 = vadd.f32 1.0, %v5303_v38  ;;  %v2572_v63 = vpop.f32.mrb[138].mxu0  ;;  %v2077_v38 = vadd.f32 %v7528_v27, %v2076_v48 }
 0x304   : > { %v2086_v43 = vpop.f32.mrb[99].mxu1  ;;  %v5305_v13 = vpop.eup %5304  ;;  %5320 = vtanh.f32 %v2069_v15  ;;  %v4731_v24 = vmul.f32 -1.442695, %v2570_v54  ;;  %v2573_v33 = vadd.f32 %v7480_v11, %v2572_v63  ;;  %3277 = vadd.xlane.f32.xlu1 %v3194_v28 }
 0x305   : > { %v2574_v46 = vpop.f32.mrb[139].mxu0  ;;  %v5307_v49 = vpop.eup %5306  ;;  %5322 = vrcp.f32 %v2935_v7 }
 0x306   : > { %v5309_v12 = vpop.eup %5308  ;;  %5324 = vpow2.f32 %v4731_v24  ;;  %v4732_v9 = vmul.f32 -1.442695, %v2573_v33  ;;  %v3124_v5 = vmul.f32 %v5307_v49, %v5305_v13 }
 0x307   : > { %v5311_v21 = vpop.eup %5310 }
 0x308   : > { %v5313_v1 = vpop.eup %5312  ;;  %5326 = vpow2.f32 %v4732_v9  ;;  %v2089_v62 = vpop.f32.mrb[100].mxu1  ;;  %v3195_v15 = vmul.f32 %v7623_v55, %v3124_v5  ;;  %v3125_v54 = vmul.f32 %v5311_v21, %v5309_v12 }
 0x309   : > { %v2936_v63 = vadd.f32 1.0, %v5313_v1  ;;  %v2577_v43 = vpop.f32.mrb[140].mxu0  ;;  %v2091_v28 = vpop.f32.mrb[101].mxu1  ;;  %5328 = vtanh.f32 %v2074_v6 }
 0x30a   : > { %v5315_v46 = vpop.eup %5314  ;;  %v2578_v7 = vadd.f32 %v7480_v11, %v2577_v43  ;;  %v2579_v34 = vpop.f32.mrb[141].mxu0  ;;  %3279 = vadd.xlane.f32.xlu0 %v3195_v15  ;;  %v3196_v13 = vmul.f32 %v7623_v55, %v3125_v54  ;;  %v2082_v43 = vadd.f32 %v7528_v27, %v2081_v25 }
 0x30b   : > { %v2092_v24 = vpop.f32.mrb[102].mxu1  ;;  %5330 = vrcp.f32 %v2936_v63  ;;  %v2937_v33 = vadd.f32 1.0, %v5315_v46  ;;  %v2580_v48 = vpop.f32.mrb[142].mxu0  ;;  %v2085_v46 = vadd.f32 %v7528_v27, %v2084_v56 }
 0x30c   : > { %v2094_v49 = vpop.f32.mrb[103].mxu1  ;;  %v5317_v9 = vpop.eup %5316  ;;  %5332 = vtanh.f32 %v2077_v38  ;;  %v4733_v5 = vmul.f32 -1.442695, %v2578_v7  ;;  %v2581_v12 = vadd.f32 %v7480_v11, %v2580_v48  ;;  %3281 = vadd.xlane.f32.xlu1 %v3196_v13 }
 0x30d   : > { %v2582_v21 = vpop.f32.mrb[143].mxu0  ;;  %v5319_v1 = vpop.eup %5318  ;;  %5334 = vrcp.f32 %v2937_v33 }
 0x30e   : > { %v5321_v6 = vpop.eup %5320  ;;  %5336 = vpow2.f32 %v4733_v5  ;;  %v4734_v15 = vmul.f32 -1.442695, %v2581_v12  ;;  %v3126_v28 = vmul.f32 %v5319_v1, %v5317_v9 }
 0x30f   : > { %v5323_v54 = vpop.eup %5322 }
 0x310   : > { %v5325_v63 = vpop.eup %5324  ;;  %5338 = vpow2.f32 %v4734_v15  ;;  %v2097_v34 = vpop.f32.mrb[104].mxu1  ;;  %v3197_v38 = vmul.f32 %v7623_v55, %v3126_v28  ;;  %v3127_v7 = vmul.f32 %v5323_v54, %v5321_v6  ;;  %v7715_v6 = vld [vmem:[%s9020_s7] ss:$0 sm:$0xff] }
 0x311   : > { %v2938_v48 = vadd.f32 1.0, %v5325_v63  ;;  %v2585_v49 = vpop.f32.mrb[144].mxu0  ;;  %v2099_v13 = vpop.f32.mrb[105].mxu1  ;;  %5340 = vtanh.f32 %v2082_v43 }
 0x312   : > { %v5327_v21 = vpop.eup %5326  ;;  %v2586_v33 = vadd.f32 %v7480_v11, %v2585_v49  ;;  %v2587_v25 = vpop.f32.mrb[145].mxu0  ;;  %3283 = vadd.xlane.f32.xlu0 %v3197_v38  ;;  %v3198_v9 = vmul.f32 %v7623_v55, %v3127_v7  ;;  %v2090_v38 = vadd.f32 %v7528_v27, %v2089_v62  ;;  %v2093_v13 = vadd.f32 %v7528_v27, %v2092_v24 }
 0x313   : > { %v2100_v5 = vpop.f32.mrb[106].mxu1  ;;  %5342 = vrcp.f32 %v2938_v48  ;;  %v2939_v12 = vadd.f32 1.0, %v5327_v21  ;;  %v2588_v56 = vpop.f32.mrb[146].mxu0 }
 0x314   : > { %v2102_v1 = vpop.f32.mrb[107].mxu1  ;;  %v5329_v15 = vpop.eup %5328  ;;  %5344 = vtanh.f32 %v2085_v46  ;;  %v4735_v28 = vmul.f32 -1.442695, %v2586_v33  ;;  %v2589_v43 = vadd.f32 %v7715_v6, %v2588_v56  ;;  %3285 = vadd.xlane.f32.xlu1 %v3198_v9 }
 0x315   : > { %v2590_v11 = vpop.f32.mrb[147].mxu0  ;;  %v5331_v54 = vpop.eup %5330  ;;  %5346 = vrcp.f32 %v2939_v12 }
 0x316   : > { %v5333_v63 = vpop.eup %5332  ;;  %5348 = vpow2.f32 %v4735_v28  ;;  %v4736_v7 = vmul.f32 -1.442695, %v2589_v43  ;;  %v3128_v48 = vmul.f32 %v5331_v54, %v5329_v15 }
 0x317   : > { %v5335_v49 = vpop.eup %5334 }
 0x318   : > { %v5337_v46 = vpop.eup %5336  ;;  %5350 = vpow2.f32 %v4736_v7  ;;  %v2105_v21 = vpop.f32.mrb[108].mxu1  ;;  %v3199_v33 = vmul.f32 %v7623_v55, %v3128_v48  ;;  %v3129_v25 = vmul.f32 %v5335_v49, %v5333_v63 }
 0x319   : > { %v2940_v56 = vadd.f32 1.0, %v5337_v46  ;;  %v2593_v1 = vpop.f32.mrb[148].mxu0  ;;  %v2107_v9 = vpop.f32.mrb[109].mxu1  ;;  %5352 = vtanh.f32 %v2090_v38  ;;  %v7727_v46 = vld [vmem:[%s9018_s5] ss:$0 sm:$0xff] }
 0x31a   : > { %v5339_v11 = vpop.eup %5338  ;;  %v2594_v12 = vadd.f32 %v7715_v6, %v2593_v1  ;;  %v2595_v62 = vpop.f32.mrb[149].mxu0  ;;  %3287 = vadd.xlane.f32.xlu0 %v3199_v33  ;;  %v3200_v15 = vmul.f32 %v7623_v55, %v3129_v25  ;;  %v2098_v33 = vadd.f32 %v7727_v46, %v2097_v34  ;;  %v2101_v9 = vadd.f32 %v7727_v46, %v2100_v5 }
 0x31b   : > { %v2108_v28 = vpop.f32.mrb[110].mxu1  ;;  %5354 = vrcp.f32 %v2940_v56  ;;  %v2941_v43 = vadd.f32 1.0, %v5339_v11  ;;  %v2596_v27 = vpop.f32.mrb[150].mxu0 }
 0x31c   : > { %v2110_v24 = vpop.f32.mrb[111].mxu1  ;;  %v5341_v54 = vpop.eup %5340  ;;  %5356 = vtanh.f32 %v2093_v13  ;;  %v4737_v7 = vmul.f32 -1.442695, %v2594_v12  ;;  %v2597_v63 = vadd.f32 %v7715_v6, %v2596_v27  ;;  %3289 = vadd.xlane.f32.xlu1 %v3200_v15 }
 0x31d   : > { %v2598_v48 = vpop.f32.mrb[151].mxu0  ;;  %v5343_v49 = vpop.eup %5342  ;;  %5358 = vrcp.f32 %v2941_v43 }
 0x31e   : > { %v5345_v38 = vpop.eup %5344  ;;  %5360 = vpow2.f32 %v4737_v7  ;;  %v4738_v25 = vmul.f32 -1.442695, %v2597_v63  ;;  %v3130_v56 = vmul.f32 %v5343_v49, %v5341_v54 }
 0x31f   : > { %v5347_v1 = vpop.eup %5346 }
 0x320   : > { %v5349_v13 = vpop.eup %5348  ;;  %5362 = vpow2.f32 %v4738_v25  ;;  %v2113_v11 = vpop.f32.mrb[112].mxu1  ;;  %v3201_v12 = vmul.f32 %v7623_v55, %v3130_v56  ;;  %v3131_v62 = vmul.f32 %v5347_v1, %v5345_v38 }
 0x321   : > { %v2942_v15 = vadd.f32 1.0, %v5349_v13  ;;  %v2601_v43 = vpop.f32.mrb[152].mxu0  ;;  %v2115_v27 = vpop.f32.mrb[113].mxu1  ;;  %5364 = vtanh.f32 %v2098_v33 }
 0x322   : > { %v5351_v24 = vpop.eup %5350  ;;  %v2602_v48 = vadd.f32 %v7715_v6, %v2601_v43  ;;  %v2603_v34 = vpop.f32.mrb[153].mxu0  ;;  %3291 = vadd.xlane.f32.xlu0 %v3201_v12  ;;  %v3202_v54 = vmul.f32 %v7623_v55, %v3131_v62  ;;  %v2106_v43 = vadd.f32 %v7727_v46, %v2105_v21 }
 0x323   : > { %v2116_v7 = vpop.f32.mrb[114].mxu1  ;;  %5366 = vrcp.f32 %v2942_v15  ;;  %v2943_v63 = vadd.f32 1.0, %v5351_v24  ;;  %v2604_v5 = vpop.f32.mrb[154].mxu0  ;;  %v2109_v24 = vadd.f32 %v7727_v46, %v2108_v28 }
 0x324   : > { %v2118_v49 = vpop.f32.mrb[115].mxu1  ;;  %v5353_v25 = vpop.eup %5352  ;;  %5368 = vtanh.f32 %v2101_v9  ;;  %v4739_v56 = vmul.f32 -1.442695, %v2602_v48  ;;  %v2605_v38 = vadd.f32 %v7715_v6, %v2604_v5  ;;  %3293 = vadd.xlane.f32.xlu1 %v3202_v54 }
 0x325   : > { %v2606_v1 = vpop.f32.mrb[155].mxu0  ;;  %v5355_v13 = vpop.eup %5354  ;;  %5370 = vrcp.f32 %v2943_v63 }
 0x326   : > { %v5357_v33 = vpop.eup %5356  ;;  %5372 = vpow2.f32 %v4739_v56  ;;  %v4740_v12 = vmul.f32 -1.442695, %v2605_v38  ;;  %v3132_v27 = vmul.f32 %v5355_v13, %v5353_v25 }
 0x327   : > { %v5359_v62 = vpop.eup %5358 }
 0x328   : > { %v5361_v15 = vpop.eup %5360  ;;  %5374 = vpow2.f32 %v4740_v12  ;;  %v2121_v34 = vpop.f32.mrb[116].mxu1  ;;  %v3203_v9 = vmul.f32 %v7623_v55, %v3132_v27  ;;  %v3133_v48 = vmul.f32 %v5359_v62, %v5357_v33 }
 0x329   : > { %v2944_v5 = vadd.f32 1.0, %v5361_v15  ;;  %v2609_v49 = vpop.f32.mrb[156].mxu0  ;;  %v2123_v54 = vpop.f32.mrb[117].mxu1  ;;  %5376 = vtanh.f32 %v2106_v43 }
 0x32a   : > { %v5363_v1 = vpop.eup %5362  ;;  %v2610_v63 = vadd.f32 %v7715_v6, %v2609_v49  ;;  %v2611_v21 = vpop.f32.mrb[157].mxu0  ;;  %3295 = vadd.xlane.f32.xlu0 %v3203_v9  ;;  %v3204_v25 = vmul.f32 %v7623_v55, %v3133_v48  ;;  %v2114_v49 = vadd.f32 %v7727_v46, %v2113_v11 }
 0x32b   : > { %v2124_v56 = vpop.f32.mrb[118].mxu1  ;;  %5378 = vrcp.f32 %v2944_v5  ;;  %v2945_v38 = vadd.f32 1.0, %v5363_v1  ;;  %v2612_v28 = vpop.f32.mrb[158].mxu0  ;;  %v2117_v5 = vadd.f32 %v7727_v46, %v2116_v7 }
 0x32c   : > { %v2126_v13 = vpop.f32.mrb[119].mxu1  ;;  %v5365_v12 = vpop.eup %5364  ;;  %5380 = vtanh.f32 %v2109_v24  ;;  %v4741_v27 = vmul.f32 -1.442695, %v2610_v63  ;;  %v2613_v33 = vadd.f32 %v7715_v6, %v2612_v28  ;;  %3297 = vadd.xlane.f32.xlu1 %v3204_v25  ;;  %v7746_v24 = vld [vmem:[%s9021_s8] ss:$0 sm:$0xff] }
 0x32d   : > { %v2614_v62 = vpop.f32.mrb[159].mxu0  ;;  %v5367_v15 = vpop.eup %5366  ;;  %5382 = vrcp.f32 %v2945_v38 }
 0x32e   : > { %v5369_v43 = vpop.eup %5368  ;;  %5384 = vpow2.f32 %v4741_v27  ;;  %v4742_v9 = vmul.f32 -1.442695, %v2613_v33  ;;  %v3134_v54 = vmul.f32 %v5367_v15, %v5365_v12 }
 0x32f   : > { %v5371_v55 = vpop.eup %5370 }
 0x330   : > { %v5373_v48 = vpop.eup %5372  ;;  %5386 = vpow2.f32 %v4742_v9  ;;  %v2129_v1 = vpop.f32.mrb[120].mxu1  ;;  %v3205_v63 = vmul.f32 %v7746_v24, %v3134_v54  ;;  %v3135_v21 = vmul.f32 %v5371_v55, %v5369_v43 }
 0x331   : > { %v2946_v25 = vadd.f32 1.0, %v5373_v48  ;;  %v2617_v38 = vpop.f32.mrb[160].mxu0  ;;  %v2131_v11 = vpop.f32.mrb[121].mxu1  ;;  %5388 = vtanh.f32 %v2114_v49 }
 0x332   : > { %v5375_v28 = vpop.eup %5374  ;;  %v2618_v13 = vadd.f32 %v7715_v6, %v2617_v38  ;;  %v2619_v12 = vpop.f32.mrb[161].mxu0  ;;  %3299 = vadd.xlane.f32.xlu0 %v3205_v63  ;;  %v3206_v27 = vmul.f32 %v7746_v24, %v3135_v21  ;;  %v2122_v38 = vadd.f32 %v7727_v46, %v2121_v34 }
 0x333   : > { %v2132_v7 = vpop.f32.mrb[122].mxu1  ;;  %5390 = vrcp.f32 %v2946_v25  ;;  %v2947_v33 = vadd.f32 1.0, %v5375_v28  ;;  %v2620_v62 = vpop.f32.mrb[162].mxu0  ;;  %v2125_v28 = vadd.f32 %v7727_v46, %v2124_v56 }
 0x334   : > { %v2134_v15 = vpop.f32.mrb[123].mxu1  ;;  %v5377_v9 = vpop.eup %5376  ;;  %5392 = vtanh.f32 %v2117_v5  ;;  %v4743_v54 = vmul.f32 -1.442695, %v2618_v13  ;;  %v2621_v43 = vadd.f32 %v7715_v6, %v2620_v62  ;;  %3301 = vadd.xlane.f32.xlu1 %v3206_v27 }
 0x335   : > { %v2622_v55 = vpop.f32.mrb[163].mxu0  ;;  %v5379_v48 = vpop.eup %5378  ;;  %5394 = vrcp.f32 %v2947_v33 }
 0x336   : > { %v5381_v49 = vpop.eup %5380  ;;  %5396 = vpow2.f32 %v4743_v54  ;;  %v4744_v63 = vmul.f32 -1.442695, %v2621_v43  ;;  %v3136_v11 = vmul.f32 %v5379_v48, %v5377_v9 }
 0x337   : > { %v5383_v21 = vpop.eup %5382 }
 0x338   : > { %v5385_v25 = vpop.eup %5384  ;;  %5398 = vpow2.f32 %v4744_v63  ;;  %v2137_v12 = vpop.f32.mrb[124].mxu1  ;;  %v3207_v5 = vmul.f32 %v7746_v24, %v3136_v11  ;;  %v3137_v13 = vmul.f32 %v5383_v21, %v5381_v49 }
 0x339   : > { %v2948_v62 = vadd.f32 1.0, %v5385_v25  ;;  %v2625_v15 = vpop.f32.mrb[164].mxu0  ;;  %v2139_v27 = vpop.f32.mrb[125].mxu1  ;;  %5400 = vtanh.f32 %v2122_v38 }
 0x33a   : > { %v5387_v55 = vpop.eup %5386  ;;  %v2626_v33 = vadd.f32 %v7715_v6, %v2625_v15  ;;  %v2627_v34 = vpop.f32.mrb[165].mxu0  ;;  %3303 = vadd.xlane.f32.xlu0 %v3207_v5  ;;  %v3208_v9 = vmul.f32 %v7746_v24, %v3137_v13  ;;  %v2130_v15 = vadd.f32 %v7727_v46, %v2129_v1 }
 0x33b   : > { %v2140_v54 = vpop.f32.mrb[126].mxu1  ;;  %5402 = vrcp.f32 %v2948_v62  ;;  %v2949_v43 = vadd.f32 1.0, %v5387_v55  ;;  %v2628_v56 = vpop.f32.mrb[166].mxu0  ;;  %v2133_v55 = vadd.f32 %v7727_v46, %v2132_v7 }
 0x33c   : > { %v2142_v48 = vpop.f32.mrb[127].mxu1  ;;  %v5389_v63 = vpop.eup %5388  ;;  %5404 = vtanh.f32 %v2125_v28  ;;  %v4745_v11 = vmul.f32 -1.442695, %v2626_v33  ;;  %v2629_v49 = vadd.f32 %v7715_v6, %v2628_v56  ;;  %3305 = vadd.xlane.f32.xlu1 %v3208_v9 }
 0x33d   : > { %v2630_v21 = vpop.f32.mrb[167].mxu0  ;;  %v5391_v25 = vpop.eup %5390  ;;  %5406 = vrcp.f32 %v2949_v43 }
 0x33e   : > { %v5393_v38 = vpop.eup %5392  ;;  %5408 = vpow2.f32 %v4745_v11  ;;  %v4746_v5 = vmul.f32 -1.442695, %v2629_v49  ;;  %v3138_v27 = vmul.f32 %v5391_v25, %v5389_v63 }
 0x33f   : > { %v5395_v13 = vpop.eup %5394 }
 0x340   : > { %v5397_v62 = vpop.eup %5396  ;;  %5410 = vpow2.f32 %v4746_v5  ;;  %v2145_v34 = vpop.f32.mrb[128].mxu1  ;;  %v3209_v28 = vmul.f32 %v7746_v24, %v3138_v27  ;;  %v3139_v33 = vmul.f32 %v5395_v13, %v5393_v38 }
 0x341   : > { %v2950_v56 = vadd.f32 1.0, %v5397_v62  ;;  %v2633_v48 = vpop.f32.mrb[168].mxu0  ;;  %v2147_v9 = vpop.f32.mrb[129].mxu1  ;;  %5412 = vtanh.f32 %v2130_v15 }
 0x342   : > { %v5399_v21 = vpop.eup %5398  ;;  %v2634_v43 = vadd.f32 %v7715_v6, %v2633_v48  ;;  %v2635_v1 = vpop.f32.mrb[169].mxu0  ;;  %3307 = vadd.xlane.f32.xlu0 %v3209_v28  ;;  %v3210_v63 = vmul.f32 %v7746_v24, %v3139_v33  ;;  %v2138_v48 = vadd.f32 %v7727_v46, %v2137_v12 }
 0x343   : > { %v2148_v11 = vpop.f32.mrb[130].mxu1  ;;  %5414 = vrcp.f32 %v2950_v56  ;;  %v2951_v49 = vadd.f32 1.0, %v5399_v21  ;;  %v2636_v7 = vpop.f32.mrb[170].mxu0  ;;  %v2141_v21 = vadd.f32 %v7727_v46, %v2140_v54 }
 0x344   : > { %v2150_v25 = vpop.f32.mrb[131].mxu1  ;;  %v5401_v5 = vpop.eup %5400  ;;  %5416 = vtanh.f32 %v2133_v55  ;;  %v4747_v27 = vmul.f32 -1.442695, %v2634_v43  ;;  %v2637_v38 = vadd.f32 %v7715_v6, %v2636_v7  ;;  %3309 = vadd.xlane.f32.xlu1 %v3210_v63 }
 0x345   : > { %v2638_v13 = vpop.f32.mrb[171].mxu0  ;;  %v5403_v62 = vpop.eup %5402  ;;  %5418 = vrcp.f32 %v2951_v49 }
 0x346   : > { %v5405_v15 = vpop.eup %5404  ;;  %5420 = vpow2.f32 %v4747_v27  ;;  %v4748_v28 = vmul.f32 -1.442695, %v2637_v38  ;;  %v3140_v9 = vmul.f32 %v5403_v62, %v5401_v5 }
 0x347   : > { %v5407_v33 = vpop.eup %5406 }
 0x348   : > { %v5409_v56 = vpop.eup %5408  ;;  %5422 = vpow2.f32 %v4748_v28  ;;  %v2153_v1 = vpop.f32.mrb[132].mxu1  ;;  %v3211_v55 = vmul.f32 %v7746_v24, %v3140_v9  ;;  %v3141_v43 = vmul.f32 %v5407_v33, %v5405_v15 }
 0x349   : > { %v2952_v7 = vadd.f32 1.0, %v5409_v56  ;;  %v2641_v25 = vpop.f32.mrb[172].mxu0  ;;  %v2155_v63 = vpop.f32.mrb[133].mxu1  ;;  %5424 = vtanh.f32 %v2138_v48 }
 0x34a   : > { %v5411_v13 = vpop.eup %5410  ;;  %v2642_v49 = vadd.f32 %v7715_v6, %v2641_v25  ;;  %v2643_v12 = vpop.f32.mrb[173].mxu0  ;;  %3311 = vadd.xlane.f32.xlu0 %v3211_v55  ;;  %v3212_v5 = vmul.f32 %v7746_v24, %v3141_v43  ;;  %v2146_v25 = vadd.f32 %v7727_v46, %v2145_v34 }
 0x34b   : > { %v2156_v27 = vpop.f32.mrb[134].mxu1  ;;  %5426 = vrcp.f32 %v2952_v7  ;;  %v2953_v38 = vadd.f32 1.0, %v5411_v13  ;;  %v2644_v54 = vpop.f32.mrb[174].mxu0  ;;  %v2149_v13 = vadd.f32 %v7727_v46, %v2148_v11 }
 0x34c   : > { %v5413_v62 = vpop.eup %5412  ;;  %5428 = vtanh.f32 %v2141_v21  ;;  %v4749_v28 = vmul.f32 -1.442695, %v2642_v49  ;;  %v2645_v15 = vadd.f32 %v7715_v6, %v2644_v54  ;;  %v2158_v9 = vpop.f32.mrb[135].mxu1  ;;  %3313 = vadd.xlane.f32.xlu1 %v3212_v5 }
 0x34d   : > { %v2646_v33 = vpop.f32.mrb[175].mxu0  ;;  %v5415_v56 = vpop.eup %5414  ;;  %5430 = vrcp.f32 %v2953_v38 }
 0x34e   : > { %v5417_v48 = vpop.eup %5416  ;;  %5432 = vpow2.f32 %v4749_v28  ;;  %v4750_v55 = vmul.f32 -1.442695, %v2645_v15  ;;  %v3142_v63 = vmul.f32 %v5415_v56, %v5413_v62 }
 0x34f   : > { %v5419_v43 = vpop.eup %5418 }
 0x350   : > { %v5421_v7 = vpop.eup %5420  ;;  %5434 = vpow2.f32 %v4750_v55  ;;  %v2161_v21 = vpop.f32.mrb[136].mxu1  ;;  %v3213_v49 = vmul.f32 %v7746_v24, %v3142_v63  ;;  %v3143_v12 = vmul.f32 %v5419_v43, %v5417_v48 }
 0x351   : > { %v2954_v54 = vadd.f32 1.0, %v5421_v7  ;;  %v2649_v9 = vpop.f32.mrb[176].mxu0  ;;  %v2163_v5 = vpop.f32.mrb[137].mxu1  ;;  %5436 = vtanh.f32 %v2146_v25 }
 0x352   : > { %v5423_v33 = vpop.eup %5422  ;;  %v2650_v38 = vadd.f32 %v7715_v6, %v2649_v9  ;;  %v2651_v34 = vpop.f32.mrb[177].mxu0  ;;  %3315 = vadd.xlane.f32.xlu0 %v3213_v49  ;;  %v3214_v62 = vmul.f32 %v7746_v24, %v3143_v12  ;;  %v2154_v9 = vadd.f32 %v7727_v46, %v2153_v1 }
 0x353   : > { %v2164_v28 = vpop.f32.mrb[138].mxu1  ;;  %5438 = vrcp.f32 %v2954_v54  ;;  %v2955_v15 = vadd.f32 1.0, %v5423_v33  ;;  %v2652_v11 = vpop.f32.mrb[178].mxu0  ;;  %v2157_v33 = vadd.f32 %v7727_v46, %v2156_v27 }
 0x354   : > { %v5425_v56 = vpop.eup %5424  ;;  %5440 = vtanh.f32 %v2149_v13  ;;  %v4751_v55 = vmul.f32 -1.442695, %v2650_v38  ;;  %v2653_v48 = vadd.f32 %v7715_v6, %v2652_v11  ;;  %v2166_v63 = vpop.f32.mrb[139].mxu1  ;;  %3317 = vadd.xlane.f32.xlu1 %v3214_v62 }
 0x355   : > { %v2654_v43 = vpop.f32.mrb[179].mxu0  ;;  %v5427_v7 = vpop.eup %5426  ;;  %5442 = vrcp.f32 %v2955_v15 }
 0x356   : > { %v5429_v25 = vpop.eup %5428  ;;  %5444 = vpow2.f32 %v4751_v55  ;;  %v4752_v49 = vmul.f32 -1.442695, %v2653_v48  ;;  %v3144_v5 = vmul.f32 %v5427_v7, %v5425_v56 }
 0x357   : > { %v5431_v12 = vpop.eup %5430 }
 0x358   : > { %v5433_v54 = vpop.eup %5432  ;;  %5446 = vpow2.f32 %v4752_v49  ;;  %v2169_v13 = vpop.f32.mrb[140].mxu1  ;;  %v3215_v38 = vmul.f32 %v7746_v24, %v3144_v5  ;;  %v3145_v34 = vmul.f32 %v5431_v12, %v5429_v25 }
 0x359   : > { %v2956_v11 = vadd.f32 1.0, %v5433_v54  ;;  %v2657_v63 = vpop.f32.mrb[180].mxu0  ;;  %5448 = vtanh.f32 %v2154_v9  ;;  %v2171_v43 = vpop.f32.mrb[141].mxu1 }
 0x35a   : > { %v5435_v62 = vpop.eup %5434  ;;  %v2658_v15 = vadd.f32 %v7715_v6, %v2657_v63  ;;  %v2659_v1 = vpop.f32.mrb[181].mxu0  ;;  %3319 = vadd.xlane.f32.xlu0 %v3215_v38  ;;  %v3216_v56 = vmul.f32 %v7746_v24, %v3145_v34  ;;  %v2162_v63 = vadd.f32 %v7727_v46, %v2161_v21  ;;  %v2165_v43 = vadd.f32 %v7727_v46, %v2164_v28 }
 0x35b   : > { %5450 = vrcp.f32 %v2956_v11  ;;  %v2957_v55 = vadd.f32 1.0, %v5435_v62  ;;  %v2172_v48 = vpop.f32.mrb[142].mxu1  ;;  %v2660_v27 = vpop.f32.mrb[182].mxu0 }
 0x35c   : > { %v5437_v7 = vpop.eup %5436  ;;  %5452 = vtanh.f32 %v2157_v33  ;;  %v4753_v49 = vmul.f32 -1.442695, %v2658_v15  ;;  %v2174_v5 = vpop.f32.mrb[143].mxu1  ;;  %3321 = vadd.xlane.f32.xlu1 %v3216_v56  ;;  %v2661_v9 = vadd.f32 %v7715_v6, %v2660_v27 }
 0x35d   : > { %v2662_v25 = vpop.f32.mrb[183].mxu0  ;;  %v5439_v12 = vpop.eup %5438  ;;  %5454 = vrcp.f32 %v2957_v55 }
 0x35e   : > { %v5441_v54 = vpop.eup %5440  ;;  %5456 = vpow2.f32 %v4753_v49  ;;  %v3146_v38 = vmul.f32 %v5439_v12, %v5437_v7  ;;  %v4754_v11 = vmul.f32 -1.442695, %v2661_v9 }
 0x35f   : > { %v5443_v34 = vpop.eup %5442 }
 0x360   : > { %v5445_v62 = vpop.eup %5444  ;;  %v2177_v1 = vpop.f32.mrb[144].mxu1  ;;  %v3217_v33 = vmul.f32 %v7746_v24, %v3146_v38  ;;  %v3147_v15 = vmul.f32 %v5443_v34, %v5441_v54  ;;  %5458 = vpow2.f32 %v4754_v11 }
 0x361   : > { %v2958_v5 = vadd.f32 1.0, %v5445_v62  ;;  %v2665_v56 = vpop.f32.mrb[184].mxu0  ;;  %5460 = vtanh.f32 %v2162_v63  ;;  %v2179_v25 = vpop.f32.mrb[145].mxu1 }
 0x362   : > { %v5447_v55 = vpop.eup %5446  ;;  %v2666_v27 = vadd.f32 %v7715_v6, %v2665_v56  ;;  %v2667_v21 = vpop.f32.mrb[185].mxu0  ;;  %3323 = vadd.xlane.f32.xlu0 %v3217_v33  ;;  %v3218_v7 = vmul.f32 %v7746_v24, %v3147_v15  ;;  %v2170_v56 = vadd.f32 %v7727_v46, %v2169_v13 }
 0x363   : > { %5462 = vrcp.f32 %v2958_v5  ;;  %v2959_v49 = vadd.f32 1.0, %v5447_v55  ;;  %v2180_v12 = vpop.f32.mrb[146].mxu1  ;;  %v2668_v28 = vpop.f32.mrb[186].mxu0 }
 0x364   : > { %v5449_v9 = vpop.eup %5448  ;;  %5464 = vtanh.f32 %v2165_v43  ;;  %v4755_v38 = vmul.f32 -1.442695, %v2666_v27  ;;  %v2182_v54 = vpop.f32.mrb[147].mxu1  ;;  %3325 = vadd.xlane.f32.xlu1 %v3218_v7  ;;  %v2669_v63 = vadd.f32 %v7715_v6, %v2668_v28  ;;  %v2173_v7 = vadd.f32 %v7727_v46, %v2172_v48 }
 0x365   : > { %v2670_v34 = vpop.f32.mrb[187].mxu0  ;;  %v5451_v11 = vpop.eup %5450  ;;  %5466 = vrcp.f32 %v2959_v49 }
 0x366   : > { %v5453_v62 = vpop.eup %5452  ;;  %5468 = vpow2.f32 %v4755_v38  ;;  %v3148_v33 = vmul.f32 %v5451_v11, %v5449_v9  ;;  %v4756_v5 = vmul.f32 -1.442695, %v2669_v63 }
 0x367   : > { %v5455_v15 = vpop.eup %5454 }
 0x368   : > { %v5457_v55 = vpop.eup %5456  ;;  %v7789_v25 = vpop.f32.mrb[148].mxu1  ;;  %v3219_v43 = vmul.f32 %v7746_v24, %v3148_v33  ;;  %v3149_v27 = vmul.f32 %v5455_v15, %v5453_v62  ;;  %5470 = vpow2.f32 %v4756_v5 }
 0x369   : > { %v2960_v21 = vadd.f32 1.0, %v5457_v55  ;;  %v2673_v49 = vpop.f32.mrb[188].mxu0  ;;  %5472 = vtanh.f32 %v2170_v56  ;;  %v2187_v54 = vpop.f32.mrb[149].mxu1 }
 0x36a   : > { %v2674_v28 = vadd.f32 %v7715_v6, %v2673_v49  ;;  %v2675_v13 = vpop.f32.mrb[189].mxu0  ;;  %3327 = vadd.xlane.f32.xlu0 %v3219_v43  ;;  %v3220_v9 = vmul.f32 %v7746_v24, %v3149_v27  ;;  %v5459_v38 = vpop.eup %5458  ;;  %v2178_v43 = vadd.f32 %v7727_v46, %v2177_v1 }
 0x36b   : > { %5474 = vrcp.f32 %v2960_v21  ;;  %v2188_v34 = vpop.f32.mrb[150].mxu1  ;;  %v2676_v11 = vpop.f32.mrb[190].mxu0  ;;  %v2961_v33 = vadd.f32 1.0, %v5459_v38 }
 0x36c   : > { %v5461_v63 = vpop.eup %5460  ;;  %v4757_v62 = vmul.f32 -1.442695, %v2674_v28  ;;  %v2190_v15 = vpop.f32.mrb[151].mxu1  ;;  %3329 = vadd.xlane.f32.xlu1 %v3220_v9  ;;  %5476 = vtanh.f32 %v2173_v7  ;;  %v2677_v56 = vadd.f32 %v7715_v6, %v2676_v11  ;;  %v2181_v9 = vadd.f32 %v7727_v46, %v2180_v12 }
 0x36d   : > { %v2678_v55 = vpop.f32.mrb[191].mxu0  ;;  %v5463_v48 = vpop.eup %5462  ;;  %5478 = vrcp.f32 %v2961_v33 }
 0x36e   : > { %v5465_v5 = vpop.eup %5464  ;;  %v3150_v49 = vmul.f32 %v5463_v48, %v5461_v63  ;;  %5480 = vpow2.f32 %v4757_v62  ;;  %v4758_v21 = vmul.f32 -1.442695, %v2677_v56 }
 0x36f   : > { %v5467_v27 = vpop.eup %5466 }
 0x370   : > { %v5469_v54 = vpop.eup %5468  ;;  %v7797_v13 = vpop.f32.mrb[152].mxu1  ;;  %v3221_v28 = vmul.f32 %v7746_v24, %v3150_v49  ;;  %v3151_v38 = vmul.f32 %v5467_v27, %v5465_v5  ;;  %5482 = vpow2.f32 %v4758_v21 }
 0x371   : > { %v2962_v15 = vadd.f32 1.0, %v5469_v54  ;;  %v2681_v7 = vpop.f32.mrb[192].mxu0  ;;  %5484 = vtanh.f32 %v2178_v43  ;;  %v2195_v33 = vpop.f32.mrb[153].mxu1 }
 0x372   : > { %v2682_v11 = vadd.f32 %v7715_v6, %v2681_v7  ;;  %v2683_v1 = vpop.f32.mrb[193].mxu0  ;;  %3331 = vadd.xlane.f32.xlu0 %v3221_v28  ;;  %v3222_v63 = vmul.f32 %v7746_v24, %v3151_v38  ;;  %v5471_v62 = vpop.eup %5470  ;;  %v2186_v28 = vadd.f32 %v7727_v46, %v7789_v25 }
 0x373   : > { %5486 = vrcp.f32 %v2962_v15  ;;  %v2196_v55 = vpop.f32.mrb[154].mxu1  ;;  %v2684_v48 = vpop.f32.mrb[194].mxu0  ;;  %v2963_v49 = vadd.f32 1.0, %v5471_v62 }
 0x374   : > { %v5473_v56 = vpop.eup %5472  ;;  %v4759_v5 = vmul.f32 -1.442695, %v2682_v11  ;;  %v2198_v27 = vpop.f32.mrb[155].mxu1  ;;  %3333 = vadd.xlane.f32.xlu1 %v3222_v63  ;;  %5488 = vtanh.f32 %v2181_v9  ;;  %v2685_v43 = vadd.f32 %v7715_v6, %v2684_v48  ;;  %v2189_v63 = vadd.f32 %v7727_v46, %v2188_v34 }
 0x375   : > { %v2686_v54 = vpop.f32.mrb[195].mxu0  ;;  %v5475_v12 = vpop.eup %5474  ;;  %5490 = vrcp.f32 %v2963_v49 }
 0x376   : > { %v3152_v21 = vmul.f32 %v5475_v12, %v5473_v56  ;;  %v5477_v7 = vpop.eup %5476  ;;  %5492 = vpow2.f32 %v4759_v5  ;;  %v4760_v38 = vmul.f32 -1.442695, %v2685_v43 }
 0x377   : > { %v5479_v15 = vpop.eup %5478 }
 0x378   : > { %v7806_v33 = vpop.f32.mrb[156].mxu1  ;;  %v3223_v11 = vmul.f32 %v7746_v24, %v3152_v21  ;;  %v5481_v1 = vpop.eup %5480  ;;  %5494 = vpow2.f32 %v4760_v38  ;;  %v3153_v62 = vmul.f32 %v5479_v15, %v5477_v7 }
 0x379   : > { %v2689_v9 = vpop.f32.mrb[196].mxu0  ;;  %v2964_v48 = vadd.f32 1.0, %v5481_v1  ;;  %v2203_v49 = vpop.f32.mrb[157].mxu1  ;;  %5496 = vtanh.f32 %v2186_v28  ;;  %v2194_v28 = vadd.f32 %v7727_v46, %v7797_v13 }
 0x37a   : > { %v2690_v56 = vadd.f32 %v7715_v6, %v2689_v9  ;;  %v2691_v27 = vpop.f32.mrb[197].mxu0  ;;  %3335 = vadd.xlane.f32.xlu0 %v3223_v11  ;;  %v5483_v25 = vpop.eup %5482  ;;  %v3224_v12 = vmul.f32 %v7746_v24, %v3153_v62 }
 0x37b   : > { %v2204_v5 = vpop.f32.mrb[158].mxu1  ;;  %v2692_v54 = vpop.f32.mrb[198].mxu0  ;;  %5498 = vrcp.f32 %v2964_v48  ;;  %v2965_v21 = vadd.f32 1.0, %v5483_v25  ;;  %v2197_v27 = vadd.f32 %v7727_v46, %v2196_v55 }
 0x37c   : > { %v5485_v43 = vpop.eup %5484  ;;  %v4761_v3 = vmul.f32 -1.442695, %v2690_v56  ;;  %v2206_v34 = vpop.f32.mrb[159].mxu1  ;;  %5500 = vtanh.f32 %v2189_v63  ;;  %v2693_v7 = vadd.f32 %v7715_v6, %v2692_v54  ;;  %3337 = vadd.xlane.f32.xlu1 %v3224_v12 }
 0x37d   : > { %v2694_v38 = vpop.f32.mrb[199].mxu0  ;;  %v5487_v50 = vpop.eup %5486  ;;  %5502 = vrcp.f32 %v2965_v21 }
 0x37e   : > { %v3154_v15 = vmul.f32 %v5487_v50, %v5485_v43  ;;  %v5489_v11 = vpop.eup %5488  ;;  %v7813_v1 = vpop.xlane.xlu0 %3239  ;;  %5504 = vpow2.f32 %v4761_v3  ;;  %v4762_v9 = vmul.f32 -1.442695, %v2693_v7 }
 0x37f   : > { %v5491_v62 = vpop.eup %5490  ;;  %v7820_v63 = vpop.xlane.xlu1 %3243 }
 0x380   : > { %v7817_v48 = vpop.f32.mrb[160].mxu1  ;;  %v3225_v56 = vmul.f32 %v7746_v24, %v3154_v15  ;;  %v5493_v49 = vpop.eup %5492  ;;  %5506 = vpow2.f32 %v4762_v9  ;;  %v3155_v25 = vmul.f32 %v5491_v62, %v5489_v11 }
 0x381   : > { %v2697_v50 = vpop.f32.mrb[200].mxu0  ;;  %v2966_v54 = vadd.f32 1.0, %v5493_v49  ;;  %v2211_v43 = vpop.f32.mrb[161].mxu1  ;;  %5508 = vtanh.f32 %v2194_v28  ;;  %v2202_v28 = vadd.f32 %v7727_v46, %v7806_v33 }
 0x382   : > { %v2698_v12 = vadd.f32 %v7715_v6, %v2697_v50  ;;  %v2699_v13 = vpop.f32.mrb[201].mxu0  ;;  %3339 = vadd.xlane.f32.xlu0 %v3225_v56  ;;  %v5495_v3 = vpop.eup %5494  ;;  %v3226_v38 = vmul.f32 %v7746_v24, %v3155_v25 }
 0x383   : > { %v7824_v21 = vpop.f32.mrb[162].mxu1  ;;  %v2700_v34 = vpop.f32.mrb[202].mxu0  ;;  %5510 = vrcp.f32 %v2966_v54  ;;  %v2967_v7 = vadd.f32 1.0, %v5495_v3  ;;  %v2205_v3 = vadd.f32 %v7727_v46, %v2204_v5 }
 0x384   : > { %v4763_v15 = vmul.f32 -1.442695, %v2698_v12  ;;  %v2214_v55 = vpop.f32.mrb[163].mxu1  ;;  %v2702_v9 = vpop.f32.mrb[203].mxu0  ;;  %5512 = vtanh.f32 %v2197_v27  ;;  %v2701_v62 = vadd.f32 %v7715_v6, %v2700_v34  ;;  %3341 = vadd.xlane.f32.xlu1 %v3226_v38 }
 0x385   : > { %v5497_v53 = vpop.eup %5496  ;;  %v3242_v11 = vpop.xlane.xlu0 %3241  ;;  %5514 = vrcp.f32 %v2967_v7 }
 0x386   : > { %v5499_v49 = vpop.eup %5498  ;;  %5516 = vpow2.f32 %v4763_v15  ;;  %v4764_v50 = vmul.f32 -1.442695, %v2701_v62  ;;  %v7830_v12 = vpop.xlane.xlu1 %3245  ;;  %v7837_v62 = vstv %s5007_s9 }
 0x387   : > { %v5501_v56 = vpop.eup %5500  ;;  %v3156_v25 = vmul.f32 %v5499_v49, %v5497_v53 }
 0x388   : > { %v5503_v54 = vpop.eup %5502  ;;  %v7832_v43 = vpop.f32.mrb[164].mxu1  ;;  %5518 = vpow2.f32 %v4764_v50 }
 0x389   : > { %v5505_v13 = vpop.eup %5504  ;;  %v3248_v27 = vpop.xlane.xlu0 %3247  ;;  %v3227_v38 = vmul.f32 %v7746_v24, %v3156_v25  ;;  %v3157_v7 = vmul.f32 %v5503_v54, %v5501_v56  ;;  %5520 = vtanh.f32 %v2202_v28 }
 0x38a   : > { %v2705_v34 = vpop.f32.mrb[204].mxu0  ;;  %v2968_v55 = vadd.f32 1.0, %v5505_v13  ;;  %v2219_v15 = vpop.f32.mrb[165].mxu1 }
 0x38b   : > { %v2706_v33 = vadd.f32 %v7715_v6, %v2705_v34  ;;  %v2707_v53 = vpop.f32.mrb[205].mxu0  ;;  %v5507_v9 = vpop.eup %5506  ;;  %3343 = vadd.xlane.f32.xlu0 %v3227_v38  ;;  %v3228_v5 = vmul.f32 %v7746_v24, %v3157_v7  ;;  %v5693_v6 = vld [vmem:[%s9020_s7] ss:$0 sm:$0xff]  ;;  %v3370_v38 = vadd.f32 %v7837_v62, %v7813_v1  ;;  %v3371_v7 = vadd.f32 %v7837_v62, %v3242_v11 }
 0x38c   : > { %v7839_v49 = vpop.f32.mrb[166].mxu1  ;;  %v2708_v61 = vpop.f32.mrb[206].mxu0  ;;  %5522 = vrcp.f32 %v2968_v55  ;;  %v2969_v50 = vadd.f32 1.0, %v5507_v9  ;;  %v3372_v9 = vadd.f32 %v7837_v62, %v7820_v63  ;;  %v2213_v11 = vadd.f32 %v7727_v46, %v7824_v21 }
 0x38d   : > { %v4765_v47 = vmul.f32 -1.442695, %v2706_v33  ;;  %v2222_v25 = vpop.f32.mrb[167].mxu1  ;;  %v2710_v56 = vpop.f32.mrb[207].mxu0  ;;  %5524 = vtanh.f32 %v2205_v3  ;;  %v2709_v34 = vadd.f32 %v5693_v6, %v2708_v61  ;;  %3345 = vadd.xlane.f32.xlu1 %v3228_v5  ;;  %v2210_v33 = vadd.f32 %v7727_v46, %v7817_v48 }
 0x38e   : > { %v5509_v54 = vpop.eup %5508  ;;  %v3250_v13 = vpop.xlane.xlu1 %3249  ;;  %5526 = vrcp.f32 %v2969_v50  ;;  %v7862_v23 = vsel %vm9394_vm14, %v3370_v38, -inf  ;;  %v7867_v46 = vsel %vm9395_vm15, %v3371_v7, -inf  ;;  %vm9396_vm14 = vcmp.lt.s32.totalorder %v6362_v36, %v6340_v22 }
 0x38f   : > { %v5511_v28 = vpop.eup %5510  ;;  %5528 = vpow2.f32 %v4765_v47  ;;  %v4766_v15 = vmul.f32 -1.442695, %v2709_v34  ;;  %v3375_v61 = vadd.f32 %v7837_v62, %v3250_v13  ;;  %v3252_v5 = vpop.xlane.xlu0 %3251  ;;  %v7876_v19 = vsel %vm9396_vm14, %v3372_v9, -inf }
 0x390   : > { %v5513_v55 = vpop.eup %5512  ;;  %v3158_v3 = vmul.f32 %v5511_v28, %v5509_v54  ;;  %v7853_v25 = vpop.f32.mrb[168].mxu1  ;;  %v3374_v54 = vadd.f32 %v7837_v62, %v3248_v27  ;;  %vm9397_vm15 = vcmp.lt.s32.totalorder %v6403_v59, %v6340_v22  ;;  %v3376_v36 = vadd.f32 %v7837_v62, %v3252_v5  ;;  %v5694_v59 = vld [vmem:[%s9018_s5] ss:$0 sm:$0xff] }
 0x391   : > { %v5515_v53 = vpop.eup %5514  ;;  %5530 = vpow2.f32 %v4766_v15  ;;  %v2713_v50 = vpop.f32.mrb[208].mxu0  ;;  %v7881_v7 = vsel %vm9397_vm15, %v3375_v61, -inf  ;;  %vm9400_vm14 = vcmp.lt.s32.totalorder %v6365_v39, %v6340_v22  ;;  %vm9401_vm15 = vcmp.lt.s32.totalorder %v6428_v20, %v6340_v22 }
 0x392   : > { %v5517_v1 = vpop.eup %5516  ;;  %v3254_v56 = vpop.xlane.xlu1 %3253  ;;  %v3229_v47 = vmul.f32 %v7746_v24, %v3158_v3  ;;  %v3159_v48 = vmul.f32 %v5515_v53, %v5513_v55  ;;  %v2714_v28 = vadd.f32 %v5693_v6, %v2713_v50  ;;  %5532 = vtanh.f32 %v2210_v33 }
 0x393   : > { %v2970_v34 = vadd.f32 1.0, %v5517_v1  ;;  %v2227_v63 = vpop.f32.mrb[169].mxu1  ;;  %v2715_v14 = vpop.f32.mrb[209].mxu0  ;;  %v7888_v50 = vsel %vm9398_vm2, %v3374_v54, -inf  ;;  %v3500_v58 = vmax.f32 %v7867_v46, %v7881_v7  ;;  %vm9399_vm2 = vcmp.lt.s32.totalorder %v6444_v30, %v6340_v22 }
 0x394   : > { %v5519_v13 = vpop.eup %5518  ;;  %3347 = vadd.xlane.f32.xlu0 %v3229_v47  ;;  %v7869_v21 = vpop.f32.mrb[170].mxu1  ;;  %v3230_v55 = vmul.f32 %v7746_v24, %v3159_v48  ;;  %v3377_v14 = vadd.f32 %v7837_v62, %v3254_v56  ;;  %v4767_v3 = vmul.f32 -1.442695, %v2714_v28  ;;  %v3373_v56 = vadd.f32 %v7837_v62, %v7830_v12 }
 0x395   : > { %v2716_v27 = vpop.f32.mrb[210].mxu0  ;;  %5534 = vrcp.f32 %v2970_v34  ;;  %v2971_v15 = vadd.f32 1.0, %v5519_v13  ;;  %v2230_v18 = vpop.f32.mrb[171].mxu1  ;;  %v3499_v12 = vmax.f32 %v7862_v23, %v7876_v19  ;;  %v2221_v34 = vadd.f32 %v5694_v59, %v7839_v49 }
 0x396   : > { %v2718_v38 = vpop.f32.mrb[211].mxu0  ;;  %v5521_v53 = vpop.eup %5520  ;;  %5536 = vtanh.f32 %v2213_v11  ;;  %v2717_v33 = vadd.f32 %v5693_v6, %v2716_v27  ;;  %3349 = vadd.xlane.f32.xlu1 %v3230_v55  ;;  %v2218_v6 = vadd.f32 %v5694_v59, %v7832_v43  ;;  %v7902_v5 = vsel %vm9399_vm2, %v3377_v14, -inf }
 0x397   : > { %v5523_v1 = vpop.eup %5522  ;;  %5538 = vrcp.f32 %v2971_v15  ;;  %v3256_v48 = vpop.xlane.xlu0 %3255  ;;  %v7909_v63 = vsel %vm9400_vm14, %v3373_v56, -inf  ;;  %v3501_v13 = vmax.f32 %v7888_v50, %v3499_v12  ;;  %v7915_v30 = vsel %vm9401_vm15, %v3376_v36, -inf }
 0x398   : > { %v5525_v9 = vpop.eup %5524  ;;  %5540 = vpow2.f32 %v4767_v3  ;;  %v4768_v61 = vmul.f32 -1.442695, %v2717_v33  ;;  %v3160_v11 = vmul.f32 %v5523_v1, %v5521_v53  ;;  %v3378_v49 = vadd.f32 %v7837_v62, %v3256_v48  ;;  %v3258_v3 = vpop.xlane.xlu1 %3257 }
 0x399   : > { %v5527_v47 = vpop.eup %5526  ;;  %v3503_v15 = vmax.f32 %v3500_v58, %v3501_v13  ;;  %v3502_v39 = vmax.f32 %v7909_v63, %v7902_v5  ;;  %vm9402_vm2 = vcmp.lt.s32.totalorder %v6474_v57, %v6340_v22  ;;  %v3379_v36 = vadd.f32 %v7837_v62, %v3258_v3 }
 0x39a   : > { %v5529_v54 = vpop.eup %5528  ;;  %5542 = vpow2.f32 %v4768_v61  ;;  %v3231_v43 = vmul.f32 %v7746_v24, %v3160_v11  ;;  %v3161_v28 = vmul.f32 %v5527_v47, %v5525_v9  ;;  %v7925_v56 = vsel %vm9402_vm2, %v3378_v49, -inf }
 0x39b   : > { %v2972_v27 = vadd.f32 1.0, %v5529_v54  ;;  %v5531_v55 = vpop.eup %5530  ;;  %5544 = vtanh.f32 %v2218_v6  ;;  %v3504_v20 = vmax.f32 %v7915_v30, %v3503_v15  ;;  %v3260_v33 = vpop.xlane.xlu0 %3259  ;;  %v2226_v9 = vadd.f32 %v5694_v59, %v7853_v25 }
 0x39c   : > { %3351 = vadd.xlane.f32.xlu0 %v3231_v43  ;;  %v3232_v14 = vmul.f32 %v7746_v24, %v3161_v28  ;;  %v2973_v18 = vadd.f32 1.0, %v5531_v55  ;;  %v5533_v38 = vpop.eup %5532  ;;  %v3380_v12 = vadd.f32 %v7837_v62, %v3260_v33  ;;  %v2229_v58 = vadd.f32 %v5694_v59, %v7869_v21  ;;  %v3262_v57 = vpop.xlane.xlu1 %3261 }
 0x39d   : > { %5546 = vrcp.f32 %v2972_v27  ;;  %v3505_v11 = vmax.f32 %v3502_v39, %v3504_v20  ;;  %vm9403_vm14 = vcmp.lt.s32.totalorder %v6490_v4, %v6340_v22  ;;  %vm9404_vm15 = vcmp.lt.s32.totalorder %v6520_v41, %v6340_v22 }
 0x39e   : > { %5548 = vtanh.f32 %v2221_v34  ;;  %3353 = vadd.xlane.f32.xlu1 %v3232_v14  ;;  %v7936_v25 = vsel %vm9403_vm14, %v3379_v36, -inf  ;;  %v7942_v55 = vsel %vm9404_vm15, %v3380_v12, -inf  ;;  %v3381_v49 = vadd.f32 %v7837_v62, %v3262_v57 }
 0x39f   : > { %v5535_v53 = vpop.eup %5534  ;;  %5550 = vrcp.f32 %v2973_v18  ;;  %v3506_v34 = vmax.f32 %v7925_v56, %v3505_v11  ;;  %v3264_v27 = vpop.xlane.xlu0 %3263  ;;  %vm9405_vm2 = vcmp.lt.s32.totalorder %v6523_v42, %v6340_v22  ;;  %vm9406_vm14 = vcmp.lt.s32.totalorder %v6580_v51, %v6340_v22 }
 0x3a0   : > { %v5537_v1 = vpop.eup %5536  ;;  %v3162_v6 = vmul.f32 %v5535_v53, %v5533_v38  ;;  %5552 = vtanh.f32 %v2226_v9  ;;  %v3266_v38 = vpop.xlane.xlu1 %3265  ;;  %v7951_v41 = vsel %vm9405_vm2, %v3381_v49, -inf  ;;  %v5695_v53 = vld [vmem:[%s9021_s8] ss:$0 sm:$0xff] }
 0x3a1   : > { %v5539_v61 = vpop.eup %5538  ;;  %v3507_v14 = vmax.f32 %v7936_v25, %v3506_v34  ;;  %v3383_v9 = vadd.f32 %v7837_v62, %v3266_v38  ;;  %v9413_v38 = vld [vmem:[#allocation38_spill] sm:$0xff] }
 0x3a2   : > { %v5541_v47 = vpop.eup %5540  ;;  %v3233_v48 = vmul.f32 %v7746_v24, %v3162_v6  ;;  %v3163_v54 = vmul.f32 %v5539_v61, %v5537_v1 }
 0x3a3   : > { %v2974_v43 = vadd.f32 1.0, %v5541_v47  ;;  %v3508_v18 = vmax.f32 %v7942_v55, %v3507_v14  ;;  %v3268_v1 = vpop.xlane.xlu0 %3267 }
 0x3a4   : > { %v5543_v28 = vpop.eup %5542  ;;  %3355 = vadd.xlane.f32.xlu0 %v3233_v48  ;;  %v3234_v13 = vmul.f32 %v7746_v24, %v3163_v54  ;;  %v3382_v24 = vadd.f32 %v7837_v62, %v3264_v27  ;;  %v3384_v11 = vadd.f32 %v7837_v62, %v3268_v1  ;;  %v9407_v54 = vld [vmem:[#allocation31_spill] sm:$0xff] }
 0x3a5   : > { %5554 = vrcp.f32 %v2974_v43  ;;  %v2975_v21 = vadd.f32 1.0, %v5543_v28  ;;  %v5545_v59 = vpop.eup %5544  ;;  %v3509_v42 = vmax.f32 %v7951_v41, %v3508_v18  ;;  %vm9408_vm15 = vcmp.lt.s32.totalorder %v9407_v54, %v6340_v22  ;;  %v9409_v28 = vld [vmem:[#allocation34_spill] sm:$0xff] }
 0x3a6   : > { %5556 = vtanh.f32 %v2229_v58  ;;  %3357 = vadd.xlane.f32.xlu1 %v3234_v13  ;;  %v7959_v36 = vsel %vm9406_vm14, %v3382_v24, -inf  ;;  %v3270_v58 = vpop.xlane.xlu1 %3269  ;;  %v7968_v51 = vsel %vm9408_vm15, %v3383_v9, -inf  ;;  %vm9410_vm2 = vcmp.lt.s32.totalorder %v9409_v28, %v6340_v22 }
 0x3a7   : > { %v5547_v4 = vpop.eup %5546  ;;  %5558 = vrcp.f32 %v2975_v21  ;;  %v3510_v12 = vmax.f32 %v7959_v36, %v3509_v42  ;;  %v3272_v43 = vpop.xlane.xlu0 %3271  ;;  %v7973_v13 = vsel %vm9410_vm2, %v3384_v11, -inf  ;;  %v3385_v27 = vadd.f32 %v7837_v62, %v3270_v58  ;;  %v9415_v42 = vld [vmem:[#allocation39_spill] sm:$0xff] }
 0x3a8   : > { %v5549_v15 = vpop.eup %5548  ;;  %v3164_v39 = vmul.f32 %v5547_v4, %v5545_v59  ;;  %v3386_v4 = vadd.f32 %v7837_v62, %v3272_v43  ;;  %vm9414_vm15 = vcmp.lt.s32.totalorder %v9413_v38, %v6340_v22  ;;  %vm9416_vm2 = vcmp.lt.s32.totalorder %v9415_v42, %v6340_v22  ;;  %v9419_v43 = vld [vmem:[#allocation43_spill] sm:$0xff] }
 0x3a9   : > { %v5551_v3 = vpop.eup %5550  ;;  %v3511_v49 = vmax.f32 %v7968_v51, %v3510_v12 }
 0x3aa   : > { %v3235_v20 = vmul.f32 %v5695_v53, %v3164_v39  ;;  %v3165_v33 = vmul.f32 %v5551_v3, %v5549_v15  ;;  %v5553_v61 = vpop.eup %5552  ;;  %v3274_v24 = vpop.xlane.xlu1 %3273  ;;  %v9411_v39 = vld [vmem:[#allocation35_spill] sm:$0xff] }
 0x3ab   : > { %v3512_v15 = vmax.f32 %v7973_v13, %v3511_v49  ;;  %vm9412_vm14 = vcmp.lt.s32.totalorder %v9411_v39, %v6340_v22  ;;  %v3276_v18 = vpop.xlane.xlu0 %3275  ;;  %v9423_v39 = vld [vmem:[#allocation47_spill] sm:$0xff] }
 0x3ac   : > { %3359 = vadd.xlane.f32.xlu0 %v3235_v20  ;;  %v3236_v6 = vmul.f32 %v5695_v53, %v3165_v33  ;;  %v7982_v3 = vsel %vm9412_vm14, %v3385_v27, -inf  ;;  %v7987_v20 = vsel %vm9414_vm15, %v3386_v4, -inf  ;;  %v3387_v33 = vadd.f32 %v7837_v62, %v3274_v24 }
 0x3ad   : > { %v3513_v1 = vmax.f32 %v7982_v3, %v3512_v15  ;;  %vm9420_vm15 = vcmp.lt.s32.totalorder %v9419_v43, %v6340_v22 }
 0x3ae   : > { %3361 = vadd.xlane.f32.xlu1 %v3236_v6  ;;  %v3278_v6 = vpop.xlane.xlu1 %3277 }
 0x3af   : > { %v5555_v47 = vpop.eup %5554  ;;  %v3514_v9 = vmax.f32 %v7987_v20, %v3513_v1  ;;  %v3280_v11 = vpop.xlane.xlu0 %3279  ;;  %v3389_v58 = vadd.f32 %v7837_v62, %v3278_v6 }
 0x3b0   : > { %v5557_v48 = vpop.eup %5556  ;;  %v3166_v34 = vmul.f32 %v5555_v47, %v5553_v61  ;;  %v7996_v61 = vsel %vm9416_vm2, %v3387_v33, -inf  ;;  %v9417_v47 = vld [vmem:[#allocation42_spill] sm:$0xff]  ;;  %v3390_v54 = vadd.f32 %v7837_v62, %v3280_v11 }
 0x3b1   : > { %v5559_v57 = vpop.eup %5558  ;;  %vm9418_vm14 = vcmp.lt.s32.totalorder %v9417_v47, %v6340_v22  ;;  %v8010_v28 = vsel %vm9420_vm15, %v3389_v58, -inf  ;;  %vm9425_vm15 = vcmp.lt.s32.totalorder %v6772_v31, %v6340_v22 }
 0x3b2   : > { %v3237_v21 = vmul.f32 %v5695_v53, %v3166_v34  ;;  %v3167_v59 = vmul.f32 %v5559_v57, %v5557_v48  ;;  %v3515_v48 = vmax.f32 %v7996_v61, %v3514_v9  ;;  %v3282_v57 = vpop.xlane.xlu1 %3281 }
 0x3b3   : > { %v3284_v27 = vpop.xlane.xlu0 %3283  ;;  %v3391_v49 = vadd.f32 %v7837_v62, %v3282_v57 }
 0x3b4   : > { %3363 = vadd.xlane.f32.xlu0 %v3237_v21  ;;  %v3238_v14 = vmul.f32 %v5695_v53, %v3167_v59  ;;  %v3388_v53 = vadd.f32 %v7837_v62, %v3276_v18  ;;  %v9421_v21 = vld [vmem:[#allocation46_spill] sm:$0xff] }
 0x3b5   : > { %vm9422_vm2 = vcmp.lt.s32.totalorder %v9421_v21, %v6340_v22 }
 0x3b6   : > { %3365 = vadd.xlane.f32.xlu1 %v3238_v14  ;;  %v8001_v12 = vsel %vm9418_vm14, %v3388_v53, -inf  ;;  %v8015_v59 = vsel %vm9422_vm2, %v3390_v54, -inf  ;;  %v3392_v14 = vadd.f32 %v7837_v62, %v3284_v27  ;;  %v3286_v24 = vpop.xlane.xlu1 %3285  ;;  %vm9424_vm14 = vcmp.lt.s32.totalorder %v9423_v39, %v6340_v22 }
 0x3b7   : > { %v3516_v34 = vmax.f32 %v8001_v12, %v3515_v48  ;;  %v8024_v18 = vsel %vm9424_vm14, %v3391_v49, -inf  ;;  %v3288_v38 = vpop.xlane.xlu0 %3287  ;;  %v3393_v1 = vadd.f32 %v7837_v62, %v3286_v24  ;;  %vm9426_vm2 = vcmp.lt.s32.totalorder %v6794_v8, %v6340_v22 }
 0x3b8   : > { %v8029_v33 = vsel %vm9425_vm15, %v3392_v14, -inf  ;;  %v3394_v9 = vadd.f32 %v7837_v62, %v3288_v38  ;;  %vm9427_vm14 = vcmp.lt.s32.totalorder %v6864_v26, %v6340_v22  ;;  %vm9428_vm15 = vcmp.lt.s32.totalorder %v6867_v29, %v6340_v22 }
 0x3b9   : > { %v3517_v4 = vmax.f32 %v8010_v28, %v3516_v34  ;;  %v8038_v11 = vsel %vm9426_vm2, %v3393_v1, -inf  ;;  %vm9429_vm2 = vcmp.lt.s32.totalorder %v6906_v17, %v6340_v22 }
 0x3ba   : > { %v3290_v42 = vpop.xlane.xlu1 %3289  ;;  %v8043_v31 = vsel %vm9427_vm14, %v3394_v9, -inf  ;;  %vm9430_vm14 = vcmp.lt.s32.totalorder %v6909_v2, %v6340_v22  ;;  %v9432_v9 = vld [vmem:[#allocation56_spill] sm:$0xff] }
 0x3bb   : > { %v3518_v15 = vmax.f32 %v8015_v59, %v3517_v4  ;;  %v3292_v47 = vpop.xlane.xlu0 %3291  ;;  %v3395_v58 = vadd.f32 %v7837_v62, %v3290_v42  ;;  %v9434_v42 = vld [vmem:[#allocation57_spill] sm:$0xff] }
 0x3bc   : > { %v3396_v54 = vadd.f32 %v7837_v62, %v3292_v47 }
 0x3bd   : > { %v3519_v53 = vmax.f32 %v8024_v18, %v3518_v15  ;;  %v8052_v8 = vsel %vm9428_vm15, %v3395_v58, -inf  ;;  %vm9431_vm15 = vcmp.lt.s32.totalorder %v6944_v10, %v6340_v22 }
 0x3be   : > { %v3294_v57 = vpop.xlane.xlu1 %3293  ;;  %v8057_v26 = vsel %vm9429_vm2, %v3396_v54, -inf  ;;  %vm9433_vm2 = vcmp.lt.s32.totalorder %v9432_v9, %v6340_v22  ;;  %v9442_v9 = vld [vmem:[#allocation63_spill] sm:$0xff] }
 0x3bf   : > { %v3520_v6 = vmax.f32 %v8029_v33, %v3519_v53  ;;  %v3296_v43 = vpop.xlane.xlu0 %3295  ;;  %v3397_v27 = vadd.f32 %v7837_v62, %v3294_v57  ;;  %v9436_v57 = vld [vmem:[#allocation58_spill] sm:$0xff] }
 0x3c0   : > { %v3398_v49 = vadd.f32 %v7837_v62, %v3296_v43 }
 0x3c1   : > { %v3521_v48 = vmax.f32 %v8038_v11, %v3520_v6  ;;  %v8066_v29 = vsel %vm9430_vm14, %v3397_v27, -inf  ;;  %vm9435_vm14 = vcmp.lt.s32.totalorder %v9434_v42, %v6340_v22 }
 0x3c2   : > { %v3298_v14 = vpop.xlane.xlu1 %3297  ;;  %v8071_v17 = vsel %vm9431_vm15, %v3398_v49, -inf  ;;  %vm9437_vm15 = vcmp.lt.s32.totalorder %v9436_v57, %v6340_v22 }
 0x3c3   : > { %v3522_v34 = vmax.f32 %v8043_v31, %v3521_v48  ;;  %v3300_v15 = vpop.xlane.xlu0 %3299  ;;  %v3399_v24 = vadd.f32 %v7837_v62, %v3298_v14 }
 0x3c4   : > { %v3400_v38 = vadd.f32 %v7837_v62, %v3300_v15 }
 0x3c5   : > { %v3523_v21 = vmax.f32 %v8052_v8, %v3522_v34  ;;  %v8080_v2 = vsel %vm9433_vm2, %v3399_v24, -inf }
 0x3c6   : > { %v3302_v53 = vpop.xlane.xlu1 %3301  ;;  %v8085_v10 = vsel %vm9435_vm14, %v3400_v38, -inf  ;;  %v9440_v38 = vld [vmem:[#allocation60_spill] sm:$0xff] }
 0x3c7   : > { %v3524_v4 = vmax.f32 %v8057_v26, %v3523_v21  ;;  %v3304_v6 = vpop.xlane.xlu0 %3303  ;;  %v3401_v47 = vadd.f32 %v7837_v62, %v3302_v53  ;;  %v9438_v21 = vld [vmem:[#allocation59_spill] sm:$0xff]  ;;  %vm9441_vm14 = vcmp.lt.s32.totalorder %v9440_v38, %v6340_v22 }
 0x3c8   : > { %v3402_v48 = vadd.f32 %v7837_v62, %v3304_v6  ;;  %vm9439_vm2 = vcmp.lt.s32.totalorder %v9438_v21, %v6340_v22  ;;  %v9446_v21 = vld [vmem:[#allocation68_spill] sm:$0xff] }
 0x3c9   : > { %v3525_v39 = vmax.f32 %v8066_v29, %v3524_v4  ;;  %v8094_v43 = vsel %vm9437_vm15, %v3401_v47, -inf  ;;  %vm9443_vm15 = vcmp.lt.s32.totalorder %v9442_v9, %v6340_v22 }
 0x3ca   : > { %v3306_v34 = vpop.xlane.xlu1 %3305  ;;  %v8099_v49 = vsel %vm9439_vm2, %v3402_v48, -inf }
 0x3cb   : > { %v3526_v1 = vmax.f32 %v8071_v17, %v3525_v39  ;;  %v3403_v4 = vadd.f32 %v7837_v62, %v3306_v34  ;;  %v9444_v34 = vld [vmem:[#allocation64_spill] sm:$0xff] }
 0x3cc   : > { %vm9445_vm2 = vcmp.lt.s32.totalorder %v9444_v34, %v6340_v22 }
 0x3cd   : > { %v3527_v58 = vmax.f32 %v8080_v2, %v3526_v1  ;;  %v8108_v1 = vsel %vm9441_vm14, %v3403_v4, -inf  ;;  %vm9447_vm14 = vcmp.lt.s32.totalorder %v9446_v21, %v6340_v22 }
 0x3cf   : > { %v3528_v54 = vmax.f32 %v8085_v10, %v3527_v58  ;;  %v3308_v27 = vpop.xlane.xlu0 %3307 }
 0x3d0   : > { %v3404_v15 = vadd.f32 %v7837_v62, %v3308_v27 }
 0x3d1   : > { %v3529_v14 = vmax.f32 %v8094_v43, %v3528_v54  ;;  %v3310_v39 = vpop.xlane.xlu1 %3309 }
 0x3d2   : > { %v8113_v6 = vsel %vm9443_vm15, %v3404_v15, -inf  ;;  %v3405_v42 = vadd.f32 %v7837_v62, %v3310_v39 }
 0x3d3   : > { %v3530_v24 = vmax.f32 %v8099_v49, %v3529_v14 }
 0x3d4   : > { %v8122_v57 = vsel %vm9445_vm2, %v3405_v42, -inf }
 0x3d5   : > { %v3531_v47 = vmax.f32 %v8108_v1, %v3530_v24 }
 0x3d7   : > { %v3312_v53 = vpop.xlane.xlu0 %3311  ;;  %v3532_v48 = vmax.f32 %v8113_v6, %v3531_v47  ;;  %v9450_v47 = vld [vmem:[#allocation72_spill] sm:$0xff] }
 0x3d8   : > { %v3406_v58 = vadd.f32 %v7837_v62, %v3312_v53  ;;  %v9448_v53 = vld [vmem:[#allocation69_spill] sm:$0xff]  ;;  %vm9451_vm2 = vcmp.lt.s32.totalorder %v9450_v47, %v6340_v22 }
 0x3d9   : > { %v3314_v54 = vpop.xlane.xlu1 %3313  ;;  %v3533_v15 = vmax.f32 %v8122_v57, %v3532_v48  ;;  %vm9449_vm15 = vcmp.lt.s32.totalorder %v9448_v53, %v6340_v22 }
 0x3da   : > { %v8127_v4 = vsel %vm9447_vm14, %v3406_v58, -inf  ;;  %v3407_v14 = vadd.f32 %v7837_v62, %v3314_v54 }
 0x3db   : > { %v3534_v39 = vmax.f32 %v8127_v4, %v3533_v15  ;;  %v9452_v15 = vld [vmem:[#allocation74_spill] sm:$0xff] }
 0x3dc   : > { %v8136_v9 = vsel %vm9449_vm15, %v3407_v14, -inf  ;;  %vm9453_vm14 = vcmp.lt.s32.totalorder %v9452_v15, %v6340_v22  ;;  %vm9454_vm15 = vcmp.lt.s32.totalorder %v7188_v52, %v6340_v22 }
 0x3dd   : > { %v3535_v48 = vmax.f32 %v8136_v9, %v3534_v39 }
 0x3df   : > { %v3316_v27 = vpop.xlane.xlu0 %3315 }
 0x3e0   : > { %v3408_v24 = vadd.f32 %v7837_v62, %v3316_v27 }
 0x3e1   : > { %v3318_v38 = vpop.xlane.xlu1 %3317 }
 0x3e2   : > { %v8141_v58 = vsel %vm9451_vm2, %v3408_v24, -inf  ;;  %v3409_v54 = vadd.f32 %v7837_v62, %v3318_v38  ;;  %vm9455_vm2 = vcmp.lt.s32.totalorder %v7191_v35, %v6340_v22 }
 0x3e3   : > { %v3536_v27 = vmax.f32 %v8141_v58, %v3535_v48 }
 0x3e4   : > { %v8150_v14 = vsel %vm9453_vm14, %v3409_v54, -inf  ;;  %vm9456_vm14 = vcmp.lt.s32.totalorder %v7195_v60, %v6340_v22 }
 0x3e5   : > { %v3537_v39 = vmax.f32 %v8150_v14, %v3536_v27 }
 0x3e7   : > { %v3320_v42 = vpop.xlane.xlu0 %3319 }
 0x3e8   : > { %v3410_v34 = vadd.f32 %v7837_v62, %v3320_v42 }
 0x3e9   : > { %v3322_v21 = vpop.xlane.xlu1 %3321 }
 0x3ea   : > { %v8155_v24 = vsel %vm9454_vm15, %v3410_v34, -inf  ;;  %v3411_v38 = vadd.f32 %v7837_v62, %v3322_v21  ;;  %vm9457_vm15 = vcmp.lt.s32.totalorder %v7198_v44, %v6340_v22 }
 0x3eb   : > { %v3538_v47 = vmax.f32 %v8155_v24, %v3537_v39 }
 0x3ec   : > { %v8164_v54 = vsel %vm9455_vm2, %v3411_v38, -inf  ;;  %vm9458_vm2 = vcmp.lt.s32.totalorder %v7256_v40, %v6340_v22 }
 0x3ed   : > { %v3539_v27 = vmax.f32 %v8164_v54, %v3538_v47 }
 0x3ef   : > { %v3324_v53 = vpop.xlane.xlu0 %3323 }
 0x3f0   : > { %v3412_v42 = vadd.f32 %v7837_v62, %v3324_v53 }
 0x3f1   : > { %v3326_v48 = vpop.xlane.xlu1 %3325 }
 0x3f2   : > { %v8169_v52 = vsel %vm9456_vm14, %v3412_v42, -inf  ;;  %v3413_v34 = vadd.f32 %v7837_v62, %v3326_v48  ;;  %vm9459_vm14 = vcmp.lt.s32.totalorder %v7259_v0, %v6340_v22 }
 0x3f3   : > { %v3540_v53 = vmax.f32 %v8169_v52, %v3539_v27 }
 0x3f4   : > { %v8178_v35 = vsel %vm9457_vm15, %v3413_v34, -inf  ;;  %vm9460_vm15 = vcmp.lt.s32.totalorder %v7290_v16, %v6340_v22 }
 0x3f5   : > { %v3541_v47 = vmax.f32 %v8178_v35, %v3540_v53 }
 0x3f7   : > { %v3328_v15 = vpop.xlane.xlu0 %3327 }
 0x3f8   : > { %v3414_v21 = vadd.f32 %v7837_v62, %v3328_v15 }
 0x3f9   : > { %v3330_v39 = vpop.xlane.xlu1 %3329 }
 0x3fa   : > { %v8183_v60 = vsel %vm9458_vm2, %v3414_v21, -inf  ;;  %v3415_v42 = vadd.f32 %v7837_v62, %v3330_v39  ;;  %vm9462_vm2 = vcmp.lt.s32.totalorder %v7293_v37, %v6340_v22 }
 0x3fb   : > { %v3542_v15 = vmax.f32 %v8183_v60, %v3541_v47 }
 0x3fc   : > { %v8192_v44 = vsel %vm9459_vm14, %v3415_v42, -inf  ;;  %vm9464_vm14 = vcmp.lt.s32.totalorder %v7324_v32, %v6340_v22 }
 0x3fd   : > { %v3543_v53 = vmax.f32 %v8192_v44, %v3542_v15 }
 0x3ff   : > { %v3332_v38 = vpop.xlane.xlu0 %3331 }
 0x400   : > { %v3416_v48 = vadd.f32 %v7837_v62, %v3332_v38 }
 0x401   : > { %v3334_v27 = vpop.xlane.xlu1 %3333 }
 0x402   : > { %v8197_v40 = vsel %vm9460_vm15, %v3416_v48, -inf  ;;  %v3417_v21 = vadd.f32 %v7837_v62, %v3334_v27  ;;  %vm9466_vm15 = vcmp.lt.s32.totalorder %v7327_v45, %v6340_v22 }
 0x403   : > { %9461 = vst [vmem:[#allocation31_spill] sm:$0xff] %v8197_v40  ;;  %v3544_v38 = vmax.f32 %v8197_v40, %v3543_v53  ;;  %v9468_v40 = vld [vmem:[#allocation85_spill] sm:$0xff] }
 0x404   : > { %v8206_v0 = vsel %vm9462_vm2, %v3417_v21, -inf  ;;  %vm9469_vm2 = vcmp.lt.s32.totalorder %v9468_v40, %v6340_v22 }
 0x405   : > { %9463 = vst [vmem:[#allocation34_spill] sm:$0xff] %v8206_v0  ;;  %v3545_v15 = vmax.f32 %v8206_v0, %v3544_v38  ;;  %v9474_v0 = vld [vmem:[#allocation88_spill] sm:$0xff] }
 0x407   : > { %v3336_v34 = vpop.xlane.xlu0 %3335 }
 0x408   : > { %v3418_v39 = vadd.f32 %v7837_v62, %v3336_v34 }
 0x409   : > { %v3338_v47 = vpop.xlane.xlu1 %3337 }
 0x40a   : > { %v8211_v16 = vsel %vm9464_vm14, %v3418_v39, -inf  ;;  %v3419_v48 = vadd.f32 %v7837_v62, %v3338_v47 }
 0x40b   : > { %9465 = vst [vmem:[#allocation35_spill] sm:$0xff] %v8211_v16  ;;  %v3546_v34 = vmax.f32 %v8211_v16, %v3545_v15  ;;  %v9471_v16 = vld [vmem:[#allocation86_spill] sm:$0xff] }
 0x40c   : > { %v8220_v37 = vsel %vm9466_vm15, %v3419_v48, -inf  ;;  %vm9472_vm14 = vcmp.lt.s32.totalorder %v9471_v16, %v6340_v22  ;;  %vm9475_vm15 = vcmp.lt.s32.totalorder %v9474_v0, %v6340_v22 }
 0x40d   : > { %9467 = vst [vmem:[#allocation38_spill] sm:$0xff] %v8220_v37  ;;  %v3547_v38 = vmax.f32 %v8220_v37, %v3546_v34  ;;  %v9480_v37 = vld [vmem:[#allocation91_spill] sm:$0xff] }
 0x40f   : > { %v3340_v42 = vpop.xlane.xlu0 %3339 }
 0x410   : > { %v3420_v27 = vadd.f32 %v7837_v62, %v3340_v42 }
 0x411   : > { %v3342_v53 = vpop.xlane.xlu1 %3341 }
 0x412   : > { %v8225_v32 = vsel %vm9469_vm2, %v3420_v27, -inf  ;;  %v3421_v39 = vadd.f32 %v7837_v62, %v3342_v53 }
 0x413   : > { %9470 = vst [vmem:[#allocation39_spill] sm:$0xff] %v8225_v32  ;;  %v3548_v42 = vmax.f32 %v8225_v32, %v3547_v38  ;;  %v9477_v32 = vld [vmem:[#allocation89_spill] sm:$0xff] }
 0x414   : > { %v8234_v45 = vsel %vm9472_vm14, %v3421_v39, -inf  ;;  %vm9478_vm2 = vcmp.lt.s32.totalorder %v9477_v32, %v6340_v22  ;;  %vm9481_vm14 = vcmp.lt.s32.totalorder %v9480_v37, %v6340_v22 }
 0x415   : > { %9473 = vst [vmem:[#allocation42_spill] sm:$0xff] %v8234_v45  ;;  %v3549_v34 = vmax.f32 %v8234_v45, %v3548_v42 }
 0x418   : > { %v3344_v21 = vpop.xlane.xlu0 %3343 }
 0x419   : > { %v3422_v47 = vadd.f32 %v7837_v62, %v3344_v21 }
 0x41a   : > { %v3346_v15 = vpop.xlane.xlu1 %3345 }
 0x41b   : > { %v8239_v40 = vsel %vm9475_vm15, %v3422_v47, -inf  ;;  %v3423_v27 = vadd.f32 %v7837_v62, %v3346_v15 }
 0x41c   : > { %9476 = vst [vmem:[#allocation43_spill] sm:$0xff] %v8239_v40  ;;  %v3550_v21 = vmax.f32 %v8239_v40, %v3549_v34  ;;  %v9483_v40 = vld [vmem:[#allocation92_spill] sm:$0xff] }
 0x41d   : > { %v8248_v16 = vsel %vm9478_vm2, %v3423_v27, -inf  ;;  %vm9484_vm15 = vcmp.lt.s32.totalorder %v9483_v40, %v6340_v22  ;;  %v9486_v27 = vld [vmem:[#allocation94_spill] sm:$0xff] }
 0x41e   : > { %9479 = vst [vmem:[#allocation46_spill] sm:$0xff] %v8248_v16  ;;  %v3551_v42 = vmax.f32 %v8248_v16, %v3550_v21  ;;  %vm9487_vm2 = vcmp.lt.s32.totalorder %v9486_v27, %v6340_v22  ;;  %v9489_v16 = vld [vmem:[#allocation95_spill] sm:$0xff] }
 0x421   : > { %v3348_v48 = vpop.xlane.xlu0 %3347 }
 0x422   : > { %v3424_v53 = vadd.f32 %v7837_v62, %v3348_v48 }
 0x423   : > { %v3350_v38 = vpop.xlane.xlu1 %3349 }
 0x424   : > { %v8253_v0 = vsel %vm9481_vm14, %v3424_v53, -inf  ;;  %v3425_v47 = vadd.f32 %v7837_v62, %v3350_v38  ;;  %vm9490_vm14 = vcmp.lt.s32.totalorder %v9489_v16, %v6340_v22 }
 0x425   : > { %9482 = vst [vmem:[#allocation47_spill] sm:$0xff] %v8253_v0  ;;  %v3552_v48 = vmax.f32 %v8253_v0, %v3551_v42 }
 0x426   : > { %v8262_v32 = vsel %vm9484_vm15, %v3425_v47, -inf  ;;  %v9492_v47 = vld [vmem:[#allocation97_spill] sm:$0xff] }
 0x427   : > { %9485 = vst [vmem:[#allocation56_spill] sm:$0xff] %v8262_v32  ;;  %v3553_v38 = vmax.f32 %v8262_v32, %v3552_v48  ;;  %vm9493_vm15 = vcmp.lt.s32.totalorder %v9492_v47, %v6340_v22  ;;  %v9495_v32 = vld [vmem:[#allocation98_spill] sm:$0xff] }
 0x429   : > { %v3352_v39 = vpop.xlane.xlu0 %3351 }
 0x42a   : > { %v3426_v15 = vadd.f32 %v7837_v62, %v3352_v39 }
 0x42b   : > { %v3354_v34 = vpop.xlane.xlu1 %3353 }
 0x42c   : > { %v8267_v37 = vsel %vm9487_vm2, %v3426_v15, -inf  ;;  %v3427_v53 = vadd.f32 %v7837_v62, %v3354_v34  ;;  %vm9496_vm2 = vcmp.lt.s32.totalorder %v9495_v32, %v6340_v22 }
 0x42d   : > { %9488 = vst [vmem:[#allocation57_spill] sm:$0xff] %v8267_v37  ;;  %v3554_v42 = vmax.f32 %v8267_v37, %v3553_v38  ;;  %v9498_v37 = vld [vmem:[#allocation100_spill] sm:$0xff] }
 0x42e   : > { %v8276_v40 = vsel %vm9490_vm14, %v3427_v53, -inf  ;;  %vm9499_vm14 = vcmp.lt.s32.totalorder %v9498_v37, %v6340_v22  ;;  %v9504_v37 = vld [vmem:[#allocation103_spill] sm:$0xff] }
 0x42f   : > { %9491 = vst [vmem:[#allocation58_spill] sm:$0xff] %v8276_v40  ;;  %v3555_v48 = vmax.f32 %v8276_v40, %v3554_v42 }
 0x431   : > { %v3356_v21 = vpop.xlane.xlu0 %3355 }
 0x432   : > { %v3428_v39 = vadd.f32 %v7837_v62, %v3356_v21 }
 0x433   : > { %v3358_v0 = vpop.xlane.xlu1 %3357 }
 0x434   : > { %v8281_v15 = vsel %vm9493_vm15, %v3428_v39, -inf  ;;  %v3429_v34 = vadd.f32 %v7837_v62, %v3358_v0 }
 0x435   : > { %9494 = vst [vmem:[#allocation59_spill] sm:$0xff] %v8281_v15  ;;  %v3556_v27 = vmax.f32 %v8281_v15, %v3555_v48  ;;  %v9501_v48 = vld [vmem:[#allocation101_spill] sm:$0xff] }
 0x436   : > { %v8289_v38 = vsel %vm9496_vm2, %v3429_v34, -inf  ;;  %vm9502_vm15 = vcmp.lt.s32.totalorder %v9501_v48, %v6340_v22  ;;  %vm9505_vm2 = vcmp.lt.s32.totalorder %v9504_v37, %v6340_v22 }
 0x437   : > { %9497 = vst [vmem:[#allocation60_spill] sm:$0xff] %v8289_v38  ;;  %v3559_v42 = vmax.f32 %v8289_v38, %v3556_v27 }
 0x439   : > { %v3360_v21 = vpop.xlane.xlu0 %3359 }
 0x43a   : > { %v3430_v16 = vadd.f32 %v7837_v62, %v3360_v21 }
 0x43b   : > { %v3362_v53 = vpop.xlane.xlu1 %3361 }
 0x43c   : > { %v8295_v39 = vsel %vm9499_vm14, %v3430_v16, -inf  ;;  %v3431_v0 = vadd.f32 %v7837_v62, %v3362_v53 }
 0x43d   : > { %9500 = vst [vmem:[#allocation63_spill] sm:$0xff] %v8295_v39  ;;  %v3557_v47 = vmax.f32 %v8295_v39, %v3559_v42  ;;  %v9506_v42 = vld [vmem:[#allocation104_spill] sm:$0xff] }
 0x43e   : > { %v8303_v32 = vsel %vm9502_vm15, %v3431_v0, -inf  ;;  %vm9507_vm14 = vcmp.lt.s32.totalorder %v9506_v42, %v6340_v22  ;;  %vm3913_vm15 = vcmask 0  }
 0x43f   : > { %9503 = vst [vmem:[#allocation64_spill] sm:$0xff] %v8303_v32  ;;  %v3558_v15 = vmax.f32 %v8303_v32, %v3557_v47 }
 0x441   : > { %v3364_v34 = vpop.xlane.xlu0 %3363 }
 0x442   : > { %v3432_v21 = vadd.f32 %v7837_v62, %v3364_v34 }
 0x443   : > { %v3366_v40 = vpop.xlane.xlu1 %3365 }
 0x444   : > { %v8310_v16 = vsel %vm9505_vm2, %v3432_v21, -inf  ;;  %v3433_v27 = vadd.f32 %v7837_v62, %v3366_v40  ;;  %v8320_v21 = vld [vmem:[#allocation2] sm:$0x1]  ;;  %vm3774_vm2 = vcmask 7168  }
 0x445   : > { %v3560_v53 = vmax.f32 %v8310_v16, %v3558_v15  ;;  %v9508_v15 = vld [vmem:[#allocation24_spill] sm:$0xff] }
 0x446   : > { %v8317_v0 = vsel %vm9507_vm14, %v3433_v27, -inf }
 0x447   : > { %v3561_v48 = vmax.f32 %v8317_v0, %v3560_v53 }
 0x449   : > { %v3562_v34 = vrot.slane %v3561_v48, 4 }
 0x44b   : > { %v3563_v39 = vmax.f32 %v3561_v48, %v3562_v34 }
 0x44d   : > { %v3564_v47 = vrot.slane %v3563_v39, 2 }
 0x44f   : > { %v3565_v32 = vmax.f32 %v3563_v39, %v3564_v47 }
 0x451   : > { %v3566_v38 = vrot.slane %v3565_v32, 1 }
 0x453   : > { %v3567_v45 = vmax.f32 %v3565_v32, %v3566_v38 }
 0x455   : > { %5008 = vpush %v3567_v45 }
 0x486   : > { %s5009_s21 = spop %5008 }
 0x487   : > { %v3569_v62 = vstv %s5009_s21 }
 0x488   : > { %v8323_v40 = vmax.f32 %v8320_v21, %v3569_v62 }
 0x48a   : > { %4128 = vst.msk [vmem:[#allocation2] sm:$0x1] %vm3913_vm15, %v8323_v40  ;;  %v8331_v39 = vrot.slane %v8323_v40, %v9508_v15 }
 0x48c   : > { %v3596_v45 = vsub.f32 %v7987_v20, %v8331_v39  ;;  %v3597_v38 = vsub.f32 %v7996_v61, %v8331_v39  ;;  %v3580_v32 = vsub.f32 %v7862_v23, %v8331_v39  ;;  %v3581_v37 = vsub.f32 %v7867_v46, %v8331_v39 }
 0x48d   : > { %v3582_v27 = vsub.f32 %v7876_v19, %v8331_v39  ;;  %v3583_v48 = vsub.f32 %v7909_v63, %v8331_v39  ;;  %v3584_v20 = vsub.f32 %v7888_v50, %v8331_v39  ;;  %v3585_v23 = vsub.f32 %v7881_v7, %v8331_v39 }
 0x48e   : > { %v3676_v53 = vmul.f32 1.442695, %v3596_v45  ;;  %v3678_v42 = vmul.f32 1.442695, %v3597_v38  ;;  %v3644_v34 = vmul.f32 1.442695, %v3580_v32  ;;  %v3586_v46 = vsub.f32 %v7915_v30, %v8331_v39 }
 0x48f   : > { %v3646_v47 = vmul.f32 1.442695, %v3581_v37  ;;  %v3587_v19 = vsub.f32 %v7902_v5, %v8331_v39  ;;  %v3648_v61 = vmul.f32 1.442695, %v3582_v27  ;;  %v3588_v63 = vsub.f32 %v7925_v56, %v8331_v39 }
 0x490   : > { %5560 = vpow2.f32 %v3676_v53  ;;  %v3589_v62 = vsub.f32 %v7936_v25, %v8331_v39  ;;  %v3650_v50 = vmul.f32 1.442695, %v3583_v48  ;;  %v3590_v7 = vsub.f32 %v7942_v55, %v8331_v39 }
 0x491   : > { %5562 = vpow2.f32 %v3678_v42  ;;  %v3591_v45 = vsub.f32 %v7951_v41, %v8331_v39  ;;  %v3592_v30 = vsub.f32 %v7959_v36, %v8331_v39  ;;  %v3652_v5 = vmul.f32 1.442695, %v3584_v20 }
 0x492   : > { %5564 = vpow2.f32 %v3644_v34  ;;  %v3593_v38 = vsub.f32 %v7968_v51, %v8331_v39  ;;  %v3594_v56 = vsub.f32 %v7973_v13, %v8331_v39  ;;  %v3595_v25 = vsub.f32 %v7982_v3, %v8331_v39 }
 0x493   : > { %5566 = vpow2.f32 %v3646_v47  ;;  %v3654_v32 = vmul.f32 1.442695, %v3585_v23  ;;  %v3598_v55 = vsub.f32 %v8001_v12, %v8331_v39  ;;  %v3599_v41 = vsub.f32 %v8010_v28, %v8331_v39 }
 0x494   : > { %v3656_v37 = vmul.f32 1.442695, %v3586_v46  ;;  %5568 = vpow2.f32 %v3648_v61  ;;  %v3600_v36 = vsub.f32 %v8015_v59, %v8331_v39  ;;  %v3601_v51 = vsub.f32 %v8024_v18, %v8331_v39 }
 0x495   : > { %v3658_v27 = vmul.f32 1.442695, %v3587_v19  ;;  %5570 = vpow2.f32 %v3650_v50  ;;  %v3602_v13 = vsub.f32 %v8029_v33, %v8331_v39  ;;  %v3603_v3 = vsub.f32 %v8038_v11, %v8331_v39  ;;  %v9510_v11 = vld [vmem:[#allocation34_spill] sm:$0xff] }
 0x496   : > { %v3660_v12 = vmul.f32 1.442695, %v3588_v63  ;;  %5572 = vpow2.f32 %v3652_v5  ;;  %v3604_v28 = vsub.f32 %v8043_v31, %v8331_v39  ;;  %v3605_v59 = vsub.f32 %v8052_v8, %v8331_v39 }
 0x497   : > { %v3662_v53 = vmul.f32 1.442695, %v3589_v62  ;;  %5574 = vpow2.f32 %v3654_v32  ;;  %v3606_v42 = vsub.f32 %v8057_v26, %v8331_v39  ;;  %v3607_v33 = vsub.f32 %v8066_v29, %v8331_v39  ;;  %v9512_v26 = vld [vmem:[#allocation38_spill] sm:$0xff]  ;;  %v9513_v29 = vld [vmem:[#allocation39_spill] sm:$0xff] }
 0x498   : > { %v3664_v48 = vmul.f32 1.442695, %v3590_v7  ;;  %5576 = vpow2.f32 %v3656_v37  ;;  %v3608_v47 = vsub.f32 %v8071_v17, %v8331_v39  ;;  %v3609_v20 = vsub.f32 %v8080_v2, %v8331_v39 }
 0x499   : > { %v3666_v23 = vmul.f32 1.442695, %v3591_v45  ;;  %5578 = vpow2.f32 %v3658_v27  ;;  %v3610_v19 = vsub.f32 %v8085_v10, %v8331_v39  ;;  %v3668_v63 = vmul.f32 1.442695, %v3592_v30  ;;  %v9515_v10 = vld [vmem:[#allocation43_spill] sm:$0xff] }
 0x49a   : > { %v8385_v18 = vpop.eup %5560  ;;  %5580 = vpow2.f32 %v3660_v12  ;;  %v3611_v50 = vsub.f32 %v8094_v43, %v8331_v39  ;;  %v3670_v5 = vmul.f32 1.442695, %v3593_v38  ;;  %v3614_v32 = vsub.f32 %v8113_v6, %v8331_v39 }
 0x49b   : > { %v8391_v34 = vpop.eup %5562  ;;  %5582 = vpow2.f32 %v3662_v53  ;;  %v3672_v37 = vmul.f32 1.442695, %v3594_v56  ;;  %v3616_v27 = vsub.f32 %v8127_v4, %v8331_v39  ;;  %v3674_v12 = vmul.f32 1.442695, %v3595_v25 }
 0x49c   : > { %v5565_v46 = vpop.eup %5564  ;;  %v3923_v61 = vpack.c.bf16 %v8391_v34, %v8385_v18  ;;  %5584 = vpow2.f32 %v3664_v48  ;;  %v3680_v53 = vmul.f32 1.442695, %v3598_v55  ;;  %v3684_v55 = vmul.f32 1.442695, %v3600_v36 }
 0x49d   : > { %v5567_v62 = vpop.eup %5566  ;;  %5586 = vpow2.f32 %v3666_v23  ;;  %v3622_v38 = vsub.f32 %v8169_v52, %v8331_v39  ;;  %v3686_v48 = vmul.f32 1.442695, %v3601_v51  ;;  %v3775_v25 = vsel %vm3774_vm2, %v5565_v46, 0.0 }
 0x49e   : > { %3963 = vxpose.xlu0.c.b16.start [1/8] (narrow) %v3923_v61, 16  ;;  %v5569_v22 = vpop.eup %5568  ;;  %v3915_v45 = vpack.c.bf16 %v5567_v62, %v5565_v46  ;;  %5588 = vpow2.f32 %v3668_v63  ;;  %v3682_v61 = vmul.f32 1.442695, %v3599_v41  ;;  %v3776_v23 = vsel %vm3774_vm2, %v5567_v62, 0.0  ;;  %v9509_v46 = vld [vmem:[#allocation31_spill] sm:$0xff] }
 0x49f   : > { %v5571_v7 = vpop.eup %5570  ;;  %5590 = vpow2.f32 %v3670_v5  ;;  %v3688_v5 = vmul.f32 1.442695, %v3602_v13  ;;  %v3690_v56 = vmul.f32 1.442695, %v3603_v3  ;;  %v3777_v51 = vadd.f32 %v3776_v23, %v3775_v25  ;;  %v9511_v3 = vld [vmem:[#allocation35_spill] sm:$0xff] }
 0x4a0   : > { %v8419_v30 = vpop.eup %5572  ;;  %5592 = vpow2.f32 %v3672_v37  ;;  %3947 = vxpose.xlu1.c.b16.start [1/8] (narrow) %v3915_v45, 16  ;;  %v3624_v37 = vsub.f32 %v8183_v60, %v8331_v39  ;;  %v3692_v62 = vmul.f32 1.442695, %v3604_v28  ;;  %v3778_v25 = vsel %vm3774_vm2, %v5569_v22, 0.0 }
 0x4a1   : > { %v5575_v63 = vpop.eup %5574  ;;  %5594 = vpow2.f32 %v3674_v12  ;;  %v3696_v31 = vmul.f32 1.442695, %v3606_v42  ;;  %v3916_v28 = vpack.c.bf16 %v5571_v7, %v5569_v22  ;;  %v3628_v13 = vsub.f32 %v9511_v3, %v8331_v39 }
 0x4a2   : > { %v8429_v41 = vpop.eup %5576  ;;  %5596 = vpow2.f32 %v3680_v53  ;;  %v3698_v8 = vmul.f32 1.442695, %v3607_v33  ;;  %v3629_v42 = vsub.f32 %v9512_v26, %v8331_v39  ;;  %v3700_v22 = vmul.f32 1.442695, %v3608_v47 }
 0x4a3   : > { %v8433_v36 = vpop.eup %5578  ;;  %5598 = vpow2.f32 %v3682_v61  ;;  %v3694_v61 = vmul.f32 1.442695, %v3605_v59  ;;  %v3780_v59 = vsel %vm3774_vm2, %v5571_v7, 0.0  ;;  %v3630_v33 = vsub.f32 %v9513_v29, %v8331_v39 }
 0x4a4   : > { %v8440_v12 = vpop.eup %5580  ;;  %5600 = vpow2.f32 %v3684_v55  ;;  %v3779_v55 = vadd.f32 %v3778_v25, %v3777_v51  ;;  %3948 = vxpose.xlu1.c.b16.cont [2/8] (narrow) %v3916_v28, 16  ;;  %v3702_v7 = vmul.f32 1.442695, %v3609_v20  ;;  %v3704_v17 = vmul.f32 1.442695, %v3610_v19 }
 0x4a5   : > { %v8449_v53 = vpop.eup %5582  ;;  %5602 = vpow2.f32 %v3686_v48  ;;  %v3917_v47 = vpack.c.bf16 %v5575_v63, %v8419_v30  ;;  %v3706_v20 = vmul.f32 1.442695, %v3611_v50  ;;  %v9517_v43 = vsub.f32 %v8108_v1, %v8331_v39 }
 0x4a6   : > { %v8457_v23 = vpop.eup %5584  ;;  %5604 = vpow2.f32 %v3688_v5  ;;  %v3781_v5 = vadd.f32 %v3780_v59, %v3779_v55  ;;  %v9514_v55 = vld [vmem:[#allocation42_spill] sm:$0xff] }
 0x4a7   : > { %v8462_v45 = vpop.eup %5586  ;;  %5606 = vpow2.f32 %v3690_v56  ;;  %v3782_v56 = vsel %vm3774_vm2, %v8419_v30, 0.0  ;;  %v3631_v2 = vsub.f32 %v9514_v55, %v8331_v39  ;;  %v9516_v30 = vsub.f32 %v8099_v49, %v8331_v39 }
 0x4a8   : > { %v8470_v48 = vpop.eup %5588  ;;  %5608 = vpow2.f32 %v3692_v62  ;;  %v3783_v62 = vadd.f32 %v3782_v56, %v3781_v5  ;;  %3949 = vxpose.xlu1.c.b16.cont [3/8] (narrow) %v3917_v47, 16  ;;  %v3710_v50 = vmul.f32 1.442695, %v9517_v43  ;;  %v3790_v43 = vsel %vm3774_vm2, %v8440_v12, 0.0 }
 0x4a9   : > { %v8477_v51 = vpop.eup %5590  ;;  %5610 = vpow2.f32 %v3694_v61  ;;  %v3784_v61 = vsel %vm3774_vm2, %v5575_v63, 0.0  ;;  %v3712_v63 = vmul.f32 1.442695, %v3614_v32  ;;  %v9519_v32 = vsub.f32 %v8122_v57, %v8331_v39 }
 0x4aa   : > { %v8486_v25 = vpop.eup %5592  ;;  %5612 = vpow2.f32 %v3696_v31  ;;  %v3708_v31 = vmul.f32 1.442695, %v9516_v30  ;;  %v3785_v5 = vadd.f32 %v3784_v61, %v3783_v62  ;;  %v9518_v62 = vld [vmem:[#allocation46_spill] sm:$0xff]  ;;  %v9520_v30 = vld [vmem:[#allocation47_spill] sm:$0xff]  ;;  %v9521_v57 = vsub.f32 %v8136_v9, %v8331_v39 }
 0x4ab   : > { %v8492_v28 = vpop.eup %5594  ;;  %5614 = vpow2.f32 %v3698_v8  ;;  %v3786_v8 = vsel %vm3774_vm2, %v8429_v41, 0.0  ;;  %v3633_v6 = vsub.f32 %v9518_v62, %v8331_v39 }
 0x4ac   : > { %v8500_v59 = vpop.eup %5596  ;;  %5616 = vpow2.f32 %v3700_v22  ;;  %v3918_v22 = vpack.c.bf16 %v8433_v36, %v8429_v41  ;;  %v3787_v47 = vadd.f32 %v3786_v8, %v3785_v5  ;;  %v3716_v41 = vmul.f32 1.442695, %v3616_v27 }
 0x4ad   : > { %v8507_v56 = vpop.eup %5598  ;;  %5618 = vpow2.f32 %v3702_v7  ;;  %v3714_v7 = vmul.f32 1.442695, %v9519_v32  ;;  %v3750_v55 = vmul.f32 1.442695, %v3633_v6  ;;  %v3643_v6 = vsub.f32 %v8317_v0, %v8331_v39 }
 0x4ae   : > { %v8517_v19 = vpop.eup %5600  ;;  %5620 = vpow2.f32 %v3704_v17  ;;  %v3924_v49 = vpack.c.bf16 %v8507_v56, %v8500_v59  ;;  %v3788_v17 = vsel %vm3774_vm2, %v8433_v36, 0.0  ;;  %3950 = vxpose.xlu1.c.b16.cont [4/8] (narrow) %v3918_v22, 16  ;;  %v9522_v36 = vsub.f32 %v8141_v58, %v8331_v39  ;;  %v9523_v22 = vld [vmem:[#allocation56_spill] sm:$0xff] }
 0x4af   : > { %v8523_v1 = vpop.eup %5602  ;;  %5622 = vpow2.f32 %v3706_v20  ;;  %v3789_v5 = vadd.f32 %v3788_v17, %v3787_v47  ;;  %v3718_v20 = vmul.f32 1.442695, %v9521_v57  ;;  %v9525_v57 = vld [vmem:[#allocation57_spill] sm:$0xff] }
 0x4b0   : > { %v8532_v61 = vpop.eup %5604  ;;  %5624 = vpow2.f32 %v3708_v31  ;;  %3964 = vxpose.xlu0.c.b16.cont [2/8] (narrow) %v3924_v49, 16  ;;  %v3720_v32 = vmul.f32 1.442695, %v9522_v36  ;;  %v3925_v27 = vpack.c.bf16 %v8523_v1, %v8517_v19  ;;  %v3919_v31 = vpack.c.bf16 %v8449_v53, %v8440_v12 }
 0x4b1   : > { %v8539_v8 = vpop.eup %5606  ;;  %5626 = vpow2.f32 %v3710_v50  ;;  %v3791_v49 = vadd.f32 %v3790_v43, %v3789_v5  ;;  %v9524_v50 = vsub.f32 %v8150_v14, %v8331_v39  ;;  %v3636_v36 = vsub.f32 %v9525_v57, %v8331_v39 }
 0x4b2   : > { %v8549_v4 = vpop.eup %5608  ;;  %5628 = vpow2.f32 %v3712_v63  ;;  %v3792_v63 = vsel %vm3774_vm2, %v8449_v53, 0.0  ;;  %v9526_v12 = vsub.f32 %v8155_v24, %v8331_v39  ;;  %3951 = vxpose.xlu1.c.b16.cont [5/8] (narrow) %v3919_v31, 16  ;;  %v9527_v14 = vsub.f32 %v8164_v54, %v8331_v39 }
 0x4b3   : > { %v8555_v9 = vpop.eup %5610  ;;  %v3722_v47 = vmul.f32 1.442695, %v9524_v50  ;;  %5630 = vpow2.f32 %v3714_v7  ;;  %v3793_v5 = vadd.f32 %v3792_v63, %v3791_v49  ;;  %v3728_v53 = vmul.f32 1.442695, %v3622_v38  ;;  %v9528_v49 = vld [vmem:[#allocation58_spill] sm:$0xff] }
 0x4b4   : > { %v8564_v17 = vpop.eup %5612  ;;  %v3724_v43 = vmul.f32 1.442695, %v9526_v12  ;;  %5632 = vpow2.f32 %v3716_v41  ;;  %3965 = vxpose.xlu0.c.b16.cont [3/8] (narrow) %v3925_v27, 16  ;;  %v3726_v7 = vmul.f32 1.442695, %v9527_v14  ;;  %v3794_v50 = vsel %vm3774_vm2, %v8457_v23, 0.0 }
 0x4b5   : > { %v8571_v58 = vpop.eup %5614  ;;  %5634 = vpow2.f32 %v3718_v20  ;;  %v3926_v41 = vpack.c.bf16 %v8539_v8, %v8532_v61  ;;  %v3920_v27 = vpack.c.bf16 %v8462_v45, %v8457_v23  ;;  %v3795_v31 = vadd.f32 %v3794_v50, %v3793_v5  ;;  %v9530_v12 = vld [vmem:[#allocation59_spill] sm:$0xff] }
 0x4b6   : > { %v8581_v24 = vpop.eup %5616  ;;  %5636 = vpow2.f32 %v3720_v32  ;;  %v3637_v52 = vsub.f32 %v9528_v49, %v8331_v39  ;;  %v9529_v38 = vsub.f32 %v8178_v35, %v8331_v39  ;;  %v3796_v32 = vsel %vm3774_vm2, %v8462_v45, 0.0 }
 0x4b7   : > { %v8587_v54 = vpop.eup %5618  ;;  %5638 = vpow2.f32 %v3722_v47  ;;  %v3732_v23 = vmul.f32 1.442695, %v3624_v37  ;;  %3952 = vxpose.xlu1.c.b16.cont [6/8] (narrow) %v3920_v27, 16  ;;  %v3797_v5 = vadd.f32 %v3796_v32, %v3795_v31  ;;  %v9531_v35 = vsub.f32 %v8192_v44, %v8331_v39  ;;  %v9533_v27 = vld [vmem:[#allocation60_spill] sm:$0xff] }
 0x4b8   : > { %v3730_v20 = vmul.f32 1.442695, %v9529_v38  ;;  %v8596_v63 = vpop.eup %5620  ;;  %5640 = vpow2.f32 %v3724_v43  ;;  %3966 = vxpose.xlu0.c.b16.cont [4/8] (narrow) %v3926_v41, 16  ;;  %v9532_v45 = vsub.f32 %v9509_v46, %v8331_v39  ;;  %v3798_v14 = vsel %vm3774_vm2, %v8470_v48, 0.0 }
 0x4b9   : > { %v8603_v50 = vpop.eup %5622  ;;  %v3734_v47 = vmul.f32 1.442695, %v9531_v35  ;;  %5642 = vpow2.f32 %v3726_v7  ;;  %v3927_v37 = vpack.c.bf16 %v8555_v9, %v8549_v4  ;;  %v3921_v43 = vpack.c.bf16 %v8477_v51, %v8470_v48  ;;  %v9535_v35 = vld [vmem:[#allocation63_spill] sm:$0xff] }
 0x4ba   : > { %v3736_v38 = vmul.f32 1.442695, %v9532_v45  ;;  %v8613_v60 = vpop.eup %5624  ;;  %5644 = vpow2.f32 %v3728_v53  ;;  %v3799_v41 = vadd.f32 %v3798_v14, %v3797_v5  ;;  %v3639_v46 = vsub.f32 %v9533_v27, %v8331_v39 }
 0x4bb   : > { %v8619_v44 = vpop.eup %5626  ;;  %v9534_v7 = vsub.f32 %v9510_v11, %v8331_v39  ;;  %5646 = vpow2.f32 %v3730_v20  ;;  %v3800_v53 = vsel %vm3774_vm2, %v8477_v51, 0.0  ;;  %v3640_v45 = vsub.f32 %v9535_v35, %v8331_v39  ;;  %3953 = vxpose.xlu1.c.b16.cont [7/8] (narrow) %v3921_v43, 16 }
 0x4bc   : > { %v8628_v32 = vpop.eup %5628  ;;  %v3740_v48 = vmul.f32 1.442695, %v3628_v13  ;;  %5648 = vpow2.f32 %v3732_v23  ;;  %3967 = vxpose.xlu0.c.b16.cont [5/8] (narrow) %v3927_v37, 16  ;;  %v3801_v14 = vadd.f32 %v3800_v53, %v3799_v41  ;;  %v3742_v11 = vmul.f32 1.442695, %v3629_v42  ;;  %v9536_v42 = vld [vmem:[#allocation64_spill] sm:$0xff] }
 0x4bd   : > { %v3738_v31 = vmul.f32 1.442695, %v9534_v7  ;;  %v8635_v5 = vpop.eup %5630  ;;  %v3744_v51 = vmul.f32 1.442695, %v3630_v33  ;;  %5650 = vpow2.f32 %v3734_v47  ;;  %v3802_v20 = vsel %vm3774_vm2, %v8486_v25, 0.0 }
 0x4be   : > { %v8645_v3 = vpop.eup %5632  ;;  %5652 = vpow2.f32 %v3736_v38  ;;  %v3928_v13 = vpack.c.bf16 %v8571_v58, %v8564_v17  ;;  %v3922_v23 = vpack.c.bf16 %v8492_v28, %v8486_v25  ;;  %v3803_v37 = vadd.f32 %v3802_v20, %v3801_v14 }
 0x4bf   : > { %v8651_v26 = vpop.eup %5634  ;;  %v3641_v29 = vsub.f32 %v9536_v42, %v8331_v39  ;;  %v3746_v33 = vmul.f32 1.442695, %v3631_v2  ;;  %5654 = vpow2.f32 %v3738_v31  ;;  %v3804_v47 = vsel %vm3774_vm2, %v8492_v28, 0.0 }
 0x4c0   : > { %v8660_v38 = vpop.eup %5636  ;;  %v3642_v43 = vsub.f32 %v8310_v16, %v8331_v39  ;;  %v9537_v25 = vsub.f32 %v9515_v10, %v8331_v39  ;;  %5656 = vpow2.f32 %v3740_v48  ;;  %3968 = vxpose.xlu0.c.b16.cont [6/8] (narrow) %v3928_v13, 16  ;;  %3954 = vxpose.xlu1.c.b16.end [8/8] (narrow) %v3922_v23, 16  ;;  %v3805_v27 = vadd.f32 %v3804_v47, %v3803_v37 }
 0x4c1   : > { %v8667_v7 = vpop.eup %5638  ;;  %v9538_v28 = vsub.f32 %v9520_v30, %v8331_v39  ;;  %v3806_v16 = vsel %vm3774_vm2, %v8385_v18, 0.0  ;;  %5658 = vpow2.f32 %v3742_v11  ;;  %v3929_v31 = vpack.c.bf16 %v8587_v54, %v8581_v24 }
 0x4c2   : > { %v3748_v41 = vmul.f32 1.442695, %v9537_v25  ;;  %v8677_v10 = vpop.eup %5640  ;;  %5660 = vpow2.f32 %v3744_v51  ;;  %v3931_v53 = vpack.c.bf16 %v8619_v44, %v8613_v60  ;;  %v3807_v35 = vadd.f32 %v3806_v16, %v3805_v27 }
 0x4c3   : > { %v3752_v2 = vmul.f32 1.442695, %v9538_v28  ;;  %v8683_v62 = vpop.eup %5642  ;;  %v9539_v30 = vsub.f32 %v9523_v22, %v8331_v39  ;;  %v3808_v48 = vsel %vm3774_vm2, %v8391_v34, 0.0  ;;  %5662 = vpow2.f32 %v3746_v33 }
 0x4c4   : > { %v8692_v14 = vpop.eup %5644  ;;  %v3756_v11 = vmul.f32 1.442695, %v3636_v36  ;;  %v3758_v51 = vmul.f32 1.442695, %v3637_v52  ;;  %5664 = vpow2.f32 %v3748_v41  ;;  %3969 = vxpose.xlu0.c.b16.cont [7/8] (narrow) %v3929_v31, 16  ;;  %3979 = vxpose.xlu1.c.b16.start [1/8] (narrow) %v3931_v53, 16  ;;  %v3809_v0 = vadd.f32 %v3808_v48, %v3807_v35 }
 0x4c5   : > { %v3754_v18 = vmul.f32 1.442695, %v9539_v30  ;;  %v8700_v22 = vpop.eup %5646  ;;  %v9540_v34 = vsub.f32 %v9530_v12, %v8331_v39  ;;  %v3762_v13 = vmul.f32 1.442695, %v3639_v46  ;;  %5666 = vpow2.f32 %v3750_v55 }
 0x4c6   : > { %v3810_v57 = vsel %vm3774_vm2, %v8500_v59, 0.0  ;;  %v8707_v36 = vpop.eup %5648  ;;  %5668 = vpow2.f32 %v3752_v2  ;;  %v3930_v49 = vpack.c.bf16 %v8603_v50, %v8596_v63  ;;  %v3932_v52 = vpack.c.bf16 %v8635_v5, %v8628_v32 }
 0x4c7   : > { %v3760_v20 = vmul.f32 1.442695, %v9540_v34  ;;  %v3811_v23 = vadd.f32 %v3810_v57, %v3809_v0  ;;  %v8713_v37 = vpop.eup %5650  ;;  %v3764_v42 = vmul.f32 1.442695, %v3640_v45  ;;  %5670 = vpow2.f32 %v3754_v18 }
 0x4c8   : > { %v3812_v39 = vsel %vm3774_vm2, %v8507_v56, 0.0  ;;  %v8719_v59 = vsel %vm3774_vm2, %v8707_v36, 0.0  ;;  %v8721_v12 = vpop.eup %5652  ;;  %v3766_v46 = vmul.f32 1.442695, %v3641_v29  ;;  %5672 = vpow2.f32 %v3756_v11  ;;  %3970 = vxpose.xlu0.c.b16.end [8/8] (narrow) %v3930_v49, 16  ;;  %3980 = vxpose.xlu1.c.b16.cont [2/8] (narrow) %v3932_v52, 16 }
 0x4c9   : > { %v8725_v33 = vsel %vm3774_vm2, %v8713_v37, 0.0  ;;  %v3813_v47 = vadd.f32 %v3812_v39, %v3811_v23  ;;  %v8727_v45 = vpop.eup %5654  ;;  %v3768_v25 = vmul.f32 1.442695, %v3642_v43  ;;  %5674 = vpow2.f32 %v3758_v51 }
 0x4ca   : > { %v3814_v56 = vsel %vm3774_vm2, %v8517_v19, 0.0  ;;  %v8733_v41 = vsel %vm3774_vm2, %v8721_v12, 0.0  ;;  %v8735_v29 = vpop.eup %5656  ;;  %5676 = vpow2.f32 %v3760_v20  ;;  %v8739_v27 = vsel %vm3774_vm2, %v8727_v45, 0.0 }
 0x4cb   : > { %v3933_v55 = vpack.c.bf16 %v8651_v26, %v8645_v3  ;;  %v3815_v28 = vadd.f32 %v3814_v56, %v3813_v47  ;;  %v5659_v43 = vpop.eup %5658  ;;  %v3770_v2 = vmul.f32 1.442695, %v3643_v6  ;;  %5678 = vpow2.f32 %v3762_v13 }
 0x4cc   : > { %v3816_v19 = vsel %vm3774_vm2, %v8523_v1, 0.0  ;;  %v8745_v16 = vpop.eup %5660  ;;  %5680 = vpow2.f32 %v3764_v42  ;;  %v8748_v31 = vsel %vm3774_vm2, %v5659_v43, 0.0  ;;  %v3939_v53 = vpack.c.bf16 %v5659_v43, %v8735_v29 }
 0x4cd   : > { %3981 = vxpose.xlu1.c.b16.cont [3/8] (narrow) %v3933_v55, 16  ;;  %v3817_v35 = vadd.f32 %v3816_v19, %v3815_v28  ;;  %v5663_v30 = vpop.eup %5662  ;;  %5682 = vpow2.f32 %v3766_v46  ;;  %v3818_v18 = vsel %vm3774_vm2, %v8532_v61, 0.0  ;;  %v3934_v48 = vpack.c.bf16 %v8667_v7, %v8660_v38 }
 0x4ce   : > { %v8753_v6 = vpop.eup %5664  ;;  %5684 = vpow2.f32 %v3768_v25  ;;  %v8756_v1 = vsel %vm3774_vm2, %v5663_v30, 0.0  ;;  %3995 = vxpose.xlu0.c.b16.start [1/8] (narrow) %v3939_v53, 16  ;;  %v3820_v0 = vsel %vm3774_vm2, %v8539_v8, 0.0  ;;  %v3940_v20 = vpack.c.bf16 %v5663_v30, %v8745_v16 }
 0x4cf   : > { %v3819_v11 = vadd.f32 %v3818_v18, %v3817_v35  ;;  %v5667_v51 = vpop.eup %5666  ;;  %5686 = vpow2.f32 %v3770_v2  ;;  %v3822_v49 = vsel %vm3774_vm2, %v8549_v4, 0.0  ;;  %v3935_v8 = vpack.c.bf16 %v8683_v62, %v8677_v10 }
 0x4d0   : > { %v8762_v34 = vpop.eup %5668  ;;  %v8765_v61 = vsel %vm3774_vm2, %v5667_v51, 0.0  ;;  %v3824_v46 = vsel %vm3774_vm2, %v8555_v9, 0.0  ;;  %v3941_v56 = vpack.c.bf16 %v5667_v51, %v8753_v6  ;;  %v3826_v43 = vsel %vm3774_vm2, %v8564_v17, 0.0 }
 0x4d1   : > { %3982 = vxpose.xlu1.c.b16.cont [4/8] (narrow) %v3934_v48, 16  ;;  %v3821_v13 = vadd.f32 %v3820_v0, %v3819_v11  ;;  %v5671_v57 = vpop.eup %5670  ;;  %v9541_v9 = vsub.f32 %v8320_v21, %v8323_v40  ;;  %v3936_v35 = vpack.c.bf16 %v8700_v22, %v8692_v14  ;;  %v3828_v17 = vsel %vm3774_vm2, %v8571_v58, 0.0 }
 0x4d2   : > { %v5673_v52 = vpop.eup %5672  ;;  %v8771_v23 = vsel %vm3774_vm2, %v5671_v57, 0.0  ;;  %3996 = vxpose.xlu0.c.b16.cont [2/8] (narrow) %v3940_v20, 16  ;;  %v3942_v0 = vpack.c.bf16 %v5671_v57, %v8762_v34  ;;  %v3937_v58 = vpack.c.bf16 %v8713_v37, %v8707_v36  ;;  %v3836_v36 = vsel %vm3774_vm2, %v8603_v50, 0.0 }
 0x4d3   : > { %v3823_v42 = vadd.f32 %v3822_v49, %v3821_v13  ;;  %v5675_v39 = vpop.eup %5674  ;;  %v8778_v47 = vsel %vm3774_vm2, %v5673_v52, 0.0  ;;  %v3572_v53 = vmul.f32 1.442695, %v9541_v9  ;;  %v3830_v13 = vsel %vm3774_vm2, %v8581_v24, 0.0 }
 0x4d4   : > { %v5677_v25 = vpop.eup %5676  ;;  %v8782_v55 = vsel %vm3774_vm2, %v5675_v39, 0.0  ;;  %v3834_v24 = vsel %vm3774_vm2, %v8596_v63, 0.0  ;;  %v3842_v50 = vsel %vm3774_vm2, %v8628_v32, 0.0  ;;  %v3850_v32 = vsel %vm3774_vm2, %v8660_v38, 0.0 }
 0x4d5   : > { %3983 = vxpose.xlu1.c.b16.cont [5/8] (narrow) %v3935_v8, 16  ;;  %v3825_v4 = vadd.f32 %v3824_v46, %v3823_v42  ;;  %v5679_v28 = vpop.eup %5678  ;;  %v8787_v2 = vsel %vm3774_vm2, %v5677_v25, 0.0  ;;  %5688 = vpow2.f32 %v3572_v53  ;;  %v3832_v42 = vsel %vm3774_vm2, %v8587_v54, 0.0 }
 0x4d6   : > { %v5681_v19 = vpop.eup %5680  ;;  %3997 = vxpose.xlu0.c.b16.cont [3/8] (narrow) %v3941_v56, 16  ;;  %v8795_v18 = vsel %vm3774_vm2, %v5679_v28, 0.0  ;;  %v3943_v46 = vpack.c.bf16 %v5675_v39, %v5673_v52  ;;  %v3944_v37 = vpack.c.bf16 %v5679_v28, %v5677_v25  ;;  %v3838_v54 = vsel %vm3774_vm2, %v8613_v60, 0.0 }
 0x4d7   : > { %v3827_v30 = vadd.f32 %v3826_v43, %v3825_v4  ;;  %v5683_v48 = vpop.eup %5682  ;;  %v8800_v11 = vsel %vm3774_vm2, %v5681_v19, 0.0  ;;  %v3938_v4 = vpack.c.bf16 %v8727_v45, %v8721_v12  ;;  %v3840_v39 = vsel %vm3774_vm2, %v8619_v44, 0.0 }
 0x4d8   : > { %v5685_v51 = vpop.eup %5684  ;;  %v8804_v40 = vsel %vm3774_vm2, %v5683_v48, 0.0  ;;  %v3945_v53 = vpack.c.bf16 %v5683_v48, %v5681_v19  ;;  %v3844_v60 = vsel %vm3774_vm2, %v8635_v5, 0.0  ;;  %v3846_v44 = vsel %vm3774_vm2, %v8645_v3, 0.0 }
 0x4d9   : > { %3984 = vxpose.xlu1.c.b16.cont [6/8] (narrow) %v3936_v35, 16  ;;  %v3829_v21 = vadd.f32 %v3828_v17, %v3827_v30  ;;  %v5687_v20 = vpop.eup %5686  ;;  %v8809_v49 = vsel %vm3774_vm2, %v5685_v51, 0.0  ;;  %v9542_v35 = vmov 0   ;;  %v3848_v30 = vsel %vm3774_vm2, %v8651_v26, 0.0 }
 0x4da   : > { %3998 = vxpose.xlu0.c.b16.cont [4/8] (narrow) %v3942_v0, 16  ;;  %v8814_v57 = vsel %vm3774_vm2, %v5687_v20, 0.0  ;;  %v3946_v25 = vpack.c.bf16 %v5687_v20, %v5685_v51  ;;  %v3852_v0 = vsel %vm3774_vm2, %v8667_v7, 0.0  ;;  %v3854_v5 = vsel %vm3774_vm2, %v8677_v10, 0.0 }
 0x4db   : > { %v3831_v8 = vadd.f32 %v3830_v13, %v3829_v21  ;;  %v3856_v3 = vsel %vm3774_vm2, %v8683_v62, 0.0  ;;  %v3858_v26 = vsel %vm3774_vm2, %v8692_v14, 0.0  ;;  %v3860_v38 = vsel %vm3774_vm2, %v8700_v22, 0.0 }
 0x4dc   : > { %v3870_v62 = vsel %vm3774_vm2, %v8735_v29, 0.0  ;;  %v3874_v14 = vsel %vm3774_vm2, %v8745_v16, 0.0 }
 0x4dd   : > { %3985 = vxpose.xlu1.c.b16.cont [7/8] (narrow) %v3937_v58, 16  ;;  %v3833_v56 = vadd.f32 %v3832_v42, %v3831_v8 }
 0x4de   : > { %3999 = vxpose.xlu0.c.b16.cont [5/8] (narrow) %v3943_v46, 16 }
 0x4df   : > { %v3835_v43 = vadd.f32 %v3834_v24, %v3833_v56  ;;  %v8828_v63 = vpop.eup %5688 }
 0x4e1   : > { %3986 = vxpose.xlu1.c.b16.end [8/8] (narrow) %v3938_v4, 16  ;;  %v3837_v9 = vadd.f32 %v3836_v36, %v3835_v43 }
 0x4e2   : > { %4000 = vxpose.xlu0.c.b16.cont [6/8] (narrow) %v3944_v37, 16 }
 0x4e3   : > { %v3839_v52 = vadd.f32 %v3838_v54, %v3837_v9  ;;  %v9547_v9 = vld [vmem:[#allocation65_spill] sm:$0xff] }
 0x4e5   : > { %5094 = vset.pattern.permute.xlu1 %v9542_v35  ;;  %v3841_v12 = vadd.f32 %v3840_v39, %v3839_v52  ;;  %v9550_v39 = vld [vmem:[#allocation70_spill] sm:$0xff] }
 0x4e6   : > { %4096 = vperm.xlu1 %5094, %v8828_v63   ;;  %4001 = vxpose.xlu0.c.b16.cont [7/8] (narrow) %v3945_v53, 16  ;;  %v9551_v53 = vld [vmem:[#allocation77_spill] sm:$0xff] }
 0x4e7   : > { %v3843_v45 = vadd.f32 %v3842_v50, %v3841_v12  ;;  %v9553_v12 = vld [vmem:[#allocation75_spill] sm:$0xff]  ;;  %v9554_v50 = vld [vmem:[#allocation80_spill] sm:$0xff] }
 0x4e9   : > { %v3845_v28 = vadd.f32 %v3844_v60, %v3843_v45  ;;  %v9557_v45 = vld [vmem:[#allocation26_spill] sm:$0xff] }
 0x4ea   : > { %4002 = vxpose.xlu0.c.b16.end [8/8] (narrow) %v3946_v25, 16 }
 0x4eb   : > { %v3847_v19 = vadd.f32 %v3846_v44, %v3845_v28  ;;  %v9562_v28 = vld [vmem:[#allocation27_spill] sm:$0xff]  ;;  %v9563_v44 = vld [vmem:[#allocation30_spill] sm:$0xff] }
 0x4ed   : > { %v3849_v48 = vadd.f32 %v3848_v30, %v3847_v19  ;;  %v9565_v30 = vld [vmem:[#allocation29_spill] sm:$0xff] }
 0x4ef   : > { %v3851_v17 = vadd.f32 %v3850_v32, %v3849_v48  ;;  %v9566_v48 = vld [vmem:[#allocation33_spill] sm:$0xff] }
 0x4f1   : > { %v3853_v21 = vadd.f32 %v3852_v0, %v3851_v17  ;;  %v9568_v0 = vld [vmem:[#allocation32_spill] sm:$0xff] }
 0x4f3   : > { %v3855_v51 = vadd.f32 %v3854_v5, %v3853_v21  ;;  %5095 = vset.pattern.permute.xlu0 %v9542_v35  ;;  %v9569_v21 = vld [vmem:[#allocation37_spill] sm:$0xff] }
 0x4f5   : > { %v3857_v20 = vadd.f32 %v3856_v3, %v3855_v51  ;;  %v9571_v51 = vld [vmem:[#allocation36_spill] sm:$0xff]  ;;  %v9572_v3 = vld [vmem:[#allocation41_spill] sm:$0xff] }
 0x4f7   : > { %v3859_v13 = vadd.f32 %v3858_v26, %v3857_v20  ;;  %v9574_v26 = vld [vmem:[#allocation40_spill] sm:$0xff] }
 0x4f9   : > { %v3861_v58 = vadd.f32 %v3860_v38, %v3859_v13  ;;  %v9575_v13 = vld [vmem:[#allocation45_spill] sm:$0xff] }
 0x4fb   : > { %v3863_v7 = vadd.f32 %v8719_v59, %v3861_v58  ;;  %v3878_v59 = vsel %vm3774_vm2, %v8753_v6, 0.0  ;;  %v9545_v6 = vld [vmem:[#allocation67_spill] sm:$0xff]  ;;  %v9577_v58 = vld [vmem:[#allocation44_spill] sm:$0xff] }
 0x4fd   : > { %v3865_v8 = vadd.f32 %v8725_v33, %v3863_v7  ;;  %v9578_v7 = vld [vmem:[#allocation49_spill] sm:$0xff] }
 0x4ff   : > { %v3867_v10 = vadd.f32 %v8733_v41, %v3865_v8  ;;  %v9579_v8 = vld [vmem:[#allocation96_spill] sm:$0xff] }
 0x501   : > { %v3869_v42 = vadd.f32 %v8739_v27, %v3867_v10  ;;  %v3882_v27 = vsel %vm3774_vm2, %v8762_v34, 0.0  ;;  %v9581_v10 = vld [vmem:[#allocation48_spill] sm:$0xff] }
 0x503   : > { %v3871_v46 = vadd.f32 %v3870_v62, %v3869_v42  ;;  %v9582_v42 = vld [vmem:[#allocation51_spill] sm:$0xff] }
 0x504   : > { %v9583_v62 = vld [vmem:[#allocation99_spill] sm:$0xff] }
 0x505   : > { %v3873_v56 = vadd.f32 %v8748_v31, %v3871_v46  ;;  %v9585_v46 = vld [vmem:[#allocation50_spill] sm:$0xff] }
 0x507   : > { %v3875_v24 = vadd.f32 %v3874_v14, %v3873_v56  ;;  %v9586_v56 = vld [vmem:[#allocation53_spill] sm:$0xff] }
 0x509   : > { %v3877_v22 = vadd.f32 %v8756_v1, %v3875_v24  ;;  %v9543_v1 = vld [vmem:[#allocation61_spill] sm:$0xff]  ;;  %v9588_v24 = vld [vmem:[#allocation52_spill] sm:$0xff] }
 0x50a   : > { %v3955_v43 = vpop.trf.xlu1 }
 0x50b   : > { %v3879_v33 = vadd.f32 %v3878_v59, %v3877_v22  ;;  %v9589_v22 = vld [vmem:[#allocation55_spill] sm:$0xff]  ;;  %v9590_v59 = vld [vmem:[#allocation105_spill] sm:$0xff] }
 0x50d   : > { %v3881_v41 = vadd.f32 %v8765_v61, %v3879_v33  ;;  %v9592_v33 = vld [vmem:[#allocation54_spill] sm:$0xff] }
 0x50f   : > { %v3883_v4 = vadd.f32 %v3882_v27, %v3881_v41 }
 0x511   : > { %v3885_v29 = vadd.f32 %v8771_v23, %v3883_v4 }
 0x512   : > { %v3971_v31 = vpop.trf.xlu0 }
 0x513   : > { %v3887_v36 = vadd.f32 %v8778_v47, %v3885_v29  ;;  %4043 = vmatprep.mubr.bf16.mxu1 %v3971_v31  ;;  %v9548_v47 = vld [vmem:[#allocation73_spill] sm:$0xff] }
 0x514   : > { %4044 = vmatmul.mubr.bf16.vlgmr.msra.gmra.mrb[172].mxu1 %v3955_v43 }
 0x515   : > { %v3889_v16 = vadd.f32 %v8782_v55, %v3887_v36  ;;  %4871 = vmatpush1.bf16.msk.msra.mxu1 %vm7055_vm10, %v9543_v1  ;;  %v3772_v1 = vld [vmem:[#allocation3] sm:$0x1] }
 0x516   : > { %4874 = vmatprep.subr.msk.bf16.mxu1 %vm7095_vm4, %v9545_v6  ;;  %v3773_v37 = vmul.f32 %v8828_v63, %v3772_v1 }
 0x517   : > { %v3891_v34 = vadd.f32 %v8787_v2, %v3889_v16 }
 0x519   : > { %v3893_v23 = vadd.f32 %v8795_v18, %v3891_v34  ;;  %4877 = vmatpush1.bf16.msk.msra.mxu1 %vm7095_vm4, %v9547_v9  ;;  %v5898_v34 = vmov 1966171168  }
 0x51a   : > { %4880 = vmatprep.subr.msk.bf16.mxu1 %vm7137_vm13, %v9548_v47 }
 0x51b   : > { %v3895_v55 = vadd.f32 %v8800_v11, %v3893_v23  ;;  %v4108_v23 = vunpack.c.l.s4 %v5898_v34 }
 0x51d   : > { %v3897_v52 = vadd.f32 %v8804_v40, %v3895_v55  ;;  %4883 = vmatpush1.bf16.msk.msra.mxu1 %vm7137_vm13, %v9550_v39  ;;  %v9556_v40 = vld [vmem:[#allocation78_spill] sm:$0xff]  ;;  %v4109_v9 = vunpack.c.0.s8 %v4108_v23  ;;  %v9593_v55 = vld [vmem:[#allocation23_spill] sm:$0xff] }
 0x51e   : > { %4886 = vmatprep.subr.msk.bf16.mxu1 %vm7181_vm1, %v9551_v53 }
 0x51f   : > { %v3899_v18 = vadd.f32 %v8809_v49, %v3897_v52  ;;  %v9559_v49 = vld [vmem:[#allocation25_spill] sm:$0xff]  ;;  %v4112_v52 = vsub.s32 %v4109_v9, %v9593_v55 }
 0x521   : > { %v3901_v35 = vadd.f32 %v8814_v57, %v3899_v18  ;;  %4889 = vmatpush1.bf16.msk.msra.mxu1 %vm7181_vm1, %v9553_v12  ;;  %v9560_v57 = vld [vmem:[#allocation28_spill] sm:$0xff] }
 0x522   : > { %4892 = vmatprep.subr.msk.bf16.mxu1 %vm7233_vm11, %v9554_v50 }
 0x523   : > { %3902 = vadd.xlane.f32.xlu0 %v3901_v35  ;;  %v4093_v35 = vld [vmem:[#allocation4] sm:$0x3] }
 0x525   : > { %4895 = vmatpush1.bf16.msk.msra.mxu1 %vm7233_vm11, %v9556_v40  ;;  %v9594_v40 = vlaneseq }
 0x526   : > { %4898 = vmatprep.subr.msk.bf16.mxu1 %vm7245_vm6, %v9557_v45 }
 0x529   : > { %4901 = vmatpush1.bf16.msk.msra.mxu1 %vm7245_vm6, %v9559_v49  ;;  %vm9580_vm6 = vnez %v9579_v8  ;;  %v5899_v49 = vmov (!%p4962_p11), 0  }
 0x52a   : > { %4904 = vmatprep.subr.msk.bf16.mxu1 %vm7285_vm0, %v9560_v57  ;;  %5696 = vset.pattern.permute.xlu0 (!%p4962_p11), %v5899_v49 }
 0x52b   : > { %v3987_v41 = vpop.trf.xlu1 }
 0x52d   : > { %4907 = vmatpush1.bf16.msk.msra.mxu1 %vm7285_vm0, %v9562_v28 }
 0x52e   : > { %4910 = vmatprep.subr.msk.bf16.mxu1 %vm7319_vm7, %v9563_v44 }
 0x531   : > { %4913 = vmatpush1.bf16.msk.msra.mxu1 %vm7319_vm7, %v9565_v30 }
 0x532   : > { %4916 = vmatprep.subr.msk.bf16.mxu1 %vm7353_vm12, %v9566_v48 }
 0x534   : > { %v4003_v17 = vpop.trf.xlu0 }
 0x535   : > { %4919 = vmatpush1.bf16.msk.msra.mxu1 %vm7353_vm12, %v9568_v0  ;;  %4084 = vmatprep.mubr.bf16.mxu1 %v4003_v17 }
 0x536   : > { %4922 = vmatprep.subr.msk.bf16.mxu1 %vm7387_vm8, %v9569_v21 }
 0x539   : > { %4925 = vmatpush1.bf16.msk.msra.mxu1 %vm7387_vm8, %v9571_v51  ;;  %vm9584_vm8 = vnez %v9583_v62 }
 0x53a   : > { %4928 = vmatprep.subr.msk.bf16.mxu1 %vm7421_vm9, %v9572_v3 }
 0x53d   : > { %4931 = vmatpush1.bf16.msk.msra.mxu1 %vm7421_vm9, %v9574_v26 }
 0x53e   : > { %4934 = vmatprep.subr.msk.bf16.mxu1 %vm7455_vm5, %v9575_v13 }
 0x541   : > { %4937 = vmatpush1.bf16.msk.msra.mxu1 %vm7455_vm5, %v9577_v58  ;;  %vm9591_vm5 = vnez %v9590_v59 }
 0x542   : > { %4940 = vmatprep.subr.msk.bf16.mxu1 %vm9580_vm6, %v9578_v7 }
 0x545   : > { %4943 = vmatpush1.bf16.msk.msra.mxu1 %vm9580_vm6, %v9581_v10 }
 0x546   : > { %4946 = vmatprep.subr.msk.bf16.mxu1 %vm9584_vm8, %v9582_v42 }
 0x549   : > { %4949 = vmatpush1.bf16.msk.msra.mxu1 %vm9584_vm8, %v9585_v46 }
 0x54a   : > { %4952 = vmatprep.subr.msk.bf16.mxu1 %vm7574_vm3, %v9586_v56 }
 0x54d   : > { %4955 = vmatpush1.bf16.msk.msra.mxu1 %vm7574_vm3, %v9588_v24  ;;  %vm4125_vm3 = vcmp.lt.s32.totalorder %v9594_v40, 256 }
 0x54e   : > { %4958 = vmatprep.subr.msk.bf16.mxu1 %vm9591_vm5, %v9589_v22 }
 0x551   : > { %4961 = vmatpush1.bf16.msk.msra.mxu1 %vm9591_vm5, %v9592_v33 }
 0x554   : > { %4085 = vmatmul.mubr.bf16.vlgmr.msra.gmra.mrb[172].mxu1 %v3987_v41 }
 0x565   : > { %v4097_v47 = vpop.permute.xlu1 %4096 }
 0x566   : > { %v4102_v53 = vrot.slane %v4097_v47, %v9508_v15  ;;  %v9595_v15 = vld [vmem:[#allocation24_spill] sm:$0xff] (!%p4962_p11) }
 0x568   : > { %v4103_v50 = vmul.f32 %v4102_v53, %v4093_v35 }
 0x5b0   : > { %v3903_v27 = vpop.xlane.xlu0 %3902 }
 0x5b1   : > { %v3904_v4 = vrot.slane %v3903_v27, 4 }
 0x5b3   : > { %v3905_v29 = vadd.f32 %v3904_v4, %v3903_v27 }
 0x5b5   : > { %v3906_v43 = vrot.slane %v3905_v29, 2 }
 0x5b7   : > { %v3907_v31 = vadd.f32 %v3906_v43, %v3905_v29 }
 0x5b9   : > { %v3908_v36 = vrot.slane %v3907_v31, 1 }
 0x5bb   : > { %v3909_v16 = vadd.f32 %v3908_v36, %v3907_v31 }
 0x5bd   : > { %5010 = vpush %v3909_v16 }
 0x5ee   : > { %s5011_s22 = spop %5010 }
 0x5ef   : > { %v3911_v6 = vstv %s5011_s22 }
 0x5f0   : > { %v3912_v61 = vadd.f32 %v3911_v6, %v3773_v37 }
 0x5f2   : > { %3914 = vst.msk [vmem:[#allocation3] sm:$0x1] %vm3913_vm15, %v3912_v61 }
 0x5f9   : > { %v4134_v60 = vld [vmem:[#allocation3] sm:$0x1] (!%p4962_p11) }
 0x5fa   : > { %4137 = vperm.xlu0 (!%p4962_p11), %5696, %v4134_v60  }
 0x627   : > { %v4086_v54 = vpop.f32.mrb[172].mxu1 }
 0x628   : > { %v4088_v39 = vpop.f32.mrb[173].mxu1 }
 0x629   : > { %v4106_v2 = vcombine.low %v4086_v54, %v4088_v39  ;;  %v4090_v18 = vpop.f32.mrb[174].mxu1 }
 0x62a   : > { %v4091_v12 = vpop.f32.mrb[175].mxu1 }
 0x62b   : > { %v4113_v63 = vrot.slane %v4106_v2, %v4112_v52  ;;  %4132 = sbr.rel (%p4962_p11) target bundleno = 1674 (0x68a), region = 80 }
 0x62d   : > { %v4120_v11 = vrot.slane %v4113_v63, %v4112_v52 }
 0x62f   : > { %v4122_v45 = vadd.f32 %v4120_v11, %v4103_v50 }
 0x631   : > { %4127 = vst.msk [vmem:[#allocation4] sm:$0x3] %vm4125_vm3, %v4122_v45 }
 0x638   : > { %v4133_v28 = vld [vmem:[#allocation4] sm:$0x3] }
 0x679   : > { %v4138_v57 = vpop.permute.xlu0 %4137 }
 0x67a   : > { %v4143_v25 = vrot.slane %v4138_v57, %v9595_v15 }
 0x67c   : > { %5697 = vrcp.f32 %v4143_v25 }
 0x686   : > { %v5698_v44 = vpop.eup %5697 }
 0x687   : > { %v4145_v19 = vmul.f32 %v5698_v44, %v4133_v28 }
 0x689   : > { %4146 = vst.msk [vmem:[#allocation16] sm:$0x3] %vm4125_vm3, %v4145_v19 }
 0x68a PF: > { %p5045_p13 = scmp.eq.s32.totalorder %s5981_s0, 1  ;;  %s5900_s27 = smov [#allocation16]  }
 0x68b   : > { %s4154_s30 = sshll.u32 %s5900_s27, 4  ;;  %s4155_s30 = int_to_ptr.vmem [resolvable:$true] %s4154_s30 }
 0x68c   : > { %s5811_s20 = scalar_lea.vmem %s4155_s30, 32  ;;  %p5818_p8 = scmp.lt.s32.totalorder %s4155_s30, %s4155_s30 }
 0x68d   : > { %p5812_p5 = scmp.ne.s32.totalorder %s4155_s30, %s5811_s20  ;;  %p5819_p10 = scmp.lt.s32.totalorder %s5811_s20, %s5811_s20 }
 0x68f   : > { %p5813_p0 = pnand %p5812_p5, %p5045_p13  ;;  %p5820_p9 = por %p5819_p10, %p5818_p8 }
 0x691   : > { %p5814_p4 = pneg %p5813_p0 }
 0x693   : > { %p5821_p1 = pnand %p5820_p9, %p5814_p4 }
 0x695   : > { %5824 = shalt.err (!%p5821_p1)
}
 0x696   : > { %s5825_s17 = scalar_lea.hbm %s9023_s10, 32 }
 0x697   : > { %p5826_p2 = scmp.ne.s32.totalorder %s9023_s10, %s5825_s17  ;;  %p5831_p6 = scmp.lt.u32.totalorder %s5825_s17, %s9023_s10 }
 0x699   : > { %p5827_p12 = pnand %p5826_p2, %p5045_p13 }
 0x69b   : > { %p5828_p3 = pneg %p5827_p12 }
 0x69d   : > { %p5833_p7 = pnand %p5831_p6, %p5828_p3 }
 0x69f   : > { %5836 = shalt.err (!%p5833_p7)
}
 0x6a0   : > { %5026 = dma.vmem_to_hbm [thread:$0]  (%p5045_p13), %s4155_s30, 32, %s9023_s10, [#allocation10]  }
 0x6a1   : > { %5866 = dma.done.wait (%p5045_p13), [#allocation10], 32  }
 0x6a2   : > { %5868 = vsyncadd (%p5045_p13), [#allocation10], 4294967264 }
 0x6a3 PF: > { %s9596_s20 = sld [smem:[#allocation21_spill]]  ;;  %s9597_s14 = sld [smem:[#allocation22_spill]] }
 0x6a4   : > { %s9598_s17 = smov %s5875_s18  ;;  %s9599_s18 = smov %s5879_s19 }
 0x6a9   : > { %p26_p11 = scmp.ge.s32.totalorder %s9596_s20, 4   ;;  %s9600_s19 = smov %s9597_s14 }
 0x6ab   :  { %28 = sbr.rel (!%p26_p11) target bundleno = 9 (0x9), region = 113 }
 0x6b2   :  { %4167 = vsyncpa [#allocation9], 1 }
 0x6b3   :  { %4169 = vsyncpa [#allocation9 + $0x1], 1 }
 0x6b4   :  { %4170 = vsyncpa [#allocation12], 1 }
 0x6b5   :  { %4171 = vsyncpa [#allocation15], 1 }
 0x6b6   :  { %4172 = vsyncpa [#allocation10], 1 }
 0x6b7   :  { %4174 = vsyncpa [#allocation10 + $0x1], 1 }

</bundles_post_ra>
